<compile_context>
chip_gen: v7x
topology: tpu7x:2x2x1
jax: 0.10.0
libtpu: 0.0.40
codegen_flags: <defaults>
</compile_context>

<pallas_src>
import functools

import jax
import jax.numpy as jnp
from jax import lax
from jax.experimental import pallas as pl
from jax.experimental.pallas import tpu as pltpu

EPS = 1e-5
D = 256             # hidden width
H = 128             # LRB bottleneck = 256 // 2
K_IN = 32 + 6       # raw stem input features
K_PAD = 128         # lane-aligned padded stem input width
N_LRB = 8           # layerer_residual_block count in the tree
N_FCL = 8           # fclnrelu(256,256) count (tree + head)
N_STAGES = 2        # stage 0: stem + mid1 (+fcl3);  stage 1: mid2 + head
N_PER_STAGE = 4     # 4 LRBs and 4 fcls per stage

WEIGHT_DTYPE = jnp.bfloat16   # bf16 on all generations; flip to f32 for exactness


# ----------------------------------------------------------------------------
# Fused kernel.
# ----------------------------------------------------------------------------
def _decoder_kernel(x_ref,
                    stem_w_ref, stem_bgb_ref,
                    lrb_w1_ref, lrb_bgb1_ref, lrb_w2_ref, lrb_bgb2_ref,
                    fcl_w_ref, fcl_bgb_ref,
                    head_wt_ref, head_b_ref,
                    o_ref,
                    xpad_ref, z_ref, skip_ref,
                    *, staged, wdt):

    def _ln(y, g, bt):
        # Two independent cross-lane reductions (s1, s2) issue back-to-back on
        # the XLU; mean/var derived on the VPU.  Biased variance + eps, as in
        # torch.nn.LayerNorm.  f32 throughout.
        inv_n = 1.0 / y.shape[-1]
        s1 = jnp.sum(y, axis=-1, keepdims=True)
        s2 = jnp.sum(y * y, axis=-1, keepdims=True)
        mean = s1 * inv_n
        var = s2 * inv_n - mean * mean
        return (y - mean) * lax.rsqrt(var + EPS) * g + bt

    def _mm(y, w):
        # Both MXU operands in the (bf16) weight dtype; f32 accumulation.
        return jnp.dot(y.astype(wdt), w, preferred_element_type=jnp.float32)

    def _fcl(y, w, bgb):                      # relu(LN(y @ W + b))
        h = _mm(y, w) + bgb[0:1]
        return jnp.maximum(_ln(h, bgb[1:2], bgb[2:3]), 0.0)

    def _fcl_i(y, s, f):                      # stage-stacked fclnrelu(256,256)
        return _fcl(y, fcl_w_ref[s, f], fcl_bgb_ref[s, f])

    def _lrb(y, s, l):                        # layerer_residual_block(256)
        bgb1 = lrb_bgb1_ref[s, l]
        bgb2 = lrb_bgb2_ref[s, l]
        h = _mm(y, lrb_w1_ref[s, l]) + bgb1[0:1]
        h = jnp.maximum(_ln(h, bgb1[1:2], bgb1[2:3]), 0.0)
        z = y + _mm(h, lrb_w2_ref[s, l]) + bgb2[0:1]
        return jnp.maximum(_ln(z, bgb2[1:2], bgb2[2:3]), 0.0)

    def _inner(y, s, l, f):                   # residual(LRB, fcl, LRB)
        z = _lrb(y, s, l)
        z = _fcl_i(z, s, f)
        z = _lrb(z, s, l + 1)
        return z + y

    def _mid(y, s):                           # residual(inner, fcl, inner)
        z = _inner(y, s, 0, 0)
        z = _fcl_i(z, s, 1)
        z = _inner(z, s, 2, 2)
        return z + y

    def _pad_x():
        # In-kernel zero-pad of the 38-wide input to 128 lanes (masked store
        # into zeroed scratch); padding columns hit zero stem-weight rows.
        xpad_ref[...] = jnp.zeros_like(xpad_ref)
        xpad_ref[:, 0:K_IN] = x_ref[...].astype(jnp.float32)

    def _half0(s):                            # stem + mid1 + mid-level fcl
        y = _fcl(xpad_ref[...], stem_w_ref[...], stem_bgb_ref[...])
        z = _mid(y, s)
        z = _fcl_i(z, s, 3)
        return z, y

    def _half1(z, y, s):                      # mid2 + outer skip + head
        z = _mid(z, s)
        y = z + y                             # outermost residual
        y = _fcl_i(y, s, 3)                   # head fclnrelu
        # Head Linear(256 -> 1): VPU multiply + lane reduction (no N=1 MXU op).
        return (jnp.sum(y * head_wt_ref[...], axis=-1, keepdims=True)
                + head_b_ref[...])

    if staged:
        stage = pl.program_id(1)

        @pl.when(stage == 0)
        def _():
            _pad_x()
            z, y = _half0(0)
            z_ref[...] = z                    # carried activation
            skip_ref[...] = y                 # carried outermost skip

        @pl.when(stage == 1)
        def _():
            o_ref[...] = _half1(z_ref[...], skip_ref[...], 0).astype(o_ref.dtype)
    else:
        _pad_x()
        z, y = _half0(0)
        o_ref[...] = _half1(z, y, 1).astype(o_ref.dtype)


# ----------------------------------------------------------------------------
# Wrapper: one pallas_call; staged weight pipeline for single-tile batches,
# row-parallel grid with resident weights otherwise.
# ----------------------------------------------------------------------------
def decoder_forward(params, x, *, tile_m=128):
    m, kin = x.shape
    assert kin == K_IN
    x = x.astype(jnp.float32)

    # Row tiling (tile_m=128 default; prefer 64-128 on v5e). Ragged batches
    # are padded with zero rows and sliced back afterwards.
    if m <= tile_m:
        tm, m_pad = m, m
    else:
        tm = tile_m
        m_pad = ((m + tm - 1) // tm) * tm
    if m_pad != m:
        x = jnp.pad(x, ((0, m_pad - m), (0, 0)))
    n_row_tiles = m_pad // tm

    # Single row tile -> 2-stage grid so stage-1 weight DMAs hide under
    # stage-0 compute.  Multiple row tiles -> keep weights resident (fetched
    # once) and shard rows across TensorCores ("parallel").
    staged = n_row_tiles == 1
    wdt = params["lrb_w1"].dtype

    if staged:
        grid = (n_row_tiles, N_STAGES)
        semantics = ("parallel", "arbitrary")

        def row_spec(shape):
            return pl.BlockSpec(shape, lambda i, s: (i,) + (0,) * (len(shape) - 1))

        def const_spec(shape):
            return pl.BlockSpec(shape, lambda i, s: (0,) * len(shape))

        def stage_spec(shape):          # per-stage slab of a (2, ...) stacked array
            blk = (1,) + tuple(shape[1:])
            return pl.BlockSpec(blk, lambda i, s: (s,) + (0,) * (len(shape) - 1))
    else:
        grid = (n_row_tiles,)
        semantics = ("parallel",)

        def row_spec(shape):
            return pl.BlockSpec(shape, lambda i: (i,) + (0,) * (len(shape) - 1))

        def const_spec(shape):
            return pl.BlockSpec(shape, lambda i: (0,) * len(shape))

        stage_spec = const_spec          # whole stacked slabs stay VMEM-resident

    args = (
        x,
        params["stem_w"], params["stem_bgb"],
        params["lrb_w1"], params["lrb_bgb1"],
        params["lrb_w2"], params["lrb_bgb2"],
        params["fcl_w"], params["fcl_bgb"],
        params["head_wt"], params["head_b"],
    )
    in_specs = [
        row_spec((tm, K_IN)),
        const_spec(params["stem_w"].shape), const_spec(params["stem_bgb"].shape),
        stage_spec(params["lrb_w1"].shape), stage_spec(params["lrb_bgb1"].shape),
        stage_spec(params["lrb_w2"].shape), stage_spec(params["lrb_bgb2"].shape),
        stage_spec(params["fcl_w"].shape), stage_spec(params["fcl_bgb"].shape),
        const_spec(params["head_wt"].shape), const_spec(params["head_b"].shape),
    ]

    out = pl.pallas_call(
        functools.partial(_decoder_kernel, staged=staged, wdt=wdt),
        out_shape=jax.ShapeDtypeStruct((m_pad, 1), jnp.float32),
        grid=grid,
        in_specs=in_specs,
        out_specs=row_spec((tm, 1)),
        scratch_shapes=[
            pltpu.VMEM((tm, K_PAD), jnp.float32),   # zero-padded stem input
            pltpu.VMEM((tm, D), jnp.float32),       # staged carry: activation
            pltpu.VMEM((tm, D), jnp.float32),       # staged carry: outer skip
        ],
        compiler_params=pltpu.CompilerParams(
            dimension_semantics=semantics,
            vmem_limit_bytes=32 * 1024 * 1024,      # safe for v7x's 64 MiB VMEM
        ),
    )(*args)
    return out[:m]


# ----------------------------------------------------------------------------
# Deterministic parameter construction (stage-stacked layout).
# ----------------------------------------------------------------------------
def make_params(key):
    kit = iter(jax.random.split(key, 64))

    def linear(din, dout):
        k1, k2 = jax.random.split(next(kit))
        s = 1.0 / float(din) ** 0.5
        w = jax.random.uniform(k1, (din, dout), jnp.float32, -s, s)
        b = jax.random.uniform(k2, (1, dout), jnp.float32, -s, s)
        return w, b

    def bgb(b, dim):  # [bias; gamma; beta] stacked -> (3, dim)
        return jnp.concatenate(
            [b, jnp.ones((1, dim), jnp.float32), jnp.zeros((1, dim), jnp.float32)],
            axis=0)

    wdt = WEIGHT_DTYPE

    # stem Linear(38 -> 256): zero rows pad the input dim to 128 lanes (exact).
    w, b = linear(K_IN, D)
    stem_w = jnp.zeros((K_PAD, D), jnp.float32).at[:K_IN].set(w)
    stem_bgb = bgb(b, D)

    lrb_w1, lrb_bgb1, lrb_w2, lrb_bgb2 = [], [], [], []
    for _ in range(N_LRB):
        w1, b1 = linear(D, H)
        w2, b2 = linear(H, D)
        lrb_w1.append(w1); lrb_bgb1.append(bgb(b1, H))
        lrb_w2.append(w2); lrb_bgb2.append(bgb(b2, D))

    fcl_w, fcl_bgb = [], []
    for _ in range(N_FCL):
        w, b = linear(D, D)
        fcl_w.append(w); fcl_bgb.append(bgb(b, D))

    head_w, head_b = linear(D, 1)

    def stage_stack(xs):     # list of 8 -> (2, 4, ...) stage-major
        a = jnp.stack(xs)
        return a.reshape((N_STAGES, N_PER_STAGE) + a.shape[1:])

    return dict(
        stem_w=stem_w.astype(wdt), stem_bgb=stem_bgb,
        lrb_w1=stage_stack(lrb_w1).astype(wdt), lrb_bgb1=stage_stack(lrb_bgb1),
        lrb_w2=stage_stack(lrb_w2).astype(wdt), lrb_bgb2=stage_stack(lrb_bgb2),
        fcl_w=stage_stack(fcl_w).astype(wdt), fcl_bgb=stage_stack(fcl_bgb),
        head_wt=head_w.T,                      # (1, 256), f32 for the VPU head
        head_b=head_b.reshape(1, 1),
    )


# ----------------------------------------------------------------------------
# Pure-JAX reference (same stacked params, torch-style centered LayerNorm).
# ----------------------------------------------------------------------------
def _ref_forward(params, x):
    xp = jnp.pad(x.astype(jnp.float32), ((0, 0), (0, K_PAD - x.shape[1])))
    wdt = params["lrb_w1"].dtype

    def mm(y, w):
        return jnp.dot(y.astype(wdt), w, preferred_element_type=jnp.float32)

    def ln(y, g, bt):
        m = y.mean(-1, keepdims=True)
        c = y - m
        v = (c * c).mean(-1, keepdims=True)
        return c / jnp.sqrt(v + EPS) * g + bt

    def fcl(y, w, bgb):
        h = mm(y, w) + bgb[0:1]
        return jnp.maximum(ln(h, bgb[1:2], bgb[2:3]), 0.0)

    def fcl_i(y, g):
        s, l = g // 4, g % 4
        return fcl(y, params["fcl_w"][s, l], params["fcl_bgb"][s, l])

    def lrb(y, g):
        s, l = g // 4, g % 4
        bgb1 = params["lrb_bgb1"][s, l]; bgb2 = params["lrb_bgb2"][s, l]
        h = mm(y, params["lrb_w1"][s, l]) + bgb1[0:1]
        h = jnp.maximum(ln(h, bgb1[1:2], bgb1[2:3]), 0.0)
        z = y + mm(h, params["lrb_w2"][s, l]) + bgb2[0:1]
        return jnp.maximum(ln(z, bgb2[1:2], bgb2[2:3]), 0.0)

    def inner(y, l, f):
        z = lrb(y, l); z = fcl_i(z, f); z = lrb(z, l + 1)
        return z + y

    def mid(y, l, f):
        z = inner(y, l, f); z = fcl_i(z, f + 1); z = inner(z, l + 2, f + 2)
        return z + y

    y = fcl(xp, params["stem_w"], params["stem_bgb"])
    z = mid(y, 0, 0); z = fcl_i(z, 3); z = mid(z, 4, 4); y = z + y
    y = fcl_i(y, 7)
    return jnp.sum(y * params["head_wt"], axis=-1, keepdims=True) + params["head_b"]


# ----------------------------------------------------------------------------
if __name__ == "__main__":
    key = jax.random.PRNGKey(0)
    kp, kx = jax.random.split(key)
    params = make_params(kp)
    tol = 1e-3 if WEIGHT_DTYPE == jnp.float32 else 5e-2

    # Small batch (latency path): staged weight pipeline, grid (1, 2).
    x_small = jax.random.normal(kx, (8, K_IN), jnp.float32)
    out_small = jax.block_until_ready(decoder_forward(params, x_small))
    ref_small = _ref_forward(params, x_small)
    assert out_small.shape == (8, 1)
    err_s = float(jnp.max(jnp.abs(out_small - ref_small)))
    assert err_s < tol, err_s

    # Larger ragged batch (throughput path): row-parallel grid, resident weights.
    x_big = jax.random.normal(jax.random.PRNGKey(1), (200, K_IN), jnp.float32)
    out_big = jax.block_until_ready(decoder_forward(params, x_big, tile_m=128))
    ref_big = _ref_forward(params, x_big)
    assert out_big.shape == (200, 1)
    err_b = float(jnp.max(jnp.abs(out_big - ref_big)))
    assert err_b < tol, err_b

    print("KERNEL_OK")
</pallas_src>

<mosaic_0001>
module attributes {stable_mosaic.version = 11 : i64} {
  func.func @_decoder_kernel(%arg0: i32, %arg1: i32, %arg2: memref<8x38xf32, #tpu.memory_space<vmem>>, %arg3: memref<128x256xbf16, #tpu.memory_space<vmem>>, %arg4: memref<3x256xf32, #tpu.memory_space<vmem>>, %arg5: memref<1x4x256x128xbf16, #tpu.memory_space<vmem>>, %arg6: memref<1x4x3x128xf32, #tpu.memory_space<vmem>>, %arg7: memref<1x4x128x256xbf16, #tpu.memory_space<vmem>>, %arg8: memref<1x4x3x256xf32, #tpu.memory_space<vmem>>, %arg9: memref<1x4x256x256xbf16, #tpu.memory_space<vmem>>, %arg10: memref<1x4x3x256xf32, #tpu.memory_space<vmem>>, %arg11: memref<1x256xf32, #tpu.memory_space<vmem>>, %arg12: memref<1x1xf32, #tpu.memory_space<vmem>>, %arg13: memref<8x1xf32, #tpu.memory_space<vmem>>, %arg14: memref<8x128xf32, #tpu.memory_space<vmem>>, %arg15: memref<8x256xf32, #tpu.memory_space<vmem>>, %arg16: memref<8x256xf32, #tpu.memory_space<vmem>>) attributes {dimension_semantics = [#tpu.dimension_semantics<parallel>, #tpu.dimension_semantics<arbitrary>], iteration_bounds = array<i64: 1, 2>, scalar_prefetch = 0 : i64, scratch_operands = 3 : i64, tpu.core_type = #tpu.core_type<tc>, window_params = [{transform_indices = @transform_0, window_bounds = array<i64: 8, 38>}, {pipeline_mode = #tpu.pipeline_mode<synchronous>, transform_indices = @transform_1, window_bounds = array<i64: 128, 256>}, {pipeline_mode = #tpu.pipeline_mode<synchronous>, transform_indices = @transform_2, window_bounds = array<i64: 3, 256>}, {transform_indices = @transform_3, window_bounds = array<i64: 1, 4, 256, 128>}, {transform_indices = @transform_4, window_bounds = array<i64: 1, 4, 3, 128>}, {transform_indices = @transform_5, window_bounds = array<i64: 1, 4, 128, 256>}, {transform_indices = @transform_6, window_bounds = array<i64: 1, 4, 3, 256>}, {transform_indices = @transform_7, window_bounds = array<i64: 1, 4, 256, 256>}, {transform_indices = @transform_8, window_bounds = array<i64: 1, 4, 3, 256>}, {pipeline_mode = #tpu.pipeline_mode<synchronous>, transform_indices = @transform_9, window_bounds = array<i64: 1, 256>}, {pipeline_mode = #tpu.pipeline_mode<synchronous>, transform_indices = @transform_10, window_bounds = array<i64: 1, 1>}, {transform_indices = @transform_11, window_bounds = array<i64: 8, 1>}]} {
    %c0_i32 = arith.constant 0 : i32
    %0 = arith.cmpi eq, %arg1, %c0_i32 : i32
    %1 = arith.extui %0 : i1 to i32
    %c0_i32_0 = arith.constant 0 : i32
    %2 = arith.cmpi ne, %1, %c0_i32_0 : i32
    scf.if %2 {
      %cst = arith.constant 0.000000e+00 : f32
      %6 = vector.broadcast %cst : f32 to vector<8x128xf32>
      %c0 = arith.constant 0 : index
      %c0_2 = arith.constant 0 : index
      %7 = vector.load %arg14[%c0, %c0_2] : memref<8x128xf32, #tpu.memory_space<vmem>>, vector<8x128xf32>
      tpu.vector_store %arg14[%c0, %c0_2], %6 {strides = array<i32>} : memref<8x128xf32, #tpu.memory_space<vmem>>, vector<8x128xf32>,
      %c0_3 = arith.constant 0 : index
      %c0_4 = arith.constant 0 : index
      %8 = vector.load %arg2[%c0_3, %c0_4] : memref<8x38xf32, #tpu.memory_space<vmem>>, vector<8x38xf32>
      %c0_5 = arith.constant 0 : index
      %c0_6 = arith.constant 0 : index
      %9 = vector.load %arg14[%c0_5, %c0_6] : memref<8x128xf32, #tpu.memory_space<vmem>>, vector<8x38xf32>
      tpu.vector_store %arg14[%c0_5, %c0_6], %8 {strides = array<i32>} : memref<8x128xf32, #tpu.memory_space<vmem>>, vector<8x38xf32>,
      %c0_7 = arith.constant 0 : index
      %c0_8 = arith.constant 0 : index
      %10 = vector.load %arg14[%c0_7, %c0_8] : memref<8x128xf32, #tpu.memory_space<vmem>>, vector<8x128xf32>
      %c0_9 = arith.constant 0 : index
      %c0_10 = arith.constant 0 : index
      %11 = vector.load %arg3[%c0_9, %c0_10] : memref<128x256xbf16, #tpu.memory_space<vmem>>, vector<128x256xbf16>
      %c0_11 = arith.constant 0 : index
      %c0_12 = arith.constant 0 : index
      %12 = vector.load %arg4[%c0_11, %c0_12] : memref<3x256xf32, #tpu.memory_space<vmem>>, vector<3x256xf32>
      %13 = arith.truncf %10 : vector<8x128xf32> to vector<8x128xbf16>
      %cst_13 = arith.constant dense<0.000000e+00> : vector<8x256xf32>
      %14 = tpu.matmul %13, %11, %cst_13 {dimension_numbers = #tpu.dot_dimension_numbers<[1], [0], [0], [1], [0, 0, 1, 1], [], []>} : vector<8x128xbf16>, vector<128x256xbf16>, vector<8x256xf32> -> vector<8x256xf32>
      %15 = vector.extract_strided_slice %12 {offsets = [0, 0], sizes = [1, 256], strides = [1, 1]} : vector<3x256xf32> to vector<1x256xf32>
      %16 = vector.broadcast %15 : vector<1x256xf32> to vector<8x256xf32>
      %17 = arith.addf %14, %16 : vector<8x256xf32>
      %18 = vector.extract_strided_slice %12 {offsets = [1, 0], sizes = [1, 256], strides = [1, 1]} : vector<3x256xf32> to vector<1x256xf32>
      %19 = vector.extract_strided_slice %12 {offsets = [2, 0], sizes = [1, 256], strides = [1, 1]} : vector<3x256xf32> to vector<1x256xf32>
      %cst_14 = arith.constant dense<0.000000e+00> : vector<8xf32>
      %20 = vector.multi_reduction <add>, %17, %cst_14 [1] : vector<8x256xf32> to vector<8xf32>
      %21 = vector.shape_cast %20 : vector<8xf32> to vector<8x1xf32>
      %22 = arith.mulf %17, %17 : vector<8x256xf32>
      %cst_15 = arith.constant dense<0.000000e+00> : vector<8xf32>
      %23 = vector.multi_reduction <add>, %22, %cst_15 [1] : vector<8x256xf32> to vector<8xf32>
      %24 = vector.shape_cast %23 : vector<8xf32> to vector<8x1xf32>
      %cst_16 = arith.constant 3.906250e-03 : f32
      %25 = vector.broadcast %cst_16 : f32 to vector<8x1xf32>
      %26 = arith.mulf %21, %25 : vector<8x1xf32>
      %cst_17 = arith.constant 3.906250e-03 : f32
      %27 = vector.broadcast %cst_17 : f32 to vector<8x1xf32>
      %28 = arith.mulf %24, %27 : vector<8x1xf32>
      %29 = arith.mulf %26, %26 : vector<8x1xf32>
      %30 = arith.subf %28, %29 : vector<8x1xf32>
      %31 = vector.broadcast %26 : vector<8x1xf32> to vector<8x256xf32>
      %32 = arith.subf %17, %31 : vector<8x256xf32>
      %cst_18 = arith.constant 9.99999974E-6 : f32
      %33 = vector.broadcast %cst_18 : f32 to vector<8x1xf32>
      %34 = arith.addf %30, %33 : vector<8x1xf32>
      %35 = math.rsqrt %34 : vector<8x1xf32>
      %36 = vector.broadcast %35 : vector<8x1xf32> to vector<8x256xf32>
      %37 = arith.mulf %32, %36 : vector<8x256xf32>
      %38 = vector.broadcast %18 : vector<1x256xf32> to vector<8x256xf32>
      %39 = arith.mulf %37, %38 : vector<8x256xf32>
      %40 = vector.broadcast %19 : vector<1x256xf32> to vector<8x256xf32>
      %41 = arith.addf %39, %40 : vector<8x256xf32>
      %cst_19 = arith.constant 0.000000e+00 : f32
      %42 = vector.broadcast %cst_19 : f32 to vector<8x256xf32>
      %43 = arith.maximumf %41, %42 : vector<8x256xf32>
      %c0_20 = arith.constant 0 : index
      %c0_21 = arith.constant 0 : index
      %c0_22 = arith.constant 0 : index
      %c0_23 = arith.constant 0 : index
      %44 = vector.load %arg6[%c0_20, %c0_21, %c0_22, %c0_23] : memref<1x4x3x128xf32, #tpu.memory_space<vmem>>, vector<1x1x3x128xf32>
      %45 = vector.shape_cast %44 : vector<1x1x3x128xf32> to vector<3x128xf32>
      %c0_24 = arith.constant 0 : index
      %c0_25 = arith.constant 0 : index
      %c0_26 = arith.constant 0 : index
      %c0_27 = arith.constant 0 : index
      %46 = vector.load %arg8[%c0_24, %c0_25, %c0_26, %c0_27] : memref<1x4x3x256xf32, #tpu.memory_space<vmem>>, vector<1x1x3x256xf32>
      %47 = vector.shape_cast %46 : vector<1x1x3x256xf32> to vector<3x256xf32>
      %c0_28 = arith.constant 0 : index
      %c0_29 = arith.constant 0 : index
      %c0_30 = arith.constant 0 : index
      %c0_31 = arith.constant 0 : index
      %48 = vector.load %arg5[%c0_28, %c0_29, %c0_30, %c0_31] : memref<1x4x256x128xbf16, #tpu.memory_space<vmem>>, vector<1x1x256x128xbf16>
      %49 = vector.shape_cast %48 : vector<1x1x256x128xbf16> to vector<256x128xbf16>
      %50 = arith.truncf %43 : vector<8x256xf32> to vector<8x256xbf16>
      %cst_32 = arith.constant dense<0.000000e+00> : vector<8x128xf32>
      %51 = tpu.matmul %50, %49, %cst_32 {dimension_numbers = #tpu.dot_dimension_numbers<[1], [0], [0], [1], [0, 0, 1, 1], [], []>} : vector<8x256xbf16>, vector<256x128xbf16>, vector<8x128xf32> -> vector<8x128xf32>
      %52 = vector.extract_strided_slice %45 {offsets = [0, 0], sizes = [1, 128], strides = [1, 1]} : vector<3x128xf32> to vector<1x128xf32>
      %53 = vector.broadcast %52 : vector<1x128xf32> to vector<8x128xf32>
      %54 = arith.addf %51, %53 : vector<8x128xf32>
      %55 = vector.extract_strided_slice %45 {offsets = [1, 0], sizes = [1, 128], strides = [1, 1]} : vector<3x128xf32> to vector<1x128xf32>
      %56 = vector.extract_strided_slice %45 {offsets = [2, 0], sizes = [1, 128], strides = [1, 1]} : vector<3x128xf32> to vector<1x128xf32>
      %cst_33 = arith.constant dense<0.000000e+00> : vector<8xf32>
      %57 = vector.multi_reduction <add>, %54, %cst_33 [1] : vector<8x128xf32> to vector<8xf32>
      %58 = vector.shape_cast %57 : vector<8xf32> to vector<8x1xf32>
      %59 = arith.mulf %54, %54 : vector<8x128xf32>
      %cst_34 = arith.constant dense<0.000000e+00> : vector<8xf32>
      %60 = vector.multi_reduction <add>, %59, %cst_34 [1] : vector<8x128xf32> to vector<8xf32>
      %61 = vector.shape_cast %60 : vector<8xf32> to vector<8x1xf32>
      %cst_35 = arith.constant 7.812500e-03 : f32
      %62 = vector.broadcast %cst_35 : f32 to vector<8x1xf32>
      %63 = arith.mulf %58, %62 : vector<8x1xf32>
      %cst_36 = arith.constant 7.812500e-03 : f32
      %64 = vector.broadcast %cst_36 : f32 to vector<8x1xf32>
      %65 = arith.mulf %61, %64 : vector<8x1xf32>
      %66 = arith.mulf %63, %63 : vector<8x1xf32>
      %67 = arith.subf %65, %66 : vector<8x1xf32>
      %68 = vector.broadcast %63 : vector<8x1xf32> to vector<8x128xf32>
      %69 = arith.subf %54, %68 : vector<8x128xf32>
      %cst_37 = arith.constant 9.99999974E-6 : f32
      %70 = vector.broadcast %cst_37 : f32 to vector<8x1xf32>
      %71 = arith.addf %67, %70 : vector<8x1xf32>
      %72 = math.rsqrt %71 : vector<8x1xf32>
      %73 = vector.broadcast %72 : vector<8x1xf32> to vector<8x128xf32>
      %74 = arith.mulf %69, %73 : vector<8x128xf32>
      %75 = vector.broadcast %55 : vector<1x128xf32> to vector<8x128xf32>
      %76 = arith.mulf %74, %75 : vector<8x128xf32>
      %77 = vector.broadcast %56 : vector<1x128xf32> to vector<8x128xf32>
      %78 = arith.addf %76, %77 : vector<8x128xf32>
      %cst_38 = arith.constant 0.000000e+00 : f32
      %79 = vector.broadcast %cst_38 : f32 to vector<8x128xf32>
      %80 = arith.maximumf %78, %79 : vector<8x128xf32>
      %c0_39 = arith.constant 0 : index
      %c0_40 = arith.constant 0 : index
      %c0_41 = arith.constant 0 : index
      %c0_42 = arith.constant 0 : index
      %81 = vector.load %arg7[%c0_39, %c0_40, %c0_41, %c0_42] : memref<1x4x128x256xbf16, #tpu.memory_space<vmem>>, vector<1x1x128x256xbf16>
      %82 = vector.shape_cast %81 : vector<1x1x128x256xbf16> to vector<128x256xbf16>
      %83 = arith.truncf %80 : vector<8x128xf32> to vector<8x128xbf16>
      %cst_43 = arith.constant dense<0.000000e+00> : vector<8x256xf32>
      %84 = tpu.matmul %83, %82, %cst_43 {dimension_numbers = #tpu.dot_dimension_numbers<[1], [0], [0], [1], [0, 0, 1, 1], [], []>} : vector<8x128xbf16>, vector<128x256xbf16>, vector<8x256xf32> -> vector<8x256xf32>
      %85 = arith.addf %43, %84 : vector<8x256xf32>
      %86 = vector.extract_strided_slice %47 {offsets = [0, 0], sizes = [1, 256], strides = [1, 1]} : vector<3x256xf32> to vector<1x256xf32>
      %87 = vector.broadcast %86 : vector<1x256xf32> to vector<8x256xf32>
      %88 = arith.addf %85, %87 : vector<8x256xf32>
      %89 = vector.extract_strided_slice %47 {offsets = [1, 0], sizes = [1, 256], strides = [1, 1]} : vector<3x256xf32> to vector<1x256xf32>
      %90 = vector.extract_strided_slice %47 {offsets = [2, 0], sizes = [1, 256], strides = [1, 1]} : vector<3x256xf32> to vector<1x256xf32>
      %cst_44 = arith.constant dense<0.000000e+00> : vector<8xf32>
      %91 = vector.multi_reduction <add>, %88, %cst_44 [1] : vector<8x256xf32> to vector<8xf32>
      %92 = vector.shape_cast %91 : vector<8xf32> to vector<8x1xf32>
      %93 = arith.mulf %88, %88 : vector<8x256xf32>
      %cst_45 = arith.constant dense<0.000000e+00> : vector<8xf32>
      %94 = vector.multi_reduction <add>, %93, %cst_45 [1] : vector<8x256xf32> to vector<8xf32>
      %95 = vector.shape_cast %94 : vector<8xf32> to vector<8x1xf32>
      %cst_46 = arith.constant 3.906250e-03 : f32
      %96 = vector.broadcast %cst_46 : f32 to vector<8x1xf32>
      %97 = arith.mulf %92, %96 : vector<8x1xf32>
      %cst_47 = arith.constant 3.906250e-03 : f32
      %98 = vector.broadcast %cst_47 : f32 to vector<8x1xf32>
      %99 = arith.mulf %95, %98 : vector<8x1xf32>
      %100 = arith.mulf %97, %97 : vector<8x1xf32>
      %101 = arith.subf %99, %100 : vector<8x1xf32>
      %102 = vector.broadcast %97 : vector<8x1xf32> to vector<8x256xf32>
      %103 = arith.subf %88, %102 : vector<8x256xf32>
      %cst_48 = arith.constant 9.99999974E-6 : f32
      %104 = vector.broadcast %cst_48 : f32 to vector<8x1xf32>
      %105 = arith.addf %101, %104 : vector<8x1xf32>
      %106 = math.rsqrt %105 : vector<8x1xf32>
      %107 = vector.broadcast %106 : vector<8x1xf32> to vector<8x256xf32>
      %108 = arith.mulf %103, %107 : vector<8x256xf32>
      %109 = vector.broadcast %89 : vector<1x256xf32> to vector<8x256xf32>
      %110 = arith.mulf %108, %109 : vector<8x256xf32>
      %111 = vector.broadcast %90 : vector<1x256xf32> to vector<8x256xf32>
      %112 = arith.addf %110, %111 : vector<8x256xf32>
      %cst_49 = arith.constant 0.000000e+00 : f32
      %113 = vector.broadcast %cst_49 : f32 to vector<8x256xf32>
      %114 = arith.maximumf %112, %113 : vector<8x256xf32>
      %c0_50 = arith.constant 0 : index
      %c0_51 = arith.constant 0 : index
      %c0_52 = arith.constant 0 : index
      %c0_53 = arith.constant 0 : index
      %115 = vector.load %arg9[%c0_50, %c0_51, %c0_52, %c0_53] : memref<1x4x256x256xbf16, #tpu.memory_space<vmem>>, vector<1x1x256x256xbf16>
      %116 = vector.shape_cast %115 : vector<1x1x256x256xbf16> to vector<256x256xbf16>
      %c0_54 = arith.constant 0 : index
      %c0_55 = arith.constant 0 : index
      %c0_56 = arith.constant 0 : index
      %c0_57 = arith.constant 0 : index
      %117 = vector.load %arg10[%c0_54, %c0_55, %c0_56, %c0_57] : memref<1x4x3x256xf32, #tpu.memory_space<vmem>>, vector<1x1x3x256xf32>
      %118 = vector.shape_cast %117 : vector<1x1x3x256xf32> to vector<3x256xf32>
      %119 = arith.truncf %114 : vector<8x256xf32> to vector<8x256xbf16>
      %cst_58 = arith.constant dense<0.000000e+00> : vector<8x256xf32>
      %120 = tpu.matmul %119, %116, %cst_58 {dimension_numbers = #tpu.dot_dimension_numbers<[1], [0], [0], [1], [0, 0, 1, 1], [], []>} : vector<8x256xbf16>, vector<256x256xbf16>, vector<8x256xf32> -> vector<8x256xf32>
      %121 = vector.extract_strided_slice %118 {offsets = [0, 0], sizes = [1, 256], strides = [1, 1]} : vector<3x256xf32> to vector<1x256xf32>
      %122 = vector.broadcast %121 : vector<1x256xf32> to vector<8x256xf32>
      %123 = arith.addf %120, %122 : vector<8x256xf32>
      %124 = vector.extract_strided_slice %118 {offsets = [1, 0], sizes = [1, 256], strides = [1, 1]} : vector<3x256xf32> to vector<1x256xf32>
      %125 = vector.extract_strided_slice %118 {offsets = [2, 0], sizes = [1, 256], strides = [1, 1]} : vector<3x256xf32> to vector<1x256xf32>
      %cst_59 = arith.constant dense<0.000000e+00> : vector<8xf32>
      %126 = vector.multi_reduction <add>, %123, %cst_59 [1] : vector<8x256xf32> to vector<8xf32>
      %127 = vector.shape_cast %126 : vector<8xf32> to vector<8x1xf32>
      %128 = arith.mulf %123, %123 : vector<8x256xf32>
      %cst_60 = arith.constant dense<0.000000e+00> : vector<8xf32>
      %129 = vector.multi_reduction <add>, %128, %cst_60 [1] : vector<8x256xf32> to vector<8xf32>
      %130 = vector.shape_cast %129 : vector<8xf32> to vector<8x1xf32>
      %cst_61 = arith.constant 3.906250e-03 : f32
      %131 = vector.broadcast %cst_61 : f32 to vector<8x1xf32>
      %132 = arith.mulf %127, %131 : vector<8x1xf32>
      %cst_62 = arith.constant 3.906250e-03 : f32
      %133 = vector.broadcast %cst_62 : f32 to vector<8x1xf32>
      %134 = arith.mulf %130, %133 : vector<8x1xf32>
      %135 = arith.mulf %132, %132 : vector<8x1xf32>
      %136 = arith.subf %134, %135 : vector<8x1xf32>
      %137 = vector.broadcast %132 : vector<8x1xf32> to vector<8x256xf32>
      %138 = arith.subf %123, %137 : vector<8x256xf32>
      %cst_63 = arith.constant 9.99999974E-6 : f32
      %139 = vector.broadcast %cst_63 : f32 to vector<8x1xf32>
      %140 = arith.addf %136, %139 : vector<8x1xf32>
      %141 = math.rsqrt %140 : vector<8x1xf32>
      %142 = vector.broadcast %141 : vector<8x1xf32> to vector<8x256xf32>
      %143 = arith.mulf %138, %142 : vector<8x256xf32>
      %144 = vector.broadcast %124 : vector<1x256xf32> to vector<8x256xf32>
      %145 = arith.mulf %143, %144 : vector<8x256xf32>
      %146 = vector.broadcast %125 : vector<1x256xf32> to vector<8x256xf32>
      %147 = arith.addf %145, %146 : vector<8x256xf32>
      %cst_64 = arith.constant 0.000000e+00 : f32
      %148 = vector.broadcast %cst_64 : f32 to vector<8x256xf32>
      %149 = arith.maximumf %147, %148 : vector<8x256xf32>
      %c0_65 = arith.constant 0 : index
      %c1 = arith.constant 1 : index
      %c0_66 = arith.constant 0 : index
      %c0_67 = arith.constant 0 : index
      %150 = vector.load %arg6[%c0_65, %c1, %c0_66, %c0_67] : memref<1x4x3x128xf32, #tpu.memory_space<vmem>>, vector<1x1x3x128xf32>
      %151 = vector.shape_cast %150 : vector<1x1x3x128xf32> to vector<3x128xf32>
      %c0_68 = arith.constant 0 : index
      %c1_69 = arith.constant 1 : index
      %c0_70 = arith.constant 0 : index
      %c0_71 = arith.constant 0 : index
      %152 = vector.load %arg8[%c0_68, %c1_69, %c0_70, %c0_71] : memref<1x4x3x256xf32, #tpu.memory_space<vmem>>, vector<1x1x3x256xf32>
      %153 = vector.shape_cast %152 : vector<1x1x3x256xf32> to vector<3x256xf32>
      %c0_72 = arith.constant 0 : index
      %c1_73 = arith.constant 1 : index
      %c0_74 = arith.constant 0 : index
      %c0_75 = arith.constant 0 : index
      %154 = vector.load %arg5[%c0_72, %c1_73, %c0_74, %c0_75] : memref<1x4x256x128xbf16, #tpu.memory_space<vmem>>, vector<1x1x256x128xbf16>
      %155 = vector.shape_cast %154 : vector<1x1x256x128xbf16> to vector<256x128xbf16>
      %156 = arith.truncf %149 : vector<8x256xf32> to vector<8x256xbf16>
      %cst_76 = arith.constant dense<0.000000e+00> : vector<8x128xf32>
      %157 = tpu.matmul %156, %155, %cst_76 {dimension_numbers = #tpu.dot_dimension_numbers<[1], [0], [0], [1], [0, 0, 1, 1], [], []>} : vector<8x256xbf16>, vector<256x128xbf16>, vector<8x128xf32> -> vector<8x128xf32>
      %158 = vector.extract_strided_slice %151 {offsets = [0, 0], sizes = [1, 128], strides = [1, 1]} : vector<3x128xf32> to vector<1x128xf32>
      %159 = vector.broadcast %158 : vector<1x128xf32> to vector<8x128xf32>
      %160 = arith.addf %157, %159 : vector<8x128xf32>
      %161 = vector.extract_strided_slice %151 {offsets = [1, 0], sizes = [1, 128], strides = [1, 1]} : vector<3x128xf32> to vector<1x128xf32>
      %162 = vector.extract_strided_slice %151 {offsets = [2, 0], sizes = [1, 128], strides = [1, 1]} : vector<3x128xf32> to vector<1x128xf32>
      %cst_77 = arith.constant dense<0.000000e+00> : vector<8xf32>
      %163 = vector.multi_reduction <add>, %160, %cst_77 [1] : vector<8x128xf32> to vector<8xf32>
      %164 = vector.shape_cast %163 : vector<8xf32> to vector<8x1xf32>
      %165 = arith.mulf %160, %160 : vector<8x128xf32>
      %cst_78 = arith.constant dense<0.000000e+00> : vector<8xf32>
      %166 = vector.multi_reduction <add>, %165, %cst_78 [1] : vector<8x128xf32> to vector<8xf32>
      %167 = vector.shape_cast %166 : vector<8xf32> to vector<8x1xf32>
      %cst_79 = arith.constant 7.812500e-03 : f32
      %168 = vector.broadcast %cst_79 : f32 to vector<8x1xf32>
      %169 = arith.mulf %164, %168 : vector<8x1xf32>
      %cst_80 = arith.constant 7.812500e-03 : f32
      %170 = vector.broadcast %cst_80 : f32 to vector<8x1xf32>
      %171 = arith.mulf %167, %170 : vector<8x1xf32>
      %172 = arith.mulf %169, %169 : vector<8x1xf32>
      %173 = arith.subf %171, %172 : vector<8x1xf32>
      %174 = vector.broadcast %169 : vector<8x1xf32> to vector<8x128xf32>
      %175 = arith.subf %160, %174 : vector<8x128xf32>
      %cst_81 = arith.constant 9.99999974E-6 : f32
      %176 = vector.broadcast %cst_81 : f32 to vector<8x1xf32>
      %177 = arith.addf %173, %176 : vector<8x1xf32>
      %178 = math.rsqrt %177 : vector<8x1xf32>
      %179 = vector.broadcast %178 : vector<8x1xf32> to vector<8x128xf32>
      %180 = arith.mulf %175, %179 : vector<8x128xf32>
      %181 = vector.broadcast %161 : vector<1x128xf32> to vector<8x128xf32>
      %182 = arith.mulf %180, %181 : vector<8x128xf32>
      %183 = vector.broadcast %162 : vector<1x128xf32> to vector<8x128xf32>
      %184 = arith.addf %182, %183 : vector<8x128xf32>
      %cst_82 = arith.constant 0.000000e+00 : f32
      %185 = vector.broadcast %cst_82 : f32 to vector<8x128xf32>
      %186 = arith.maximumf %184, %185 : vector<8x128xf32>
      %c0_83 = arith.constant 0 : index
      %c1_84 = arith.constant 1 : index
      %c0_85 = arith.constant 0 : index
      %c0_86 = arith.constant 0 : index
      %187 = vector.load %arg7[%c0_83, %c1_84, %c0_85, %c0_86] : memref<1x4x128x256xbf16, #tpu.memory_space<vmem>>, vector<1x1x128x256xbf16>
      %188 = vector.shape_cast %187 : vector<1x1x128x256xbf16> to vector<128x256xbf16>
      %189 = arith.truncf %186 : vector<8x128xf32> to vector<8x128xbf16>
      %cst_87 = arith.constant dense<0.000000e+00> : vector<8x256xf32>
      %190 = tpu.matmul %189, %188, %cst_87 {dimension_numbers = #tpu.dot_dimension_numbers<[1], [0], [0], [1], [0, 0, 1, 1], [], []>} : vector<8x128xbf16>, vector<128x256xbf16>, vector<8x256xf32> -> vector<8x256xf32>
      %191 = arith.addf %149, %190 : vector<8x256xf32>
      %192 = vector.extract_strided_slice %153 {offsets = [0, 0], sizes = [1, 256], strides = [1, 1]} : vector<3x256xf32> to vector<1x256xf32>
      %193 = vector.broadcast %192 : vector<1x256xf32> to vector<8x256xf32>
      %194 = arith.addf %191, %193 : vector<8x256xf32>
      %195 = vector.extract_strided_slice %153 {offsets = [1, 0], sizes = [1, 256], strides = [1, 1]} : vector<3x256xf32> to vector<1x256xf32>
      %196 = vector.extract_strided_slice %153 {offsets = [2, 0], sizes = [1, 256], strides = [1, 1]} : vector<3x256xf32> to vector<1x256xf32>
      %cst_88 = arith.constant dense<0.000000e+00> : vector<8xf32>
      %197 = vector.multi_reduction <add>, %194, %cst_88 [1] : vector<8x256xf32> to vector<8xf32>
      %198 = vector.shape_cast %197 : vector<8xf32> to vector<8x1xf32>
      %199 = arith.mulf %194, %194 : vector<8x256xf32>
      %cst_89 = arith.constant dense<0.000000e+00> : vector<8xf32>
      %200 = vector.multi_reduction <add>, %199, %cst_89 [1] : vector<8x256xf32> to vector<8xf32>
      %201 = vector.shape_cast %200 : vector<8xf32> to vector<8x1xf32>
      %cst_90 = arith.constant 3.906250e-03 : f32
      %202 = vector.broadcast %cst_90 : f32 to vector<8x1xf32>
      %203 = arith.mulf %198, %202 : vector<8x1xf32>
      %cst_91 = arith.constant 3.906250e-03 : f32
      %204 = vector.broadcast %cst_91 : f32 to vector<8x1xf32>
      %205 = arith.mulf %201, %204 : vector<8x1xf32>
      %206 = arith.mulf %203, %203 : vector<8x1xf32>
      %207 = arith.subf %205, %206 : vector<8x1xf32>
      %208 = vector.broadcast %203 : vector<8x1xf32> to vector<8x256xf32>
      %209 = arith.subf %194, %208 : vector<8x256xf32>
      %cst_92 = arith.constant 9.99999974E-6 : f32
      %210 = vector.broadcast %cst_92 : f32 to vector<8x1xf32>
      %211 = arith.addf %207, %210 : vector<8x1xf32>
      %212 = math.rsqrt %211 : vector<8x1xf32>
      %213 = vector.broadcast %212 : vector<8x1xf32> to vector<8x256xf32>
      %214 = arith.mulf %209, %213 : vector<8x256xf32>
      %215 = vector.broadcast %195 : vector<1x256xf32> to vector<8x256xf32>
      %216 = arith.mulf %214, %215 : vector<8x256xf32>
      %217 = vector.broadcast %196 : vector<1x256xf32> to vector<8x256xf32>
      %218 = arith.addf %216, %217 : vector<8x256xf32>
      %cst_93 = arith.constant 0.000000e+00 : f32
      %219 = vector.broadcast %cst_93 : f32 to vector<8x256xf32>
      %220 = arith.maximumf %218, %219 : vector<8x256xf32>
      %221 = arith.addf %220, %43 : vector<8x256xf32>
      %c0_94 = arith.constant 0 : index
      %c1_95 = arith.constant 1 : index
      %c0_96 = arith.constant 0 : index
      %c0_97 = arith.constant 0 : index
      %222 = vector.load %arg9[%c0_94, %c1_95, %c0_96, %c0_97] : memref<1x4x256x256xbf16, #tpu.memory_space<vmem>>, vector<1x1x256x256xbf16>
      %223 = vector.shape_cast %222 : vector<1x1x256x256xbf16> to vector<256x256xbf16>
      %c0_98 = arith.constant 0 : index
      %c1_99 = arith.constant 1 : index
      %c0_100 = arith.constant 0 : index
      %c0_101 = arith.constant 0 : index
      %224 = vector.load %arg10[%c0_98, %c1_99, %c0_100, %c0_101] : memref<1x4x3x256xf32, #tpu.memory_space<vmem>>, vector<1x1x3x256xf32>
      %225 = vector.shape_cast %224 : vector<1x1x3x256xf32> to vector<3x256xf32>
      %226 = arith.truncf %221 : vector<8x256xf32> to vector<8x256xbf16>
      %cst_102 = arith.constant dense<0.000000e+00> : vector<8x256xf32>
      %227 = tpu.matmul %226, %223, %cst_102 {dimension_numbers = #tpu.dot_dimension_numbers<[1], [0], [0], [1], [0, 0, 1, 1], [], []>} : vector<8x256xbf16>, vector<256x256xbf16>, vector<8x256xf32> -> vector<8x256xf32>
      %228 = vector.extract_strided_slice %225 {offsets = [0, 0], sizes = [1, 256], strides = [1, 1]} : vector<3x256xf32> to vector<1x256xf32>
      %229 = vector.broadcast %228 : vector<1x256xf32> to vector<8x256xf32>
      %230 = arith.addf %227, %229 : vector<8x256xf32>
      %231 = vector.extract_strided_slice %225 {offsets = [1, 0], sizes = [1, 256], strides = [1, 1]} : vector<3x256xf32> to vector<1x256xf32>
      %232 = vector.extract_strided_slice %225 {offsets = [2, 0], sizes = [1, 256], strides = [1, 1]} : vector<3x256xf32> to vector<1x256xf32>
      %cst_103 = arith.constant dense<0.000000e+00> : vector<8xf32>
      %233 = vector.multi_reduction <add>, %230, %cst_103 [1] : vector<8x256xf32> to vector<8xf32>
      %234 = vector.shape_cast %233 : vector<8xf32> to vector<8x1xf32>
      %235 = arith.mulf %230, %230 : vector<8x256xf32>
      %cst_104 = arith.constant dense<0.000000e+00> : vector<8xf32>
      %236 = vector.multi_reduction <add>, %235, %cst_104 [1] : vector<8x256xf32> to vector<8xf32>
      %237 = vector.shape_cast %236 : vector<8xf32> to vector<8x1xf32>
      %cst_105 = arith.constant 3.906250e-03 : f32
      %238 = vector.broadcast %cst_105 : f32 to vector<8x1xf32>
      %239 = arith.mulf %234, %238 : vector<8x1xf32>
      %cst_106 = arith.constant 3.906250e-03 : f32
      %240 = vector.broadcast %cst_106 : f32 to vector<8x1xf32>
      %241 = arith.mulf %237, %240 : vector<8x1xf32>
      %242 = arith.mulf %239, %239 : vector<8x1xf32>
      %243 = arith.subf %241, %242 : vector<8x1xf32>
      %244 = vector.broadcast %239 : vector<8x1xf32> to vector<8x256xf32>
      %245 = arith.subf %230, %244 : vector<8x256xf32>
      %cst_107 = arith.constant 9.99999974E-6 : f32
      %246 = vector.broadcast %cst_107 : f32 to vector<8x1xf32>
      %247 = arith.addf %243, %246 : vector<8x1xf32>
      %248 = math.rsqrt %247 : vector<8x1xf32>
      %249 = vector.broadcast %248 : vector<8x1xf32> to vector<8x256xf32>
      %250 = arith.mulf %245, %249 : vector<8x256xf32>
      %251 = vector.broadcast %231 : vector<1x256xf32> to vector<8x256xf32>
      %252 = arith.mulf %250, %251 : vector<8x256xf32>
      %253 = vector.broadcast %232 : vector<1x256xf32> to vector<8x256xf32>
      %254 = arith.addf %252, %253 : vector<8x256xf32>
      %cst_108 = arith.constant 0.000000e+00 : f32
      %255 = vector.broadcast %cst_108 : f32 to vector<8x256xf32>
      %256 = arith.maximumf %254, %255 : vector<8x256xf32>
      %c0_109 = arith.constant 0 : index
      %c2 = arith.constant 2 : index
      %c0_110 = arith.constant 0 : index
      %c0_111 = arith.constant 0 : index
      %257 = vector.load %arg6[%c0_109, %c2, %c0_110, %c0_111] : memref<1x4x3x128xf32, #tpu.memory_space<vmem>>, vector<1x1x3x128xf32>
      %258 = vector.shape_cast %257 : vector<1x1x3x128xf32> to vector<3x128xf32>
      %c0_112 = arith.constant 0 : index
      %c2_113 = arith.constant 2 : index
      %c0_114 = arith.constant 0 : index
      %c0_115 = arith.constant 0 : index
      %259 = vector.load %arg8[%c0_112, %c2_113, %c0_114, %c0_115] : memref<1x4x3x256xf32, #tpu.memory_space<vmem>>, vector<1x1x3x256xf32>
      %260 = vector.shape_cast %259 : vector<1x1x3x256xf32> to vector<3x256xf32>
      %c0_116 = arith.constant 0 : index
      %c2_117 = arith.constant 2 : index
      %c0_118 = arith.constant 0 : index
      %c0_119 = arith.constant 0 : index
      %261 = vector.load %arg5[%c0_116, %c2_117, %c0_118, %c0_119] : memref<1x4x256x128xbf16, #tpu.memory_space<vmem>>, vector<1x1x256x128xbf16>
      %262 = vector.shape_cast %261 : vector<1x1x256x128xbf16> to vector<256x128xbf16>
      %263 = arith.truncf %256 : vector<8x256xf32> to vector<8x256xbf16>
      %cst_120 = arith.constant dense<0.000000e+00> : vector<8x128xf32>
      %264 = tpu.matmul %263, %262, %cst_120 {dimension_numbers = #tpu.dot_dimension_numbers<[1], [0], [0], [1], [0, 0, 1, 1], [], []>} : vector<8x256xbf16>, vector<256x128xbf16>, vector<8x128xf32> -> vector<8x128xf32>
      %265 = vector.extract_strided_slice %258 {offsets = [0, 0], sizes = [1, 128], strides = [1, 1]} : vector<3x128xf32> to vector<1x128xf32>
      %266 = vector.broadcast %265 : vector<1x128xf32> to vector<8x128xf32>
      %267 = arith.addf %264, %266 : vector<8x128xf32>
      %268 = vector.extract_strided_slice %258 {offsets = [1, 0], sizes = [1, 128], strides = [1, 1]} : vector<3x128xf32> to vector<1x128xf32>
      %269 = vector.extract_strided_slice %258 {offsets = [2, 0], sizes = [1, 128], strides = [1, 1]} : vector<3x128xf32> to vector<1x128xf32>
      %cst_121 = arith.constant dense<0.000000e+00> : vector<8xf32>
      %270 = vector.multi_reduction <add>, %267, %cst_121 [1] : vector<8x128xf32> to vector<8xf32>
      %271 = vector.shape_cast %270 : vector<8xf32> to vector<8x1xf32>
      %272 = arith.mulf %267, %267 : vector<8x128xf32>
      %cst_122 = arith.constant dense<0.000000e+00> : vector<8xf32>
      %273 = vector.multi_reduction <add>, %272, %cst_122 [1] : vector<8x128xf32> to vector<8xf32>
      %274 = vector.shape_cast %273 : vector<8xf32> to vector<8x1xf32>
      %cst_123 = arith.constant 7.812500e-03 : f32
      %275 = vector.broadcast %cst_123 : f32 to vector<8x1xf32>
      %276 = arith.mulf %271, %275 : vector<8x1xf32>
      %cst_124 = arith.constant 7.812500e-03 : f32
      %277 = vector.broadcast %cst_124 : f32 to vector<8x1xf32>
      %278 = arith.mulf %274, %277 : vector<8x1xf32>
      %279 = arith.mulf %276, %276 : vector<8x1xf32>
      %280 = arith.subf %278, %279 : vector<8x1xf32>
      %281 = vector.broadcast %276 : vector<8x1xf32> to vector<8x128xf32>
      %282 = arith.subf %267, %281 : vector<8x128xf32>
      %cst_125 = arith.constant 9.99999974E-6 : f32
      %283 = vector.broadcast %cst_125 : f32 to vector<8x1xf32>
      %284 = arith.addf %280, %283 : vector<8x1xf32>
      %285 = math.rsqrt %284 : vector<8x1xf32>
      %286 = vector.broadcast %285 : vector<8x1xf32> to vector<8x128xf32>
      %287 = arith.mulf %282, %286 : vector<8x128xf32>
      %288 = vector.broadcast %268 : vector<1x128xf32> to vector<8x128xf32>
      %289 = arith.mulf %287, %288 : vector<8x128xf32>
      %290 = vector.broadcast %269 : vector<1x128xf32> to vector<8x128xf32>
      %291 = arith.addf %289, %290 : vector<8x128xf32>
      %cst_126 = arith.constant 0.000000e+00 : f32
      %292 = vector.broadcast %cst_126 : f32 to vector<8x128xf32>
      %293 = arith.maximumf %291, %292 : vector<8x128xf32>
      %c0_127 = arith.constant 0 : index
      %c2_128 = arith.constant 2 : index
      %c0_129 = arith.constant 0 : index
      %c0_130 = arith.constant 0 : index
      %294 = vector.load %arg7[%c0_127, %c2_128, %c0_129, %c0_130] : memref<1x4x128x256xbf16, #tpu.memory_space<vmem>>, vector<1x1x128x256xbf16>
      %295 = vector.shape_cast %294 : vector<1x1x128x256xbf16> to vector<128x256xbf16>
      %296 = arith.truncf %293 : vector<8x128xf32> to vector<8x128xbf16>
      %cst_131 = arith.constant dense<0.000000e+00> : vector<8x256xf32>
      %297 = tpu.matmul %296, %295, %cst_131 {dimension_numbers = #tpu.dot_dimension_numbers<[1], [0], [0], [1], [0, 0, 1, 1], [], []>} : vector<8x128xbf16>, vector<128x256xbf16>, vector<8x256xf32> -> vector<8x256xf32>
      %298 = arith.addf %256, %297 : vector<8x256xf32>
      %299 = vector.extract_strided_slice %260 {offsets = [0, 0], sizes = [1, 256], strides = [1, 1]} : vector<3x256xf32> to vector<1x256xf32>
      %300 = vector.broadcast %299 : vector<1x256xf32> to vector<8x256xf32>
      %301 = arith.addf %298, %300 : vector<8x256xf32>
      %302 = vector.extract_strided_slice %260 {offsets = [1, 0], sizes = [1, 256], strides = [1, 1]} : vector<3x256xf32> to vector<1x256xf32>
      %303 = vector.extract_strided_slice %260 {offsets = [2, 0], sizes = [1, 256], strides = [1, 1]} : vector<3x256xf32> to vector<1x256xf32>
      %cst_132 = arith.constant dense<0.000000e+00> : vector<8xf32>
      %304 = vector.multi_reduction <add>, %301, %cst_132 [1] : vector<8x256xf32> to vector<8xf32>
      %305 = vector.shape_cast %304 : vector<8xf32> to vector<8x1xf32>
      %306 = arith.mulf %301, %301 : vector<8x256xf32>
      %cst_133 = arith.constant dense<0.000000e+00> : vector<8xf32>
      %307 = vector.multi_reduction <add>, %306, %cst_133 [1] : vector<8x256xf32> to vector<8xf32>
      %308 = vector.shape_cast %307 : vector<8xf32> to vector<8x1xf32>
      %cst_134 = arith.constant 3.906250e-03 : f32
      %309 = vector.broadcast %cst_134 : f32 to vector<8x1xf32>
      %310 = arith.mulf %305, %309 : vector<8x1xf32>
      %cst_135 = arith.constant 3.906250e-03 : f32
      %311 = vector.broadcast %cst_135 : f32 to vector<8x1xf32>
      %312 = arith.mulf %308, %311 : vector<8x1xf32>
      %313 = arith.mulf %310, %310 : vector<8x1xf32>
      %314 = arith.subf %312, %313 : vector<8x1xf32>
      %315 = vector.broadcast %310 : vector<8x1xf32> to vector<8x256xf32>
      %316 = arith.subf %301, %315 : vector<8x256xf32>
      %cst_136 = arith.constant 9.99999974E-6 : f32
      %317 = vector.broadcast %cst_136 : f32 to vector<8x1xf32>
      %318 = arith.addf %314, %317 : vector<8x1xf32>
      %319 = math.rsqrt %318 : vector<8x1xf32>
      %320 = vector.broadcast %319 : vector<8x1xf32> to vector<8x256xf32>
      %321 = arith.mulf %316, %320 : vector<8x256xf32>
      %322 = vector.broadcast %302 : vector<1x256xf32> to vector<8x256xf32>
      %323 = arith.mulf %321, %322 : vector<8x256xf32>
      %324 = vector.broadcast %303 : vector<1x256xf32> to vector<8x256xf32>
      %325 = arith.addf %323, %324 : vector<8x256xf32>
      %cst_137 = arith.constant 0.000000e+00 : f32
      %326 = vector.broadcast %cst_137 : f32 to vector<8x256xf32>
      %327 = arith.maximumf %325, %326 : vector<8x256xf32>
      %c0_138 = arith.constant 0 : index
      %c2_139 = arith.constant 2 : index
      %c0_140 = arith.constant 0 : index
      %c0_141 = arith.constant 0 : index
      %328 = vector.load %arg9[%c0_138, %c2_139, %c0_140, %c0_141] : memref<1x4x256x256xbf16, #tpu.memory_space<vmem>>, vector<1x1x256x256xbf16>
      %329 = vector.shape_cast %328 : vector<1x1x256x256xbf16> to vector<256x256xbf16>
      %c0_142 = arith.constant 0 : index
      %c2_143 = arith.constant 2 : index
      %c0_144 = arith.constant 0 : index
      %c0_145 = arith.constant 0 : index
      %330 = vector.load %arg10[%c0_142, %c2_143, %c0_144, %c0_145] : memref<1x4x3x256xf32, #tpu.memory_space<vmem>>, vector<1x1x3x256xf32>
      %331 = vector.shape_cast %330 : vector<1x1x3x256xf32> to vector<3x256xf32>
      %332 = arith.truncf %327 : vector<8x256xf32> to vector<8x256xbf16>
      %cst_146 = arith.constant dense<0.000000e+00> : vector<8x256xf32>
      %333 = tpu.matmul %332, %329, %cst_146 {dimension_numbers = #tpu.dot_dimension_numbers<[1], [0], [0], [1], [0, 0, 1, 1], [], []>} : vector<8x256xbf16>, vector<256x256xbf16>, vector<8x256xf32> -> vector<8x256xf32>
      %334 = vector.extract_strided_slice %331 {offsets = [0, 0], sizes = [1, 256], strides = [1, 1]} : vector<3x256xf32> to vector<1x256xf32>
      %335 = vector.broadcast %334 : vector<1x256xf32> to vector<8x256xf32>
      %336 = arith.addf %333, %335 : vector<8x256xf32>
      %337 = vector.extract_strided_slice %331 {offsets = [1, 0], sizes = [1, 256], strides = [1, 1]} : vector<3x256xf32> to vector<1x256xf32>
      %338 = vector.extract_strided_slice %331 {offsets = [2, 0], sizes = [1, 256], strides = [1, 1]} : vector<3x256xf32> to vector<1x256xf32>
      %cst_147 = arith.constant dense<0.000000e+00> : vector<8xf32>
      %339 = vector.multi_reduction <add>, %336, %cst_147 [1] : vector<8x256xf32> to vector<8xf32>
      %340 = vector.shape_cast %339 : vector<8xf32> to vector<8x1xf32>
      %341 = arith.mulf %336, %336 : vector<8x256xf32>
      %cst_148 = arith.constant dense<0.000000e+00> : vector<8xf32>
      %342 = vector.multi_reduction <add>, %341, %cst_148 [1] : vector<8x256xf32> to vector<8xf32>
      %343 = vector.shape_cast %342 : vector<8xf32> to vector<8x1xf32>
      %cst_149 = arith.constant 3.906250e-03 : f32
      %344 = vector.broadcast %cst_149 : f32 to vector<8x1xf32>
      %345 = arith.mulf %340, %344 : vector<8x1xf32>
      %cst_150 = arith.constant 3.906250e-03 : f32
      %346 = vector.broadcast %cst_150 : f32 to vector<8x1xf32>
      %347 = arith.mulf %343, %346 : vector<8x1xf32>
      %348 = arith.mulf %345, %345 : vector<8x1xf32>
      %349 = arith.subf %347, %348 : vector<8x1xf32>
      %350 = vector.broadcast %345 : vector<8x1xf32> to vector<8x256xf32>
      %351 = arith.subf %336, %350 : vector<8x256xf32>
      %cst_151 = arith.constant 9.99999974E-6 : f32
      %352 = vector.broadcast %cst_151 : f32 to vector<8x1xf32>
      %353 = arith.addf %349, %352 : vector<8x1xf32>
      %354 = math.rsqrt %353 : vector<8x1xf32>
      %355 = vector.broadcast %354 : vector<8x1xf32> to vector<8x256xf32>
      %356 = arith.mulf %351, %355 : vector<8x256xf32>
      %357 = vector.broadcast %337 : vector<1x256xf32> to vector<8x256xf32>
      %358 = arith.mulf %356, %357 : vector<8x256xf32>
      %359 = vector.broadcast %338 : vector<1x256xf32> to vector<8x256xf32>
      %360 = arith.addf %358, %359 : vector<8x256xf32>
      %cst_152 = arith.constant 0.000000e+00 : f32
      %361 = vector.broadcast %cst_152 : f32 to vector<8x256xf32>
      %362 = arith.maximumf %360, %361 : vector<8x256xf32>
      %c0_153 = arith.constant 0 : index
      %c3 = arith.constant 3 : index
      %c0_154 = arith.constant 0 : index
      %c0_155 = arith.constant 0 : index
      %363 = vector.load %arg6[%c0_153, %c3, %c0_154, %c0_155] : memref<1x4x3x128xf32, #tpu.memory_space<vmem>>, vector<1x1x3x128xf32>
      %364 = vector.shape_cast %363 : vector<1x1x3x128xf32> to vector<3x128xf32>
      %c0_156 = arith.constant 0 : index
      %c3_157 = arith.constant 3 : index
      %c0_158 = arith.constant 0 : index
      %c0_159 = arith.constant 0 : index
      %365 = vector.load %arg8[%c0_156, %c3_157, %c0_158, %c0_159] : memref<1x4x3x256xf32, #tpu.memory_space<vmem>>, vector<1x1x3x256xf32>
      %366 = vector.shape_cast %365 : vector<1x1x3x256xf32> to vector<3x256xf32>
      %c0_160 = arith.constant 0 : index
      %c3_161 = arith.constant 3 : index
      %c0_162 = arith.constant 0 : index
      %c0_163 = arith.constant 0 : index
      %367 = vector.load %arg5[%c0_160, %c3_161, %c0_162, %c0_163] : memref<1x4x256x128xbf16, #tpu.memory_space<vmem>>, vector<1x1x256x128xbf16>
      %368 = vector.shape_cast %367 : vector<1x1x256x128xbf16> to vector<256x128xbf16>
      %369 = arith.truncf %362 : vector<8x256xf32> to vector<8x256xbf16>
      %cst_164 = arith.constant dense<0.000000e+00> : vector<8x128xf32>
      %370 = tpu.matmul %369, %368, %cst_164 {dimension_numbers = #tpu.dot_dimension_numbers<[1], [0], [0], [1], [0, 0, 1, 1], [], []>} : vector<8x256xbf16>, vector<256x128xbf16>, vector<8x128xf32> -> vector<8x128xf32>
      %371 = vector.extract_strided_slice %364 {offsets = [0, 0], sizes = [1, 128], strides = [1, 1]} : vector<3x128xf32> to vector<1x128xf32>
      %372 = vector.broadcast %371 : vector<1x128xf32> to vector<8x128xf32>
      %373 = arith.addf %370, %372 : vector<8x128xf32>
      %374 = vector.extract_strided_slice %364 {offsets = [1, 0], sizes = [1, 128], strides = [1, 1]} : vector<3x128xf32> to vector<1x128xf32>
      %375 = vector.extract_strided_slice %364 {offsets = [2, 0], sizes = [1, 128], strides = [1, 1]} : vector<3x128xf32> to vector<1x128xf32>
      %cst_165 = arith.constant dense<0.000000e+00> : vector<8xf32>
      %376 = vector.multi_reduction <add>, %373, %cst_165 [1] : vector<8x128xf32> to vector<8xf32>
      %377 = vector.shape_cast %376 : vector<8xf32> to vector<8x1xf32>
      %378 = arith.mulf %373, %373 : vector<8x128xf32>
      %cst_166 = arith.constant dense<0.000000e+00> : vector<8xf32>
      %379 = vector.multi_reduction <add>, %378, %cst_166 [1] : vector<8x128xf32> to vector<8xf32>
      %380 = vector.shape_cast %379 : vector<8xf32> to vector<8x1xf32>
      %cst_167 = arith.constant 7.812500e-03 : f32
      %381 = vector.broadcast %cst_167 : f32 to vector<8x1xf32>
      %382 = arith.mulf %377, %381 : vector<8x1xf32>
      %cst_168 = arith.constant 7.812500e-03 : f32
      %383 = vector.broadcast %cst_168 : f32 to vector<8x1xf32>
      %384 = arith.mulf %380, %383 : vector<8x1xf32>
      %385 = arith.mulf %382, %382 : vector<8x1xf32>
      %386 = arith.subf %384, %385 : vector<8x1xf32>
      %387 = vector.broadcast %382 : vector<8x1xf32> to vector<8x128xf32>
      %388 = arith.subf %373, %387 : vector<8x128xf32>
      %cst_169 = arith.constant 9.99999974E-6 : f32
      %389 = vector.broadcast %cst_169 : f32 to vector<8x1xf32>
      %390 = arith.addf %386, %389 : vector<8x1xf32>
      %391 = math.rsqrt %390 : vector<8x1xf32>
      %392 = vector.broadcast %391 : vector<8x1xf32> to vector<8x128xf32>
      %393 = arith.mulf %388, %392 : vector<8x128xf32>
      %394 = vector.broadcast %374 : vector<1x128xf32> to vector<8x128xf32>
      %395 = arith.mulf %393, %394 : vector<8x128xf32>
      %396 = vector.broadcast %375 : vector<1x128xf32> to vector<8x128xf32>
      %397 = arith.addf %395, %396 : vector<8x128xf32>
      %cst_170 = arith.constant 0.000000e+00 : f32
      %398 = vector.broadcast %cst_170 : f32 to vector<8x128xf32>
      %399 = arith.maximumf %397, %398 : vector<8x128xf32>
      %c0_171 = arith.constant 0 : index
      %c3_172 = arith.constant 3 : index
      %c0_173 = arith.constant 0 : index
      %c0_174 = arith.constant 0 : index
      %400 = vector.load %arg7[%c0_171, %c3_172, %c0_173, %c0_174] : memref<1x4x128x256xbf16, #tpu.memory_space<vmem>>, vector<1x1x128x256xbf16>
      %401 = vector.shape_cast %400 : vector<1x1x128x256xbf16> to vector<128x256xbf16>
      %402 = arith.truncf %399 : vector<8x128xf32> to vector<8x128xbf16>
      %cst_175 = arith.constant dense<0.000000e+00> : vector<8x256xf32>
      %403 = tpu.matmul %402, %401, %cst_175 {dimension_numbers = #tpu.dot_dimension_numbers<[1], [0], [0], [1], [0, 0, 1, 1], [], []>} : vector<8x128xbf16>, vector<128x256xbf16>, vector<8x256xf32> -> vector<8x256xf32>
      %404 = arith.addf %362, %403 : vector<8x256xf32>
      %405 = vector.extract_strided_slice %366 {offsets = [0, 0], sizes = [1, 256], strides = [1, 1]} : vector<3x256xf32> to vector<1x256xf32>
      %406 = vector.broadcast %405 : vector<1x256xf32> to vector<8x256xf32>
      %407 = arith.addf %404, %406 : vector<8x256xf32>
      %408 = vector.extract_strided_slice %366 {offsets = [1, 0], sizes = [1, 256], strides = [1, 1]} : vector<3x256xf32> to vector<1x256xf32>
      %409 = vector.extract_strided_slice %366 {offsets = [2, 0], sizes = [1, 256], strides = [1, 1]} : vector<3x256xf32> to vector<1x256xf32>
      %cst_176 = arith.constant dense<0.000000e+00> : vector<8xf32>
      %410 = vector.multi_reduction <add>, %407, %cst_176 [1] : vector<8x256xf32> to vector<8xf32>
      %411 = vector.shape_cast %410 : vector<8xf32> to vector<8x1xf32>
      %412 = arith.mulf %407, %407 : vector<8x256xf32>
      %cst_177 = arith.constant dense<0.000000e+00> : vector<8xf32>
      %413 = vector.multi_reduction <add>, %412, %cst_177 [1] : vector<8x256xf32> to vector<8xf32>
      %414 = vector.shape_cast %413 : vector<8xf32> to vector<8x1xf32>
      %cst_178 = arith.constant 3.906250e-03 : f32
      %415 = vector.broadcast %cst_178 : f32 to vector<8x1xf32>
      %416 = arith.mulf %411, %415 : vector<8x1xf32>
      %cst_179 = arith.constant 3.906250e-03 : f32
      %417 = vector.broadcast %cst_179 : f32 to vector<8x1xf32>
      %418 = arith.mulf %414, %417 : vector<8x1xf32>
      %419 = arith.mulf %416, %416 : vector<8x1xf32>
      %420 = arith.subf %418, %419 : vector<8x1xf32>
      %421 = vector.broadcast %416 : vector<8x1xf32> to vector<8x256xf32>
      %422 = arith.subf %407, %421 : vector<8x256xf32>
      %cst_180 = arith.constant 9.99999974E-6 : f32
      %423 = vector.broadcast %cst_180 : f32 to vector<8x1xf32>
      %424 = arith.addf %420, %423 : vector<8x1xf32>
      %425 = math.rsqrt %424 : vector<8x1xf32>
      %426 = vector.broadcast %425 : vector<8x1xf32> to vector<8x256xf32>
      %427 = arith.mulf %422, %426 : vector<8x256xf32>
      %428 = vector.broadcast %408 : vector<1x256xf32> to vector<8x256xf32>
      %429 = arith.mulf %427, %428 : vector<8x256xf32>
      %430 = vector.broadcast %409 : vector<1x256xf32> to vector<8x256xf32>
      %431 = arith.addf %429, %430 : vector<8x256xf32>
      %cst_181 = arith.constant 0.000000e+00 : f32
      %432 = vector.broadcast %cst_181 : f32 to vector<8x256xf32>
      %433 = arith.maximumf %431, %432 : vector<8x256xf32>
      %434 = arith.addf %433, %256 : vector<8x256xf32>
      %435 = arith.addf %434, %43 : vector<8x256xf32>
      %c0_182 = arith.constant 0 : index
      %c3_183 = arith.constant 3 : index
      %c0_184 = arith.constant 0 : index
      %c0_185 = arith.constant 0 : index
      %436 = vector.load %arg9[%c0_182, %c3_183, %c0_184, %c0_185] : memref<1x4x256x256xbf16, #tpu.memory_space<vmem>>, vector<1x1x256x256xbf16>
      %437 = vector.shape_cast %436 : vector<1x1x256x256xbf16> to vector<256x256xbf16>
      %c0_186 = arith.constant 0 : index
      %c3_187 = arith.constant 3 : index
      %c0_188 = arith.constant 0 : index
      %c0_189 = arith.constant 0 : index
      %438 = vector.load %arg10[%c0_186, %c3_187, %c0_188, %c0_189] : memref<1x4x3x256xf32, #tpu.memory_space<vmem>>, vector<1x1x3x256xf32>
      %439 = vector.shape_cast %438 : vector<1x1x3x256xf32> to vector<3x256xf32>
      %440 = arith.truncf %435 : vector<8x256xf32> to vector<8x256xbf16>
      %cst_190 = arith.constant dense<0.000000e+00> : vector<8x256xf32>
      %441 = tpu.matmul %440, %437, %cst_190 {dimension_numbers = #tpu.dot_dimension_numbers<[1], [0], [0], [1], [0, 0, 1, 1], [], []>} : vector<8x256xbf16>, vector<256x256xbf16>, vector<8x256xf32> -> vector<8x256xf32>
      %442 = vector.extract_strided_slice %439 {offsets = [0, 0], sizes = [1, 256], strides = [1, 1]} : vector<3x256xf32> to vector<1x256xf32>
      %443 = vector.broadcast %442 : vector<1x256xf32> to vector<8x256xf32>
      %444 = arith.addf %441, %443 : vector<8x256xf32>
      %445 = vector.extract_strided_slice %439 {offsets = [1, 0], sizes = [1, 256], strides = [1, 1]} : vector<3x256xf32> to vector<1x256xf32>
      %446 = vector.extract_strided_slice %439 {offsets = [2, 0], sizes = [1, 256], strides = [1, 1]} : vector<3x256xf32> to vector<1x256xf32>
      %cst_191 = arith.constant dense<0.000000e+00> : vector<8xf32>
      %447 = vector.multi_reduction <add>, %444, %cst_191 [1] : vector<8x256xf32> to vector<8xf32>
      %448 = vector.shape_cast %447 : vector<8xf32> to vector<8x1xf32>
      %449 = arith.mulf %444, %444 : vector<8x256xf32>
      %cst_192 = arith.constant dense<0.000000e+00> : vector<8xf32>
      %450 = vector.multi_reduction <add>, %449, %cst_192 [1] : vector<8x256xf32> to vector<8xf32>
      %451 = vector.shape_cast %450 : vector<8xf32> to vector<8x1xf32>
      %cst_193 = arith.constant 3.906250e-03 : f32
      %452 = vector.broadcast %cst_193 : f32 to vector<8x1xf32>
      %453 = arith.mulf %448, %452 : vector<8x1xf32>
      %cst_194 = arith.constant 3.906250e-03 : f32
      %454 = vector.broadcast %cst_194 : f32 to vector<8x1xf32>
      %455 = arith.mulf %451, %454 : vector<8x1xf32>
      %456 = arith.mulf %453, %453 : vector<8x1xf32>
      %457 = arith.subf %455, %456 : vector<8x1xf32>
      %458 = vector.broadcast %453 : vector<8x1xf32> to vector<8x256xf32>
      %459 = arith.subf %444, %458 : vector<8x256xf32>
      %cst_195 = arith.constant 9.99999974E-6 : f32
      %460 = vector.broadcast %cst_195 : f32 to vector<8x1xf32>
      %461 = arith.addf %457, %460 : vector<8x1xf32>
      %462 = math.rsqrt %461 : vector<8x1xf32>
      %463 = vector.broadcast %462 : vector<8x1xf32> to vector<8x256xf32>
      %464 = arith.mulf %459, %463 : vector<8x256xf32>
      %465 = vector.broadcast %445 : vector<1x256xf32> to vector<8x256xf32>
      %466 = arith.mulf %464, %465 : vector<8x256xf32>
      %467 = vector.broadcast %446 : vector<1x256xf32> to vector<8x256xf32>
      %468 = arith.addf %466, %467 : vector<8x256xf32>
      %cst_196 = arith.constant 0.000000e+00 : f32
      %469 = vector.broadcast %cst_196 : f32 to vector<8x256xf32>
      %470 = arith.maximumf %468, %469 : vector<8x256xf32>
      %c0_197 = arith.constant 0 : index
      %c0_198 = arith.constant 0 : index
      %471 = vector.load %arg15[%c0_197, %c0_198] : memref<8x256xf32, #tpu.memory_space<vmem>>, vector<8x256xf32>
      tpu.vector_store %arg15[%c0_197, %c0_198], %470 {strides = array<i32>} : memref<8x256xf32, #tpu.memory_space<vmem>>, vector<8x256xf32>,
      %c0_199 = arith.constant 0 : index
      %c0_200 = arith.constant 0 : index
      %472 = vector.load %arg16[%c0_199, %c0_200] : memref<8x256xf32, #tpu.memory_space<vmem>>, vector<8x256xf32>
      tpu.vector_store %arg16[%c0_199, %c0_200], %43 {strides = array<i32>} : memref<8x256xf32, #tpu.memory_space<vmem>>, vector<8x256xf32>,
    } else {
    }
    %c1_i32 = arith.constant 1 : i32
    %3 = arith.cmpi eq, %arg1, %c1_i32 : i32
    %4 = arith.extui %3 : i1 to i32
    %c0_i32_1 = arith.constant 0 : i32
    %5 = arith.cmpi ne, %4, %c0_i32_1 : i32
    scf.if %5 {
      %c0 = arith.constant 0 : index
      %c0_2 = arith.constant 0 : index
      %6 = vector.load %arg15[%c0, %c0_2] : memref<8x256xf32, #tpu.memory_space<vmem>>, vector<8x256xf32>
      %c0_3 = arith.constant 0 : index
      %c0_4 = arith.constant 0 : index
      %7 = vector.load %arg16[%c0_3, %c0_4] : memref<8x256xf32, #tpu.memory_space<vmem>>, vector<8x256xf32>
      %c0_5 = arith.constant 0 : index
      %c0_6 = arith.constant 0 : index
      %c0_7 = arith.constant 0 : index
      %c0_8 = arith.constant 0 : index
      %8 = vector.load %arg6[%c0_5, %c0_6, %c0_7, %c0_8] : memref<1x4x3x128xf32, #tpu.memory_space<vmem>>, vector<1x1x3x128xf32>
      %9 = vector.shape_cast %8 : vector<1x1x3x128xf32> to vector<3x128xf32>
      %c0_9 = arith.constant 0 : index
      %c0_10 = arith.constant 0 : index
      %c0_11 = arith.constant 0 : index
      %c0_12 = arith.constant 0 : index
      %10 = vector.load %arg8[%c0_9, %c0_10, %c0_11, %c0_12] : memref<1x4x3x256xf32, #tpu.memory_space<vmem>>, vector<1x1x3x256xf32>
      %11 = vector.shape_cast %10 : vector<1x1x3x256xf32> to vector<3x256xf32>
      %c0_13 = arith.constant 0 : index
      %c0_14 = arith.constant 0 : index
      %c0_15 = arith.constant 0 : index
      %c0_16 = arith.constant 0 : index
      %12 = vector.load %arg5[%c0_13, %c0_14, %c0_15, %c0_16] : memref<1x4x256x128xbf16, #tpu.memory_space<vmem>>, vector<1x1x256x128xbf16>
      %13 = vector.shape_cast %12 : vector<1x1x256x128xbf16> to vector<256x128xbf16>
      %14 = arith.truncf %6 : vector<8x256xf32> to vector<8x256xbf16>
      %cst = arith.constant dense<0.000000e+00> : vector<8x128xf32>
      %15 = tpu.matmul %14, %13, %cst {dimension_numbers = #tpu.dot_dimension_numbers<[1], [0], [0], [1], [0, 0, 1, 1], [], []>} : vector<8x256xbf16>, vector<256x128xbf16>, vector<8x128xf32> -> vector<8x128xf32>
      %16 = vector.extract_strided_slice %9 {offsets = [0, 0], sizes = [1, 128], strides = [1, 1]} : vector<3x128xf32> to vector<1x128xf32>
      %17 = vector.broadcast %16 : vector<1x128xf32> to vector<8x128xf32>
      %18 = arith.addf %15, %17 : vector<8x128xf32>
      %19 = vector.extract_strided_slice %9 {offsets = [1, 0], sizes = [1, 128], strides = [1, 1]} : vector<3x128xf32> to vector<1x128xf32>
      %20 = vector.extract_strided_slice %9 {offsets = [2, 0], sizes = [1, 128], strides = [1, 1]} : vector<3x128xf32> to vector<1x128xf32>
      %cst_17 = arith.constant dense<0.000000e+00> : vector<8xf32>
      %21 = vector.multi_reduction <add>, %18, %cst_17 [1] : vector<8x128xf32> to vector<8xf32>
      %22 = vector.shape_cast %21 : vector<8xf32> to vector<8x1xf32>
      %23 = arith.mulf %18, %18 : vector<8x128xf32>
      %cst_18 = arith.constant dense<0.000000e+00> : vector<8xf32>
      %24 = vector.multi_reduction <add>, %23, %cst_18 [1] : vector<8x128xf32> to vector<8xf32>
      %25 = vector.shape_cast %24 : vector<8xf32> to vector<8x1xf32>
      %cst_19 = arith.constant 7.812500e-03 : f32
      %26 = vector.broadcast %cst_19 : f32 to vector<8x1xf32>
      %27 = arith.mulf %22, %26 : vector<8x1xf32>
      %cst_20 = arith.constant 7.812500e-03 : f32
      %28 = vector.broadcast %cst_20 : f32 to vector<8x1xf32>
      %29 = arith.mulf %25, %28 : vector<8x1xf32>
      %30 = arith.mulf %27, %27 : vector<8x1xf32>
      %31 = arith.subf %29, %30 : vector<8x1xf32>
      %32 = vector.broadcast %27 : vector<8x1xf32> to vector<8x128xf32>
      %33 = arith.subf %18, %32 : vector<8x128xf32>
      %cst_21 = arith.constant 9.99999974E-6 : f32
      %34 = vector.broadcast %cst_21 : f32 to vector<8x1xf32>
      %35 = arith.addf %31, %34 : vector<8x1xf32>
      %36 = math.rsqrt %35 : vector<8x1xf32>
      %37 = vector.broadcast %36 : vector<8x1xf32> to vector<8x128xf32>
      %38 = arith.mulf %33, %37 : vector<8x128xf32>
      %39 = vector.broadcast %19 : vector<1x128xf32> to vector<8x128xf32>
      %40 = arith.mulf %38, %39 : vector<8x128xf32>
      %41 = vector.broadcast %20 : vector<1x128xf32> to vector<8x128xf32>
      %42 = arith.addf %40, %41 : vector<8x128xf32>
      %cst_22 = arith.constant 0.000000e+00 : f32
      %43 = vector.broadcast %cst_22 : f32 to vector<8x128xf32>
      %44 = arith.maximumf %42, %43 : vector<8x128xf32>
      %c0_23 = arith.constant 0 : index
      %c0_24 = arith.constant 0 : index
      %c0_25 = arith.constant 0 : index
      %c0_26 = arith.constant 0 : index
      %45 = vector.load %arg7[%c0_23, %c0_24, %c0_25, %c0_26] : memref<1x4x128x256xbf16, #tpu.memory_space<vmem>>, vector<1x1x128x256xbf16>
      %46 = vector.shape_cast %45 : vector<1x1x128x256xbf16> to vector<128x256xbf16>
      %47 = arith.truncf %44 : vector<8x128xf32> to vector<8x128xbf16>
      %cst_27 = arith.constant dense<0.000000e+00> : vector<8x256xf32>
      %48 = tpu.matmul %47, %46, %cst_27 {dimension_numbers = #tpu.dot_dimension_numbers<[1], [0], [0], [1], [0, 0, 1, 1], [], []>} : vector<8x128xbf16>, vector<128x256xbf16>, vector<8x256xf32> -> vector<8x256xf32>
      %49 = arith.addf %6, %48 : vector<8x256xf32>
      %50 = vector.extract_strided_slice %11 {offsets = [0, 0], sizes = [1, 256], strides = [1, 1]} : vector<3x256xf32> to vector<1x256xf32>
      %51 = vector.broadcast %50 : vector<1x256xf32> to vector<8x256xf32>
      %52 = arith.addf %49, %51 : vector<8x256xf32>
      %53 = vector.extract_strided_slice %11 {offsets = [1, 0], sizes = [1, 256], strides = [1, 1]} : vector<3x256xf32> to vector<1x256xf32>
      %54 = vector.extract_strided_slice %11 {offsets = [2, 0], sizes = [1, 256], strides = [1, 1]} : vector<3x256xf32> to vector<1x256xf32>
      %cst_28 = arith.constant dense<0.000000e+00> : vector<8xf32>
      %55 = vector.multi_reduction <add>, %52, %cst_28 [1] : vector<8x256xf32> to vector<8xf32>
      %56 = vector.shape_cast %55 : vector<8xf32> to vector<8x1xf32>
      %57 = arith.mulf %52, %52 : vector<8x256xf32>
      %cst_29 = arith.constant dense<0.000000e+00> : vector<8xf32>
      %58 = vector.multi_reduction <add>, %57, %cst_29 [1] : vector<8x256xf32> to vector<8xf32>
      %59 = vector.shape_cast %58 : vector<8xf32> to vector<8x1xf32>
      %cst_30 = arith.constant 3.906250e-03 : f32
      %60 = vector.broadcast %cst_30 : f32 to vector<8x1xf32>
      %61 = arith.mulf %56, %60 : vector<8x1xf32>
      %cst_31 = arith.constant 3.906250e-03 : f32
      %62 = vector.broadcast %cst_31 : f32 to vector<8x1xf32>
      %63 = arith.mulf %59, %62 : vector<8x1xf32>
      %64 = arith.mulf %61, %61 : vector<8x1xf32>
      %65 = arith.subf %63, %64 : vector<8x1xf32>
      %66 = vector.broadcast %61 : vector<8x1xf32> to vector<8x256xf32>
      %67 = arith.subf %52, %66 : vector<8x256xf32>
      %cst_32 = arith.constant 9.99999974E-6 : f32
      %68 = vector.broadcast %cst_32 : f32 to vector<8x1xf32>
      %69 = arith.addf %65, %68 : vector<8x1xf32>
      %70 = math.rsqrt %69 : vector<8x1xf32>
      %71 = vector.broadcast %70 : vector<8x1xf32> to vector<8x256xf32>
      %72 = arith.mulf %67, %71 : vector<8x256xf32>
      %73 = vector.broadcast %53 : vector<1x256xf32> to vector<8x256xf32>
      %74 = arith.mulf %72, %73 : vector<8x256xf32>
      %75 = vector.broadcast %54 : vector<1x256xf32> to vector<8x256xf32>
      %76 = arith.addf %74, %75 : vector<8x256xf32>
      %cst_33 = arith.constant 0.000000e+00 : f32
      %77 = vector.broadcast %cst_33 : f32 to vector<8x256xf32>
      %78 = arith.maximumf %76, %77 : vector<8x256xf32>
      %c0_34 = arith.constant 0 : index
      %c0_35 = arith.constant 0 : index
      %c0_36 = arith.constant 0 : index
      %c0_37 = arith.constant 0 : index
      %79 = vector.load %arg9[%c0_34, %c0_35, %c0_36, %c0_37] : memref<1x4x256x256xbf16, #tpu.memory_space<vmem>>, vector<1x1x256x256xbf16>
      %80 = vector.shape_cast %79 : vector<1x1x256x256xbf16> to vector<256x256xbf16>
      %c0_38 = arith.constant 0 : index
      %c0_39 = arith.constant 0 : index
      %c0_40 = arith.constant 0 : index
      %c0_41 = arith.constant 0 : index
      %81 = vector.load %arg10[%c0_38, %c0_39, %c0_40, %c0_41] : memref<1x4x3x256xf32, #tpu.memory_space<vmem>>, vector<1x1x3x256xf32>
      %82 = vector.shape_cast %81 : vector<1x1x3x256xf32> to vector<3x256xf32>
      %83 = arith.truncf %78 : vector<8x256xf32> to vector<8x256xbf16>
      %cst_42 = arith.constant dense<0.000000e+00> : vector<8x256xf32>
      %84 = tpu.matmul %83, %80, %cst_42 {dimension_numbers = #tpu.dot_dimension_numbers<[1], [0], [0], [1], [0, 0, 1, 1], [], []>} : vector<8x256xbf16>, vector<256x256xbf16>, vector<8x256xf32> -> vector<8x256xf32>
      %85 = vector.extract_strided_slice %82 {offsets = [0, 0], sizes = [1, 256], strides = [1, 1]} : vector<3x256xf32> to vector<1x256xf32>
      %86 = vector.broadcast %85 : vector<1x256xf32> to vector<8x256xf32>
      %87 = arith.addf %84, %86 : vector<8x256xf32>
      %88 = vector.extract_strided_slice %82 {offsets = [1, 0], sizes = [1, 256], strides = [1, 1]} : vector<3x256xf32> to vector<1x256xf32>
      %89 = vector.extract_strided_slice %82 {offsets = [2, 0], sizes = [1, 256], strides = [1, 1]} : vector<3x256xf32> to vector<1x256xf32>
      %cst_43 = arith.constant dense<0.000000e+00> : vector<8xf32>
      %90 = vector.multi_reduction <add>, %87, %cst_43 [1] : vector<8x256xf32> to vector<8xf32>
      %91 = vector.shape_cast %90 : vector<8xf32> to vector<8x1xf32>
      %92 = arith.mulf %87, %87 : vector<8x256xf32>
      %cst_44 = arith.constant dense<0.000000e+00> : vector<8xf32>
      %93 = vector.multi_reduction <add>, %92, %cst_44 [1] : vector<8x256xf32> to vector<8xf32>
      %94 = vector.shape_cast %93 : vector<8xf32> to vector<8x1xf32>
      %cst_45 = arith.constant 3.906250e-03 : f32
      %95 = vector.broadcast %cst_45 : f32 to vector<8x1xf32>
      %96 = arith.mulf %91, %95 : vector<8x1xf32>
      %cst_46 = arith.constant 3.906250e-03 : f32
      %97 = vector.broadcast %cst_46 : f32 to vector<8x1xf32>
      %98 = arith.mulf %94, %97 : vector<8x1xf32>
      %99 = arith.mulf %96, %96 : vector<8x1xf32>
      %100 = arith.subf %98, %99 : vector<8x1xf32>
      %101 = vector.broadcast %96 : vector<8x1xf32> to vector<8x256xf32>
      %102 = arith.subf %87, %101 : vector<8x256xf32>
      %cst_47 = arith.constant 9.99999974E-6 : f32
      %103 = vector.broadcast %cst_47 : f32 to vector<8x1xf32>
      %104 = arith.addf %100, %103 : vector<8x1xf32>
      %105 = math.rsqrt %104 : vector<8x1xf32>
      %106 = vector.broadcast %105 : vector<8x1xf32> to vector<8x256xf32>
      %107 = arith.mulf %102, %106 : vector<8x256xf32>
      %108 = vector.broadcast %88 : vector<1x256xf32> to vector<8x256xf32>
      %109 = arith.mulf %107, %108 : vector<8x256xf32>
      %110 = vector.broadcast %89 : vector<1x256xf32> to vector<8x256xf32>
      %111 = arith.addf %109, %110 : vector<8x256xf32>
      %cst_48 = arith.constant 0.000000e+00 : f32
      %112 = vector.broadcast %cst_48 : f32 to vector<8x256xf32>
      %113 = arith.maximumf %111, %112 : vector<8x256xf32>
      %c0_49 = arith.constant 0 : index
      %c1 = arith.constant 1 : index
      %c0_50 = arith.constant 0 : index
      %c0_51 = arith.constant 0 : index
      %114 = vector.load %arg6[%c0_49, %c1, %c0_50, %c0_51] : memref<1x4x3x128xf32, #tpu.memory_space<vmem>>, vector<1x1x3x128xf32>
      %115 = vector.shape_cast %114 : vector<1x1x3x128xf32> to vector<3x128xf32>
      %c0_52 = arith.constant 0 : index
      %c1_53 = arith.constant 1 : index
      %c0_54 = arith.constant 0 : index
      %c0_55 = arith.constant 0 : index
      %116 = vector.load %arg8[%c0_52, %c1_53, %c0_54, %c0_55] : memref<1x4x3x256xf32, #tpu.memory_space<vmem>>, vector<1x1x3x256xf32>
      %117 = vector.shape_cast %116 : vector<1x1x3x256xf32> to vector<3x256xf32>
      %c0_56 = arith.constant 0 : index
      %c1_57 = arith.constant 1 : index
      %c0_58 = arith.constant 0 : index
      %c0_59 = arith.constant 0 : index
      %118 = vector.load %arg5[%c0_56, %c1_57, %c0_58, %c0_59] : memref<1x4x256x128xbf16, #tpu.memory_space<vmem>>, vector<1x1x256x128xbf16>
      %119 = vector.shape_cast %118 : vector<1x1x256x128xbf16> to vector<256x128xbf16>
      %120 = arith.truncf %113 : vector<8x256xf32> to vector<8x256xbf16>
      %cst_60 = arith.constant dense<0.000000e+00> : vector<8x128xf32>
      %121 = tpu.matmul %120, %119, %cst_60 {dimension_numbers = #tpu.dot_dimension_numbers<[1], [0], [0], [1], [0, 0, 1, 1], [], []>} : vector<8x256xbf16>, vector<256x128xbf16>, vector<8x128xf32> -> vector<8x128xf32>
      %122 = vector.extract_strided_slice %115 {offsets = [0, 0], sizes = [1, 128], strides = [1, 1]} : vector<3x128xf32> to vector<1x128xf32>
      %123 = vector.broadcast %122 : vector<1x128xf32> to vector<8x128xf32>
      %124 = arith.addf %121, %123 : vector<8x128xf32>
      %125 = vector.extract_strided_slice %115 {offsets = [1, 0], sizes = [1, 128], strides = [1, 1]} : vector<3x128xf32> to vector<1x128xf32>
      %126 = vector.extract_strided_slice %115 {offsets = [2, 0], sizes = [1, 128], strides = [1, 1]} : vector<3x128xf32> to vector<1x128xf32>
      %cst_61 = arith.constant dense<0.000000e+00> : vector<8xf32>
      %127 = vector.multi_reduction <add>, %124, %cst_61 [1] : vector<8x128xf32> to vector<8xf32>
      %128 = vector.shape_cast %127 : vector<8xf32> to vector<8x1xf32>
      %129 = arith.mulf %124, %124 : vector<8x128xf32>
      %cst_62 = arith.constant dense<0.000000e+00> : vector<8xf32>
      %130 = vector.multi_reduction <add>, %129, %cst_62 [1] : vector<8x128xf32> to vector<8xf32>
      %131 = vector.shape_cast %130 : vector<8xf32> to vector<8x1xf32>
      %cst_63 = arith.constant 7.812500e-03 : f32
      %132 = vector.broadcast %cst_63 : f32 to vector<8x1xf32>
      %133 = arith.mulf %128, %132 : vector<8x1xf32>
      %cst_64 = arith.constant 7.812500e-03 : f32
      %134 = vector.broadcast %cst_64 : f32 to vector<8x1xf32>
      %135 = arith.mulf %131, %134 : vector<8x1xf32>
      %136 = arith.mulf %133, %133 : vector<8x1xf32>
      %137 = arith.subf %135, %136 : vector<8x1xf32>
      %138 = vector.broadcast %133 : vector<8x1xf32> to vector<8x128xf32>
      %139 = arith.subf %124, %138 : vector<8x128xf32>
      %cst_65 = arith.constant 9.99999974E-6 : f32
      %140 = vector.broadcast %cst_65 : f32 to vector<8x1xf32>
      %141 = arith.addf %137, %140 : vector<8x1xf32>
      %142 = math.rsqrt %141 : vector<8x1xf32>
      %143 = vector.broadcast %142 : vector<8x1xf32> to vector<8x128xf32>
      %144 = arith.mulf %139, %143 : vector<8x128xf32>
      %145 = vector.broadcast %125 : vector<1x128xf32> to vector<8x128xf32>
      %146 = arith.mulf %144, %145 : vector<8x128xf32>
      %147 = vector.broadcast %126 : vector<1x128xf32> to vector<8x128xf32>
      %148 = arith.addf %146, %147 : vector<8x128xf32>
      %cst_66 = arith.constant 0.000000e+00 : f32
      %149 = vector.broadcast %cst_66 : f32 to vector<8x128xf32>
      %150 = arith.maximumf %148, %149 : vector<8x128xf32>
      %c0_67 = arith.constant 0 : index
      %c1_68 = arith.constant 1 : index
      %c0_69 = arith.constant 0 : index
      %c0_70 = arith.constant 0 : index
      %151 = vector.load %arg7[%c0_67, %c1_68, %c0_69, %c0_70] : memref<1x4x128x256xbf16, #tpu.memory_space<vmem>>, vector<1x1x128x256xbf16>
      %152 = vector.shape_cast %151 : vector<1x1x128x256xbf16> to vector<128x256xbf16>
      %153 = arith.truncf %150 : vector<8x128xf32> to vector<8x128xbf16>
      %cst_71 = arith.constant dense<0.000000e+00> : vector<8x256xf32>
      %154 = tpu.matmul %153, %152, %cst_71 {dimension_numbers = #tpu.dot_dimension_numbers<[1], [0], [0], [1], [0, 0, 1, 1], [], []>} : vector<8x128xbf16>, vector<128x256xbf16>, vector<8x256xf32> -> vector<8x256xf32>
      %155 = arith.addf %113, %154 : vector<8x256xf32>
      %156 = vector.extract_strided_slice %117 {offsets = [0, 0], sizes = [1, 256], strides = [1, 1]} : vector<3x256xf32> to vector<1x256xf32>
      %157 = vector.broadcast %156 : vector<1x256xf32> to vector<8x256xf32>
      %158 = arith.addf %155, %157 : vector<8x256xf32>
      %159 = vector.extract_strided_slice %117 {offsets = [1, 0], sizes = [1, 256], strides = [1, 1]} : vector<3x256xf32> to vector<1x256xf32>
      %160 = vector.extract_strided_slice %117 {offsets = [2, 0], sizes = [1, 256], strides = [1, 1]} : vector<3x256xf32> to vector<1x256xf32>
      %cst_72 = arith.constant dense<0.000000e+00> : vector<8xf32>
      %161 = vector.multi_reduction <add>, %158, %cst_72 [1] : vector<8x256xf32> to vector<8xf32>
      %162 = vector.shape_cast %161 : vector<8xf32> to vector<8x1xf32>
      %163 = arith.mulf %158, %158 : vector<8x256xf32>
      %cst_73 = arith.constant dense<0.000000e+00> : vector<8xf32>
      %164 = vector.multi_reduction <add>, %163, %cst_73 [1] : vector<8x256xf32> to vector<8xf32>
      %165 = vector.shape_cast %164 : vector<8xf32> to vector<8x1xf32>
      %cst_74 = arith.constant 3.906250e-03 : f32
      %166 = vector.broadcast %cst_74 : f32 to vector<8x1xf32>
      %167 = arith.mulf %162, %166 : vector<8x1xf32>
      %cst_75 = arith.constant 3.906250e-03 : f32
      %168 = vector.broadcast %cst_75 : f32 to vector<8x1xf32>
      %169 = arith.mulf %165, %168 : vector<8x1xf32>
      %170 = arith.mulf %167, %167 : vector<8x1xf32>
      %171 = arith.subf %169, %170 : vector<8x1xf32>
      %172 = vector.broadcast %167 : vector<8x1xf32> to vector<8x256xf32>
      %173 = arith.subf %158, %172 : vector<8x256xf32>
      %cst_76 = arith.constant 9.99999974E-6 : f32
      %174 = vector.broadcast %cst_76 : f32 to vector<8x1xf32>
      %175 = arith.addf %171, %174 : vector<8x1xf32>
      %176 = math.rsqrt %175 : vector<8x1xf32>
      %177 = vector.broadcast %176 : vector<8x1xf32> to vector<8x256xf32>
      %178 = arith.mulf %173, %177 : vector<8x256xf32>
      %179 = vector.broadcast %159 : vector<1x256xf32> to vector<8x256xf32>
      %180 = arith.mulf %178, %179 : vector<8x256xf32>
      %181 = vector.broadcast %160 : vector<1x256xf32> to vector<8x256xf32>
      %182 = arith.addf %180, %181 : vector<8x256xf32>
      %cst_77 = arith.constant 0.000000e+00 : f32
      %183 = vector.broadcast %cst_77 : f32 to vector<8x256xf32>
      %184 = arith.maximumf %182, %183 : vector<8x256xf32>
      %185 = arith.addf %184, %6 : vector<8x256xf32>
      %c0_78 = arith.constant 0 : index
      %c1_79 = arith.constant 1 : index
      %c0_80 = arith.constant 0 : index
      %c0_81 = arith.constant 0 : index
      %186 = vector.load %arg9[%c0_78, %c1_79, %c0_80, %c0_81] : memref<1x4x256x256xbf16, #tpu.memory_space<vmem>>, vector<1x1x256x256xbf16>
      %187 = vector.shape_cast %186 : vector<1x1x256x256xbf16> to vector<256x256xbf16>
      %c0_82 = arith.constant 0 : index
      %c1_83 = arith.constant 1 : index
      %c0_84 = arith.constant 0 : index
      %c0_85 = arith.constant 0 : index
      %188 = vector.load %arg10[%c0_82, %c1_83, %c0_84, %c0_85] : memref<1x4x3x256xf32, #tpu.memory_space<vmem>>, vector<1x1x3x256xf32>
      %189 = vector.shape_cast %188 : vector<1x1x3x256xf32> to vector<3x256xf32>
      %190 = arith.truncf %185 : vector<8x256xf32> to vector<8x256xbf16>
      %cst_86 = arith.constant dense<0.000000e+00> : vector<8x256xf32>
      %191 = tpu.matmul %190, %187, %cst_86 {dimension_numbers = #tpu.dot_dimension_numbers<[1], [0], [0], [1], [0, 0, 1, 1], [], []>} : vector<8x256xbf16>, vector<256x256xbf16>, vector<8x256xf32> -> vector<8x256xf32>
      %192 = vector.extract_strided_slice %189 {offsets = [0, 0], sizes = [1, 256], strides = [1, 1]} : vector<3x256xf32> to vector<1x256xf32>
      %193 = vector.broadcast %192 : vector<1x256xf32> to vector<8x256xf32>
      %194 = arith.addf %191, %193 : vector<8x256xf32>
      %195 = vector.extract_strided_slice %189 {offsets = [1, 0], sizes = [1, 256], strides = [1, 1]} : vector<3x256xf32> to vector<1x256xf32>
      %196 = vector.extract_strided_slice %189 {offsets = [2, 0], sizes = [1, 256], strides = [1, 1]} : vector<3x256xf32> to vector<1x256xf32>
      %cst_87 = arith.constant dense<0.000000e+00> : vector<8xf32>
      %197 = vector.multi_reduction <add>, %194, %cst_87 [1] : vector<8x256xf32> to vector<8xf32>
      %198 = vector.shape_cast %197 : vector<8xf32> to vector<8x1xf32>
      %199 = arith.mulf %194, %194 : vector<8x256xf32>
      %cst_88 = arith.constant dense<0.000000e+00> : vector<8xf32>
      %200 = vector.multi_reduction <add>, %199, %cst_88 [1] : vector<8x256xf32> to vector<8xf32>
      %201 = vector.shape_cast %200 : vector<8xf32> to vector<8x1xf32>
      %cst_89 = arith.constant 3.906250e-03 : f32
      %202 = vector.broadcast %cst_89 : f32 to vector<8x1xf32>
      %203 = arith.mulf %198, %202 : vector<8x1xf32>
      %cst_90 = arith.constant 3.906250e-03 : f32
      %204 = vector.broadcast %cst_90 : f32 to vector<8x1xf32>
      %205 = arith.mulf %201, %204 : vector<8x1xf32>
      %206 = arith.mulf %203, %203 : vector<8x1xf32>
      %207 = arith.subf %205, %206 : vector<8x1xf32>
      %208 = vector.broadcast %203 : vector<8x1xf32> to vector<8x256xf32>
      %209 = arith.subf %194, %208 : vector<8x256xf32>
      %cst_91 = arith.constant 9.99999974E-6 : f32
      %210 = vector.broadcast %cst_91 : f32 to vector<8x1xf32>
      %211 = arith.addf %207, %210 : vector<8x1xf32>
      %212 = math.rsqrt %211 : vector<8x1xf32>
      %213 = vector.broadcast %212 : vector<8x1xf32> to vector<8x256xf32>
      %214 = arith.mulf %209, %213 : vector<8x256xf32>
      %215 = vector.broadcast %195 : vector<1x256xf32> to vector<8x256xf32>
      %216 = arith.mulf %214, %215 : vector<8x256xf32>
      %217 = vector.broadcast %196 : vector<1x256xf32> to vector<8x256xf32>
      %218 = arith.addf %216, %217 : vector<8x256xf32>
      %cst_92 = arith.constant 0.000000e+00 : f32
      %219 = vector.broadcast %cst_92 : f32 to vector<8x256xf32>
      %220 = arith.maximumf %218, %219 : vector<8x256xf32>
      %c0_93 = arith.constant 0 : index
      %c2 = arith.constant 2 : index
      %c0_94 = arith.constant 0 : index
      %c0_95 = arith.constant 0 : index
      %221 = vector.load %arg6[%c0_93, %c2, %c0_94, %c0_95] : memref<1x4x3x128xf32, #tpu.memory_space<vmem>>, vector<1x1x3x128xf32>
      %222 = vector.shape_cast %221 : vector<1x1x3x128xf32> to vector<3x128xf32>
      %c0_96 = arith.constant 0 : index
      %c2_97 = arith.constant 2 : index
      %c0_98 = arith.constant 0 : index
      %c0_99 = arith.constant 0 : index
      %223 = vector.load %arg8[%c0_96, %c2_97, %c0_98, %c0_99] : memref<1x4x3x256xf32, #tpu.memory_space<vmem>>, vector<1x1x3x256xf32>
      %224 = vector.shape_cast %223 : vector<1x1x3x256xf32> to vector<3x256xf32>
      %c0_100 = arith.constant 0 : index
      %c2_101 = arith.constant 2 : index
      %c0_102 = arith.constant 0 : index
      %c0_103 = arith.constant 0 : index
      %225 = vector.load %arg5[%c0_100, %c2_101, %c0_102, %c0_103] : memref<1x4x256x128xbf16, #tpu.memory_space<vmem>>, vector<1x1x256x128xbf16>
      %226 = vector.shape_cast %225 : vector<1x1x256x128xbf16> to vector<256x128xbf16>
      %227 = arith.truncf %220 : vector<8x256xf32> to vector<8x256xbf16>
      %cst_104 = arith.constant dense<0.000000e+00> : vector<8x128xf32>
      %228 = tpu.matmul %227, %226, %cst_104 {dimension_numbers = #tpu.dot_dimension_numbers<[1], [0], [0], [1], [0, 0, 1, 1], [], []>} : vector<8x256xbf16>, vector<256x128xbf16>, vector<8x128xf32> -> vector<8x128xf32>
      %229 = vector.extract_strided_slice %222 {offsets = [0, 0], sizes = [1, 128], strides = [1, 1]} : vector<3x128xf32> to vector<1x128xf32>
      %230 = vector.broadcast %229 : vector<1x128xf32> to vector<8x128xf32>
      %231 = arith.addf %228, %230 : vector<8x128xf32>
      %232 = vector.extract_strided_slice %222 {offsets = [1, 0], sizes = [1, 128], strides = [1, 1]} : vector<3x128xf32> to vector<1x128xf32>
      %233 = vector.extract_strided_slice %222 {offsets = [2, 0], sizes = [1, 128], strides = [1, 1]} : vector<3x128xf32> to vector<1x128xf32>
      %cst_105 = arith.constant dense<0.000000e+00> : vector<8xf32>
      %234 = vector.multi_reduction <add>, %231, %cst_105 [1] : vector<8x128xf32> to vector<8xf32>
      %235 = vector.shape_cast %234 : vector<8xf32> to vector<8x1xf32>
      %236 = arith.mulf %231, %231 : vector<8x128xf32>
      %cst_106 = arith.constant dense<0.000000e+00> : vector<8xf32>
      %237 = vector.multi_reduction <add>, %236, %cst_106 [1] : vector<8x128xf32> to vector<8xf32>
      %238 = vector.shape_cast %237 : vector<8xf32> to vector<8x1xf32>
      %cst_107 = arith.constant 7.812500e-03 : f32
      %239 = vector.broadcast %cst_107 : f32 to vector<8x1xf32>
      %240 = arith.mulf %235, %239 : vector<8x1xf32>
      %cst_108 = arith.constant 7.812500e-03 : f32
      %241 = vector.broadcast %cst_108 : f32 to vector<8x1xf32>
      %242 = arith.mulf %238, %241 : vector<8x1xf32>
      %243 = arith.mulf %240, %240 : vector<8x1xf32>
      %244 = arith.subf %242, %243 : vector<8x1xf32>
      %245 = vector.broadcast %240 : vector<8x1xf32> to vector<8x128xf32>
      %246 = arith.subf %231, %245 : vector<8x128xf32>
      %cst_109 = arith.constant 9.99999974E-6 : f32
      %247 = vector.broadcast %cst_109 : f32 to vector<8x1xf32>
      %248 = arith.addf %244, %247 : vector<8x1xf32>
      %249 = math.rsqrt %248 : vector<8x1xf32>
      %250 = vector.broadcast %249 : vector<8x1xf32> to vector<8x128xf32>
      %251 = arith.mulf %246, %250 : vector<8x128xf32>
      %252 = vector.broadcast %232 : vector<1x128xf32> to vector<8x128xf32>
      %253 = arith.mulf %251, %252 : vector<8x128xf32>
      %254 = vector.broadcast %233 : vector<1x128xf32> to vector<8x128xf32>
      %255 = arith.addf %253, %254 : vector<8x128xf32>
      %cst_110 = arith.constant 0.000000e+00 : f32
      %256 = vector.broadcast %cst_110 : f32 to vector<8x128xf32>
      %257 = arith.maximumf %255, %256 : vector<8x128xf32>
      %c0_111 = arith.constant 0 : index
      %c2_112 = arith.constant 2 : index
      %c0_113 = arith.constant 0 : index
      %c0_114 = arith.constant 0 : index
      %258 = vector.load %arg7[%c0_111, %c2_112, %c0_113, %c0_114] : memref<1x4x128x256xbf16, #tpu.memory_space<vmem>>, vector<1x1x128x256xbf16>
      %259 = vector.shape_cast %258 : vector<1x1x128x256xbf16> to vector<128x256xbf16>
      %260 = arith.truncf %257 : vector<8x128xf32> to vector<8x128xbf16>
      %cst_115 = arith.constant dense<0.000000e+00> : vector<8x256xf32>
      %261 = tpu.matmul %260, %259, %cst_115 {dimension_numbers = #tpu.dot_dimension_numbers<[1], [0], [0], [1], [0, 0, 1, 1], [], []>} : vector<8x128xbf16>, vector<128x256xbf16>, vector<8x256xf32> -> vector<8x256xf32>
      %262 = arith.addf %220, %261 : vector<8x256xf32>
      %263 = vector.extract_strided_slice %224 {offsets = [0, 0], sizes = [1, 256], strides = [1, 1]} : vector<3x256xf32> to vector<1x256xf32>
      %264 = vector.broadcast %263 : vector<1x256xf32> to vector<8x256xf32>
      %265 = arith.addf %262, %264 : vector<8x256xf32>
      %266 = vector.extract_strided_slice %224 {offsets = [1, 0], sizes = [1, 256], strides = [1, 1]} : vector<3x256xf32> to vector<1x256xf32>
      %267 = vector.extract_strided_slice %224 {offsets = [2, 0], sizes = [1, 256], strides = [1, 1]} : vector<3x256xf32> to vector<1x256xf32>
      %cst_116 = arith.constant dense<0.000000e+00> : vector<8xf32>
      %268 = vector.multi_reduction <add>, %265, %cst_116 [1] : vector<8x256xf32> to vector<8xf32>
      %269 = vector.shape_cast %268 : vector<8xf32> to vector<8x1xf32>
      %270 = arith.mulf %265, %265 : vector<8x256xf32>
      %cst_117 = arith.constant dense<0.000000e+00> : vector<8xf32>
      %271 = vector.multi_reduction <add>, %270, %cst_117 [1] : vector<8x256xf32> to vector<8xf32>
      %272 = vector.shape_cast %271 : vector<8xf32> to vector<8x1xf32>
      %cst_118 = arith.constant 3.906250e-03 : f32
      %273 = vector.broadcast %cst_118 : f32 to vector<8x1xf32>
      %274 = arith.mulf %269, %273 : vector<8x1xf32>
      %cst_119 = arith.constant 3.906250e-03 : f32
      %275 = vector.broadcast %cst_119 : f32 to vector<8x1xf32>
      %276 = arith.mulf %272, %275 : vector<8x1xf32>
      %277 = arith.mulf %274, %274 : vector<8x1xf32>
      %278 = arith.subf %276, %277 : vector<8x1xf32>
      %279 = vector.broadcast %274 : vector<8x1xf32> to vector<8x256xf32>
      %280 = arith.subf %265, %279 : vector<8x256xf32>
      %cst_120 = arith.constant 9.99999974E-6 : f32
      %281 = vector.broadcast %cst_120 : f32 to vector<8x1xf32>
      %282 = arith.addf %278, %281 : vector<8x1xf32>
      %283 = math.rsqrt %282 : vector<8x1xf32>
      %284 = vector.broadcast %283 : vector<8x1xf32> to vector<8x256xf32>
      %285 = arith.mulf %280, %284 : vector<8x256xf32>
      %286 = vector.broadcast %266 : vector<1x256xf32> to vector<8x256xf32>
      %287 = arith.mulf %285, %286 : vector<8x256xf32>
      %288 = vector.broadcast %267 : vector<1x256xf32> to vector<8x256xf32>
      %289 = arith.addf %287, %288 : vector<8x256xf32>
      %cst_121 = arith.constant 0.000000e+00 : f32
      %290 = vector.broadcast %cst_121 : f32 to vector<8x256xf32>
      %291 = arith.maximumf %289, %290 : vector<8x256xf32>
      %c0_122 = arith.constant 0 : index
      %c2_123 = arith.constant 2 : index
      %c0_124 = arith.constant 0 : index
      %c0_125 = arith.constant 0 : index
      %292 = vector.load %arg9[%c0_122, %c2_123, %c0_124, %c0_125] : memref<1x4x256x256xbf16, #tpu.memory_space<vmem>>, vector<1x1x256x256xbf16>
      %293 = vector.shape_cast %292 : vector<1x1x256x256xbf16> to vector<256x256xbf16>
      %c0_126 = arith.constant 0 : index
      %c2_127 = arith.constant 2 : index
      %c0_128 = arith.constant 0 : index
      %c0_129 = arith.constant 0 : index
      %294 = vector.load %arg10[%c0_126, %c2_127, %c0_128, %c0_129] : memref<1x4x3x256xf32, #tpu.memory_space<vmem>>, vector<1x1x3x256xf32>
      %295 = vector.shape_cast %294 : vector<1x1x3x256xf32> to vector<3x256xf32>
      %296 = arith.truncf %291 : vector<8x256xf32> to vector<8x256xbf16>
      %cst_130 = arith.constant dense<0.000000e+00> : vector<8x256xf32>
      %297 = tpu.matmul %296, %293, %cst_130 {dimension_numbers = #tpu.dot_dimension_numbers<[1], [0], [0], [1], [0, 0, 1, 1], [], []>} : vector<8x256xbf16>, vector<256x256xbf16>, vector<8x256xf32> -> vector<8x256xf32>
      %298 = vector.extract_strided_slice %295 {offsets = [0, 0], sizes = [1, 256], strides = [1, 1]} : vector<3x256xf32> to vector<1x256xf32>
      %299 = vector.broadcast %298 : vector<1x256xf32> to vector<8x256xf32>
      %300 = arith.addf %297, %299 : vector<8x256xf32>
      %301 = vector.extract_strided_slice %295 {offsets = [1, 0], sizes = [1, 256], strides = [1, 1]} : vector<3x256xf32> to vector<1x256xf32>
      %302 = vector.extract_strided_slice %295 {offsets = [2, 0], sizes = [1, 256], strides = [1, 1]} : vector<3x256xf32> to vector<1x256xf32>
      %cst_131 = arith.constant dense<0.000000e+00> : vector<8xf32>
      %303 = vector.multi_reduction <add>, %300, %cst_131 [1] : vector<8x256xf32> to vector<8xf32>
      %304 = vector.shape_cast %303 : vector<8xf32> to vector<8x1xf32>
      %305 = arith.mulf %300, %300 : vector<8x256xf32>
      %cst_132 = arith.constant dense<0.000000e+00> : vector<8xf32>
      %306 = vector.multi_reduction <add>, %305, %cst_132 [1] : vector<8x256xf32> to vector<8xf32>
      %307 = vector.shape_cast %306 : vector<8xf32> to vector<8x1xf32>
      %cst_133 = arith.constant 3.906250e-03 : f32
      %308 = vector.broadcast %cst_133 : f32 to vector<8x1xf32>
      %309 = arith.mulf %304, %308 : vector<8x1xf32>
      %cst_134 = arith.constant 3.906250e-03 : f32
      %310 = vector.broadcast %cst_134 : f32 to vector<8x1xf32>
      %311 = arith.mulf %307, %310 : vector<8x1xf32>
      %312 = arith.mulf %309, %309 : vector<8x1xf32>
      %313 = arith.subf %311, %312 : vector<8x1xf32>
      %314 = vector.broadcast %309 : vector<8x1xf32> to vector<8x256xf32>
      %315 = arith.subf %300, %314 : vector<8x256xf32>
      %cst_135 = arith.constant 9.99999974E-6 : f32
      %316 = vector.broadcast %cst_135 : f32 to vector<8x1xf32>
      %317 = arith.addf %313, %316 : vector<8x1xf32>
      %318 = math.rsqrt %317 : vector<8x1xf32>
      %319 = vector.broadcast %318 : vector<8x1xf32> to vector<8x256xf32>
      %320 = arith.mulf %315, %319 : vector<8x256xf32>
      %321 = vector.broadcast %301 : vector<1x256xf32> to vector<8x256xf32>
      %322 = arith.mulf %320, %321 : vector<8x256xf32>
      %323 = vector.broadcast %302 : vector<1x256xf32> to vector<8x256xf32>
      %324 = arith.addf %322, %323 : vector<8x256xf32>
      %cst_136 = arith.constant 0.000000e+00 : f32
      %325 = vector.broadcast %cst_136 : f32 to vector<8x256xf32>
      %326 = arith.maximumf %324, %325 : vector<8x256xf32>
      %c0_137 = arith.constant 0 : index
      %c3 = arith.constant 3 : index
      %c0_138 = arith.constant 0 : index
      %c0_139 = arith.constant 0 : index
      %327 = vector.load %arg6[%c0_137, %c3, %c0_138, %c0_139] : memref<1x4x3x128xf32, #tpu.memory_space<vmem>>, vector<1x1x3x128xf32>
      %328 = vector.shape_cast %327 : vector<1x1x3x128xf32> to vector<3x128xf32>
      %c0_140 = arith.constant 0 : index
      %c3_141 = arith.constant 3 : index
      %c0_142 = arith.constant 0 : index
      %c0_143 = arith.constant 0 : index
      %329 = vector.load %arg8[%c0_140, %c3_141, %c0_142, %c0_143] : memref<1x4x3x256xf32, #tpu.memory_space<vmem>>, vector<1x1x3x256xf32>
      %330 = vector.shape_cast %329 : vector<1x1x3x256xf32> to vector<3x256xf32>
      %c0_144 = arith.constant 0 : index
      %c3_145 = arith.constant 3 : index
      %c0_146 = arith.constant 0 : index
      %c0_147 = arith.constant 0 : index
      %331 = vector.load %arg5[%c0_144, %c3_145, %c0_146, %c0_147] : memref<1x4x256x128xbf16, #tpu.memory_space<vmem>>, vector<1x1x256x128xbf16>
      %332 = vector.shape_cast %331 : vector<1x1x256x128xbf16> to vector<256x128xbf16>
      %333 = arith.truncf %326 : vector<8x256xf32> to vector<8x256xbf16>
      %cst_148 = arith.constant dense<0.000000e+00> : vector<8x128xf32>
      %334 = tpu.matmul %333, %332, %cst_148 {dimension_numbers = #tpu.dot_dimension_numbers<[1], [0], [0], [1], [0, 0, 1, 1], [], []>} : vector<8x256xbf16>, vector<256x128xbf16>, vector<8x128xf32> -> vector<8x128xf32>
      %335 = vector.extract_strided_slice %328 {offsets = [0, 0], sizes = [1, 128], strides = [1, 1]} : vector<3x128xf32> to vector<1x128xf32>
      %336 = vector.broadcast %335 : vector<1x128xf32> to vector<8x128xf32>
      %337 = arith.addf %334, %336 : vector<8x128xf32>
      %338 = vector.extract_strided_slice %328 {offsets = [1, 0], sizes = [1, 128], strides = [1, 1]} : vector<3x128xf32> to vector<1x128xf32>
      %339 = vector.extract_strided_slice %328 {offsets = [2, 0], sizes = [1, 128], strides = [1, 1]} : vector<3x128xf32> to vector<1x128xf32>
      %cst_149 = arith.constant dense<0.000000e+00> : vector<8xf32>
      %340 = vector.multi_reduction <add>, %337, %cst_149 [1] : vector<8x128xf32> to vector<8xf32>
      %341 = vector.shape_cast %340 : vector<8xf32> to vector<8x1xf32>
      %342 = arith.mulf %337, %337 : vector<8x128xf32>
      %cst_150 = arith.constant dense<0.000000e+00> : vector<8xf32>
      %343 = vector.multi_reduction <add>, %342, %cst_150 [1] : vector<8x128xf32> to vector<8xf32>
      %344 = vector.shape_cast %343 : vector<8xf32> to vector<8x1xf32>
      %cst_151 = arith.constant 7.812500e-03 : f32
      %345 = vector.broadcast %cst_151 : f32 to vector<8x1xf32>
      %346 = arith.mulf %341, %345 : vector<8x1xf32>
      %cst_152 = arith.constant 7.812500e-03 : f32
      %347 = vector.broadcast %cst_152 : f32 to vector<8x1xf32>
      %348 = arith.mulf %344, %347 : vector<8x1xf32>
      %349 = arith.mulf %346, %346 : vector<8x1xf32>
      %350 = arith.subf %348, %349 : vector<8x1xf32>
      %351 = vector.broadcast %346 : vector<8x1xf32> to vector<8x128xf32>
      %352 = arith.subf %337, %351 : vector<8x128xf32>
      %cst_153 = arith.constant 9.99999974E-6 : f32
      %353 = vector.broadcast %cst_153 : f32 to vector<8x1xf32>
      %354 = arith.addf %350, %353 : vector<8x1xf32>
      %355 = math.rsqrt %354 : vector<8x1xf32>
      %356 = vector.broadcast %355 : vector<8x1xf32> to vector<8x128xf32>
      %357 = arith.mulf %352, %356 : vector<8x128xf32>
      %358 = vector.broadcast %338 : vector<1x128xf32> to vector<8x128xf32>
      %359 = arith.mulf %357, %358 : vector<8x128xf32>
      %360 = vector.broadcast %339 : vector<1x128xf32> to vector<8x128xf32>
      %361 = arith.addf %359, %360 : vector<8x128xf32>
      %cst_154 = arith.constant 0.000000e+00 : f32
      %362 = vector.broadcast %cst_154 : f32 to vector<8x128xf32>
      %363 = arith.maximumf %361, %362 : vector<8x128xf32>
      %c0_155 = arith.constant 0 : index
      %c3_156 = arith.constant 3 : index
      %c0_157 = arith.constant 0 : index
      %c0_158 = arith.constant 0 : index
      %364 = vector.load %arg7[%c0_155, %c3_156, %c0_157, %c0_158] : memref<1x4x128x256xbf16, #tpu.memory_space<vmem>>, vector<1x1x128x256xbf16>
      %365 = vector.shape_cast %364 : vector<1x1x128x256xbf16> to vector<128x256xbf16>
      %366 = arith.truncf %363 : vector<8x128xf32> to vector<8x128xbf16>
      %cst_159 = arith.constant dense<0.000000e+00> : vector<8x256xf32>
      %367 = tpu.matmul %366, %365, %cst_159 {dimension_numbers = #tpu.dot_dimension_numbers<[1], [0], [0], [1], [0, 0, 1, 1], [], []>} : vector<8x128xbf16>, vector<128x256xbf16>, vector<8x256xf32> -> vector<8x256xf32>
      %368 = arith.addf %326, %367 : vector<8x256xf32>
      %369 = vector.extract_strided_slice %330 {offsets = [0, 0], sizes = [1, 256], strides = [1, 1]} : vector<3x256xf32> to vector<1x256xf32>
      %370 = vector.broadcast %369 : vector<1x256xf32> to vector<8x256xf32>
      %371 = arith.addf %368, %370 : vector<8x256xf32>
      %372 = vector.extract_strided_slice %330 {offsets = [1, 0], sizes = [1, 256], strides = [1, 1]} : vector<3x256xf32> to vector<1x256xf32>
      %373 = vector.extract_strided_slice %330 {offsets = [2, 0], sizes = [1, 256], strides = [1, 1]} : vector<3x256xf32> to vector<1x256xf32>
      %cst_160 = arith.constant dense<0.000000e+00> : vector<8xf32>
      %374 = vector.multi_reduction <add>, %371, %cst_160 [1] : vector<8x256xf32> to vector<8xf32>
      %375 = vector.shape_cast %374 : vector<8xf32> to vector<8x1xf32>
      %376 = arith.mulf %371, %371 : vector<8x256xf32>
      %cst_161 = arith.constant dense<0.000000e+00> : vector<8xf32>
      %377 = vector.multi_reduction <add>, %376, %cst_161 [1] : vector<8x256xf32> to vector<8xf32>
      %378 = vector.shape_cast %377 : vector<8xf32> to vector<8x1xf32>
      %cst_162 = arith.constant 3.906250e-03 : f32
      %379 = vector.broadcast %cst_162 : f32 to vector<8x1xf32>
      %380 = arith.mulf %375, %379 : vector<8x1xf32>
      %cst_163 = arith.constant 3.906250e-03 : f32
      %381 = vector.broadcast %cst_163 : f32 to vector<8x1xf32>
      %382 = arith.mulf %378, %381 : vector<8x1xf32>
      %383 = arith.mulf %380, %380 : vector<8x1xf32>
      %384 = arith.subf %382, %383 : vector<8x1xf32>
      %385 = vector.broadcast %380 : vector<8x1xf32> to vector<8x256xf32>
      %386 = arith.subf %371, %385 : vector<8x256xf32>
      %cst_164 = arith.constant 9.99999974E-6 : f32
      %387 = vector.broadcast %cst_164 : f32 to vector<8x1xf32>
      %388 = arith.addf %384, %387 : vector<8x1xf32>
      %389 = math.rsqrt %388 : vector<8x1xf32>
      %390 = vector.broadcast %389 : vector<8x1xf32> to vector<8x256xf32>
      %391 = arith.mulf %386, %390 : vector<8x256xf32>
      %392 = vector.broadcast %372 : vector<1x256xf32> to vector<8x256xf32>
      %393 = arith.mulf %391, %392 : vector<8x256xf32>
      %394 = vector.broadcast %373 : vector<1x256xf32> to vector<8x256xf32>
      %395 = arith.addf %393, %394 : vector<8x256xf32>
      %cst_165 = arith.constant 0.000000e+00 : f32
      %396 = vector.broadcast %cst_165 : f32 to vector<8x256xf32>
      %397 = arith.maximumf %395, %396 : vector<8x256xf32>
      %398 = arith.addf %397, %220 : vector<8x256xf32>
      %399 = arith.addf %398, %6 : vector<8x256xf32>
      %400 = arith.addf %399, %7 : vector<8x256xf32>
      %c0_166 = arith.constant 0 : index
      %c3_167 = arith.constant 3 : index
      %c0_168 = arith.constant 0 : index
      %c0_169 = arith.constant 0 : index
      %401 = vector.load %arg9[%c0_166, %c3_167, %c0_168, %c0_169] : memref<1x4x256x256xbf16, #tpu.memory_space<vmem>>, vector<1x1x256x256xbf16>
      %402 = vector.shape_cast %401 : vector<1x1x256x256xbf16> to vector<256x256xbf16>
      %c0_170 = arith.constant 0 : index
      %c3_171 = arith.constant 3 : index
      %c0_172 = arith.constant 0 : index
      %c0_173 = arith.constant 0 : index
      %403 = vector.load %arg10[%c0_170, %c3_171, %c0_172, %c0_173] : memref<1x4x3x256xf32, #tpu.memory_space<vmem>>, vector<1x1x3x256xf32>
      %404 = vector.shape_cast %403 : vector<1x1x3x256xf32> to vector<3x256xf32>
      %405 = arith.truncf %400 : vector<8x256xf32> to vector<8x256xbf16>
      %cst_174 = arith.constant dense<0.000000e+00> : vector<8x256xf32>
      %406 = tpu.matmul %405, %402, %cst_174 {dimension_numbers = #tpu.dot_dimension_numbers<[1], [0], [0], [1], [0, 0, 1, 1], [], []>} : vector<8x256xbf16>, vector<256x256xbf16>, vector<8x256xf32> -> vector<8x256xf32>
      %407 = vector.extract_strided_slice %404 {offsets = [0, 0], sizes = [1, 256], strides = [1, 1]} : vector<3x256xf32> to vector<1x256xf32>
      %408 = vector.broadcast %407 : vector<1x256xf32> to vector<8x256xf32>
      %409 = arith.addf %406, %408 : vector<8x256xf32>
      %410 = vector.extract_strided_slice %404 {offsets = [1, 0], sizes = [1, 256], strides = [1, 1]} : vector<3x256xf32> to vector<1x256xf32>
      %411 = vector.extract_strided_slice %404 {offsets = [2, 0], sizes = [1, 256], strides = [1, 1]} : vector<3x256xf32> to vector<1x256xf32>
      %cst_175 = arith.constant dense<0.000000e+00> : vector<8xf32>
      %412 = vector.multi_reduction <add>, %409, %cst_175 [1] : vector<8x256xf32> to vector<8xf32>
      %413 = vector.shape_cast %412 : vector<8xf32> to vector<8x1xf32>
      %414 = arith.mulf %409, %409 : vector<8x256xf32>
      %cst_176 = arith.constant dense<0.000000e+00> : vector<8xf32>
      %415 = vector.multi_reduction <add>, %414, %cst_176 [1] : vector<8x256xf32> to vector<8xf32>
      %416 = vector.shape_cast %415 : vector<8xf32> to vector<8x1xf32>
      %cst_177 = arith.constant 3.906250e-03 : f32
      %417 = vector.broadcast %cst_177 : f32 to vector<8x1xf32>
      %418 = arith.mulf %413, %417 : vector<8x1xf32>
      %cst_178 = arith.constant 3.906250e-03 : f32
      %419 = vector.broadcast %cst_178 : f32 to vector<8x1xf32>
      %420 = arith.mulf %416, %419 : vector<8x1xf32>
      %421 = arith.mulf %418, %418 : vector<8x1xf32>
      %422 = arith.subf %420, %421 : vector<8x1xf32>
      %423 = vector.broadcast %418 : vector<8x1xf32> to vector<8x256xf32>
      %424 = arith.subf %409, %423 : vector<8x256xf32>
      %cst_179 = arith.constant 9.99999974E-6 : f32
      %425 = vector.broadcast %cst_179 : f32 to vector<8x1xf32>
      %426 = arith.addf %422, %425 : vector<8x1xf32>
      %427 = math.rsqrt %426 : vector<8x1xf32>
      %428 = vector.broadcast %427 : vector<8x1xf32> to vector<8x256xf32>
      %429 = arith.mulf %424, %428 : vector<8x256xf32>
      %430 = vector.broadcast %410 : vector<1x256xf32> to vector<8x256xf32>
      %431 = arith.mulf %429, %430 : vector<8x256xf32>
      %432 = vector.broadcast %411 : vector<1x256xf32> to vector<8x256xf32>
      %433 = arith.addf %431, %432 : vector<8x256xf32>
      %cst_180 = arith.constant 0.000000e+00 : f32
      %434 = vector.broadcast %cst_180 : f32 to vector<8x256xf32>
      %435 = arith.maximumf %433, %434 : vector<8x256xf32>
      %c0_181 = arith.constant 0 : index
      %c0_182 = arith.constant 0 : index
      %436 = vector.load %arg11[%c0_181, %c0_182] : memref<1x256xf32, #tpu.memory_space<vmem>>, vector<1x256xf32>
      %437 = vector.broadcast %436 : vector<1x256xf32> to vector<8x256xf32>
      %438 = arith.mulf %435, %437 : vector<8x256xf32>
      %cst_183 = arith.constant dense<0.000000e+00> : vector<8xf32>
      %439 = vector.multi_reduction <add>, %438, %cst_183 [1] : vector<8x256xf32> to vector<8xf32>
      %440 = vector.shape_cast %439 : vector<8xf32> to vector<8x1xf32>
      %c0_184 = arith.constant 0 : index
      %c0_185 = arith.constant 0 : index
      %441 = vector.load %arg12[%c0_184, %c0_185] : memref<1x1xf32, #tpu.memory_space<vmem>>, vector<1x1xf32>
      %442 = vector.broadcast %441 : vector<1x1xf32> to vector<8x1xf32>
      %443 = arith.addf %440, %442 : vector<8x1xf32>
      %c0_186 = arith.constant 0 : index
      %c0_187 = arith.constant 0 : index
      %444 = vector.load %arg13[%c0_186, %c0_187] : memref<8x1xf32, #tpu.memory_space<vmem>>, vector<8x1xf32>
      tpu.vector_store %arg13[%c0_186, %c0_187], %443 {strides = array<i32>} : memref<8x1xf32, #tpu.memory_space<vmem>>, vector<8x1xf32>,
    } else {
    }
    return
  }
  func.func @transform_0(%arg0: i32, %arg1: i32) -> (i32, i32) {
    %c0_i32 = arith.constant 0 : i32
    %c0_i32_0 = arith.constant 0 : i32
    return %arg0, %c0_i32 : i32, i32
  }
  func.func @transform_1(%arg0: i32, %arg1: i32) -> (i32, i32) {
    %c0_i32 = arith.constant 0 : i32
    %c0_i32_0 = arith.constant 0 : i32
    %c0_i32_1 = arith.constant 0 : i32
    return %c0_i32, %c0_i32_0 : i32, i32
  }
  func.func @transform_2(%arg0: i32, %arg1: i32) -> (i32, i32) {
    %c0_i32 = arith.constant 0 : i32
    %c0_i32_0 = arith.constant 0 : i32
    %c0_i32_1 = arith.constant 0 : i32
    return %c0_i32, %c0_i32_0 : i32, i32
  }
  func.func @transform_3(%arg0: i32, %arg1: i32) -> (i32, i32, i32, i32) {
    %c0_i32 = arith.constant 0 : i32
    %c0_i32_0 = arith.constant 0 : i32
    %c0_i32_1 = arith.constant 0 : i32
    %c0_i32_2 = arith.constant 0 : i32
    return %arg1, %c0_i32, %c0_i32_0, %c0_i32_1 : i32, i32, i32, i32
  }
  func.func @transform_4(%arg0: i32, %arg1: i32) -> (i32, i32, i32, i32) {
    %c0_i32 = arith.constant 0 : i32
    %c0_i32_0 = arith.constant 0 : i32
    %c0_i32_1 = arith.constant 0 : i32
    %c0_i32_2 = arith.constant 0 : i32
    return %arg1, %c0_i32, %c0_i32_0, %c0_i32_1 : i32, i32, i32, i32
  }
  func.func @transform_5(%arg0: i32, %arg1: i32) -> (i32, i32, i32, i32) {
    %c0_i32 = arith.constant 0 : i32
    %c0_i32_0 = arith.constant 0 : i32
    %c0_i32_1 = arith.constant 0 : i32
    %c0_i32_2 = arith.constant 0 : i32
    return %arg1, %c0_i32, %c0_i32_0, %c0_i32_1 : i32, i32, i32, i32
  }
  func.func @transform_6(%arg0: i32, %arg1: i32) -> (i32, i32, i32, i32) {
    %c0_i32 = arith.constant 0 : i32
    %c0_i32_0 = arith.constant 0 : i32
    %c0_i32_1 = arith.constant 0 : i32
    %c0_i32_2 = arith.constant 0 : i32
    return %arg1, %c0_i32, %c0_i32_0, %c0_i32_1 : i32, i32, i32, i32
  }
  func.func @transform_7(%arg0: i32, %arg1: i32) -> (i32, i32, i32, i32) {
    %c0_i32 = arith.constant 0 : i32
    %c0_i32_0 = arith.constant 0 : i32
    %c0_i32_1 = arith.constant 0 : i32
    %c0_i32_2 = arith.constant 0 : i32
    return %arg1, %c0_i32, %c0_i32_0, %c0_i32_1 : i32, i32, i32, i32
  }
  func.func @transform_8(%arg0: i32, %arg1: i32) -> (i32, i32, i32, i32) {
    %c0_i32 = arith.constant 0 : i32
    %c0_i32_0 = arith.constant 0 : i32
    %c0_i32_1 = arith.constant 0 : i32
    %c0_i32_2 = arith.constant 0 : i32
    return %arg1, %c0_i32, %c0_i32_0, %c0_i32_1 : i32, i32, i32, i32
  }
  func.func @transform_9(%arg0: i32, %arg1: i32) -> (i32, i32) {
    %c0_i32 = arith.constant 0 : i32
    %c0_i32_0 = arith.constant 0 : i32
    %c0_i32_1 = arith.constant 0 : i32
    return %c0_i32, %c0_i32_0 : i32, i32
  }
  func.func @transform_10(%arg0: i32, %arg1: i32) -> (i32, i32) {
    %c0_i32 = arith.constant 0 : i32
    %c0_i32_0 = arith.constant 0 : i32
    %c0_i32_1 = arith.constant 0 : i32
    return %c0_i32, %c0_i32_0 : i32, i32
  }
  func.func @transform_11(%arg0: i32, %arg1: i32) -> (i32, i32) {
    %c0_i32 = arith.constant 0 : i32
    %c0_i32_0 = arith.constant 0 : i32
    return %arg0, %c0_i32 : i32, i32
  }
}

</mosaic_0001>

<bundles_post_ra>
// kernel: tpu_custom_call.1
= control target key start
LH: loop header
LB: loop body
LE: loop exit
PB: predicated region body
PF: predicated region fallthrough
CT: control target
= control target key end

     0   :  { %s10591_s0 = inlined_call_operand.vmem [shape: f32[8,38], index: 0, kind: input, shape index: {}]   ;;  %s10592_s1 = inlined_call_operand.vmem [shape: bf16[128,256], index: 1, kind: input, shape index: {}]   ;;  %s10593_s2 = inlined_call_operand.vmem [shape: f32[3,256], index: 2, kind: input, shape index: {}]   ;;  %s10594_s3 = inlined_call_operand.hbm [shape: bf16[2,4,256,128], index: 3, kind: input, shape index: {}]   ;;  %s10595_s4 = inlined_call_operand.vmem [shape: f32[2,4,3,128], index: 4, kind: input, shape index: {}]   ;;  %s10596_s5 = inlined_call_operand.hbm [shape: bf16[2,4,128,256], index: 5, kind: input, shape index: {}]   ;;  %s10597_s6 = inlined_call_operand.vmem [shape: f32[2,4,3,256], index: 6, kind: input, shape index: {}]   ;;  %s10598_s7 = inlined_call_operand.hbm [shape: bf16[2,4,256,256], index: 7, kind: input, shape index: {}]   ;;  %s10599_s8 = inlined_call_operand.vmem [shape: f32[2,4,3,256], index: 8, kind: input, shape index: {}]   ;;  %s10600_s9 = inlined_call_operand.vmem [shape: f32[1,256], index: 9, kind: input, shape index: {}]   ;;  %s10601_s10 = inlined_call_operand.<no memory space> [shape: f32[1,1], index: 10, kind: input, shape index: {}]   ;;  %s10602_s11 = inlined_call_operand.vmem [shape: f32[8,1], index: 11, kind: output, shape index: {}]  }
   0x1   :  { %10611 = sst [smem:[#allocation16_spill]] %s10594_s3  ;;  %v16_v0 = vstv %s10601_s10 }
   0x2   :  { %10612 = sst [smem:[#allocation17_spill]] %s10596_s5  ;;  %17 = vst [vmem:[#allocation5] sm:$0x1] %v16_v0 }
   0x3   :  { %10613 = sst [smem:[#allocation18_spill]] %s10602_s11 }
   0x4   :  { %18 = vsyncpa [#allocation7], 0 }
   0x5   :  { %20 = vsyncpa [#allocation7 + $0x1], 0 }
   0x6   :  { %21 = vsyncpa [#allocation9], 0 }
   0x7   :  { %23 = vsyncpa [#allocation9 + $0x1], 0  ;;  %s9254_s19 = smov 0   ;;  %s9256_s20 = smov 0  }
   0x8   :  { %s9258_s21 = smov 0   ;;  %s9260_s22 = smov 0  }
   0x9   :  { %s9262_s23 = smov 0   ;;  %s9264_s24 = smov 0  }
   0xa LB: > { %10614 = sst [smem:[#allocation13_spill]] %s9167_s21  ;;  %s10603_s10 = sadd.s32 4294967295, %s9179_s24   ;;  %s9179_s24 = sphi %s9264_s24, %s29_s24   ;;  %s9175_s23 = sphi %s9262_s23, %s10639_s23   ;;  %s9171_s22 = sphi %s9260_s22, %s10638_s22   ;;  %s9167_s21 = sphi %s9258_s21, %s10637_s21   ;;  %s9163_s20 = sphi %s9256_s20, %s10636_s20   ;;  %s9159_s19 = sphi %s9254_s19, %s10635_s19  }
   0xb   : > { %s38_s25 = sadd.s32 1, %s9175_s23  ;;  %s116_s26 = sadd.s32 1, %s9167_s21 }
   0xc   : > { %p39_p0 = scmp.ge.s32.totalorder %s38_s25, 2  ;;  %p123_p1 = scmp.ne.s32.totalorder %s9167_s21, %s9163_s20 }
   0xd   : > { %p124_p2 = scmp.eq.s32.totalorder %s9179_s24, 0  ;;  %p129_p4 = scmp.ne.s32.totalorder %s9163_s20, %s9159_s19 }
   0xe   : > { %s10641_s25 = smov (%p39_p0, %s38_s25), 0  ;;  %p130_p5 = scmp.eq.s32.totalorder %s10603_s10, 0 }
   0xf   : > { %10615 = sst [smem:[#allocation14_spill]] %s10641_s25  ;;  %p125_p3 = por %p124_p2, %p123_p1 }
  0x10   : > { %s113_s27 = ssub.s32 %s9175_s23, %s10641_s25  ;;  %p9295_p7 = por %p130_p5, %p129_p4 }
  0x11   : > { %p114_p6 = scmp.eq.s32.totalorder %s113_s27, 0  ;;  %p8195_p8 = scmp.lt.s32.totalorder %s9179_s24, 2 }
  0x12   : > { %s10616_s28 = scalar_select %p9295_p7, 1, 0 }
  0x13   : > { %s9301_s29 = scalar_select %p114_p6, %s9167_s21, %s116_s26  }
  0x14   : > { %s9304_s30 = sand.u32 1, %s9167_s21   ;;  %s10606_s12 = sshll.u32 %s9175_s23, 13 }
  0x15   : > { %10617 = sst [smem:[#allocation15_spill]] %s9301_s29  ;;  %s10605_s13 = sshll.u32 %s9304_s30, 9 }
  0x16   : > { %p9308_p9 = pnand %p8195_p8, %p125_p3  ;;  %s399_s15 = sand.u32 1, %s9179_s24  }
  0x17   : > { %s10619_s5 = sld [smem:[#allocation17_spill]]  ;;  %s403_s19 = scalar_lea.vmem [#allocation8], %s10605_s13 }
  0x18   : > { %s410_s26 = sshll.u32 %s403_s19, 4  ;;  %s9325_s27 = scalar_lea.sflag [#allocation9], %s399_s15  ;;  %s9322_s26 = int_to_ptr.vmem [resolvable:$true] %s410_s26 }
  0x19   : > { %p9331_p12 = pneg %p9308_p9 }
  0x1d   : > { %s9318_s18 = scalar_lea.hbm %s10619_s5, %s10606_s12  ;;  %s9040_s19 = scalar_lea.hbm %s10619_s5, 16384 }
  0x1e   : > { %s9035_s10 = scalar_lea.hbm %s9318_s18, 8192  ;;  %p9041_p1 = scmp.lt.u32.totalorder %s9318_s18, %s10619_s5 }
  0x1f   : > { %p9036_p11 = scmp.ne.s32.totalorder %s9318_s18, %s9035_s10  ;;  %p9042_p2 = scmp.lt.u32.totalorder %s9040_s19, %s9035_s10 }
  0x20   : > { %p9044_p4 = scmp.lt.u32.totalorder %s9035_s10, %s9318_s18 }
  0x21   : > { %p9038_p13 = pnand %p9331_p12, %p9036_p11  ;;  %p9043_p3 = por %p9042_p2, %p9041_p1 }
  0x23   : > { %p9039_p0 = pneg %p9038_p13  ;;  %p9045_p5 = por %p9044_p4, %p9043_p3 }
  0x25   : > { %p9046_p6 = pnand %p9045_p5, %p9039_p0 }
  0x27   : > { %9049 = shalt.err (!%p9046_p6)
}
  0x28   : > { %s9050_s15 = scalar_lea.vmem %s9322_s26, 8192  ;;  %s9181_s16 = smov [#allocation8]  }
  0x29   : > { %p9051_p8 = scmp.ne.s32.totalorder %s9322_s26, %s9050_s15  ;;  %s9055_s17 = sshll.u32 %s9181_s16, 4  ;;  %s9056_s17 = int_to_ptr.vmem [resolvable:$false] %s9055_s17 }
  0x2a   : > { %s9057_s12 = scalar_lea.vmem %s9056_s17, 16384  ;;  %p9058_p10 = scmp.lt.s32.totalorder %s9322_s26, %s9056_s17 }
  0x2b   : > { %p9053_p11 = pnand %p9051_p8, %p9331_p12  ;;  %p9059_p7 = scmp.lt.s32.totalorder %s9057_s12, %s9050_s15 }
  0x2d   : > { %p9054_p13 = pneg %p9053_p11  ;;  %p9060_p1 = por %p9059_p7, %p9058_p10 }
  0x2f   : > { %p9061_p2 = pnand %p9060_p1, %p9054_p13 }
  0x31   : > { %9064 = shalt.err (!%p9061_p2)
}
  0x32   : > { %s10609_s10 = smov 128   ;;  %s10610_s13 = smov 8  }
  0x33   : > { %8191 = dma.hbm_to_vmem [thread:$0]  (!%p9308_p9), %s9318_s18, 8192, %s9322_s26, %s9325_s27, %s10609_s10, %s10609_s10, %s10610_s13  }
  0x34   : > { %p455_p7 = scmp.lt.s32.totalorder %s9179_s24, 3  ;;  %p10621_p10 = scmp.ge.s32.totalorder %s9179_s24, 1 }
  0x35   : > { %s10623_s15 = sshll.u32 %s9175_s23, 13  ;;  %s10624_s3 = sld [smem:[#allocation16_spill]] }
  0x36   : > { %p9361_p0 = pnand %p10621_p10, %p455_p7  ;;  %s10625_s5 = sshll.u32 %s9304_s30, 9 }
  0x37   : > { %s374_s29 = scalar_lea.vmem [#allocation6], %s10625_s5  ;;  %s6952_s18 = sshll.u32 %s9304_s30, 10 }
  0x38   : > { %s10622_s19 = scalar_select %p9361_p0, 1, 0 }
  0x39   : > { %s381_s21 = sshll.u32 %s374_s29, 4  ;;  %s371_s26 = scalar_lea.sflag [#allocation7], %s9304_s30  ;;  %s9374_s21 = int_to_ptr.vmem [resolvable:$true] %s381_s21 }
  0x3b   : > { %s9370_s12 = scalar_lea.hbm %s10624_s3, %s10623_s15  ;;  %s9070_s15 = scalar_lea.hbm %s10624_s3, 16384 }
  0x3c   : > { %s9065_s10 = scalar_lea.hbm %s9370_s12, 8192  ;;  %p9071_p6 = scmp.lt.u32.totalorder %s9370_s12, %s10624_s3 }
  0x3d   : > { %p9066_p3 = scmp.ne.s32.totalorder %s9370_s12, %s9065_s10  ;;  %p9072_p8 = scmp.lt.u32.totalorder %s9070_s15, %s9065_s10 }
  0x3e   : > { %p9074_p13 = scmp.lt.u32.totalorder %s9065_s10, %s9370_s12 }
  0x3f   : > { %p9068_p4 = pnand %p9066_p3, %p9331_p12  ;;  %p9073_p11 = por %p9072_p8, %p9071_p6 }
  0x41   : > { %p9069_p5 = pneg %p9068_p4  ;;  %p9075_p1 = por %p9074_p13, %p9073_p11 }
  0x43   : > { %p9076_p2 = pnand %p9075_p1, %p9069_p5 }
  0x45   : > { %9079 = shalt.err (!%p9076_p2)
}
  0x46   : > { %s9080_s5 = scalar_lea.vmem %s9374_s21, 8192  ;;  %s9184_s29 = smov [#allocation6]  }
  0x47   : > { %p9081_p7 = scmp.ne.s32.totalorder %s9374_s21, %s9080_s5  ;;  %s9085_s13 = sshll.u32 %s9184_s29, 4  ;;  %s9086_s13 = int_to_ptr.vmem [resolvable:$false] %s9085_s13 }
  0x48   : > { %s9087_s11 = scalar_lea.vmem %s9086_s13, 16384  ;;  %p9088_p4 = scmp.lt.s32.totalorder %s9374_s21, %s9086_s13 }
  0x49   : > { %p9083_p10 = pnand %p9081_p7, %p9331_p12  ;;  %p9089_p0 = scmp.lt.s32.totalorder %s9087_s11, %s9080_s5 }
  0x4b   : > { %p9084_p3 = pneg %p9083_p10  ;;  %p9090_p6 = por %p9089_p0, %p9088_p4 }
  0x4d   : > { %p9091_p8 = pnand %p9090_p6, %p9084_p3 }
  0x4f   : > { %9094 = shalt.err (!%p9091_p8)
}
  0x50   : > { %s9185_s10 = smov 64   ;;  %s9186_s16 = smov 4  }
  0x51   : > { %8188 = dma.hbm_to_vmem [thread:$0]  (!%p9308_p9), %s9370_s12, 8192, %s9374_s21, %s371_s26, %s9185_s10, %s9185_s10, %s9186_s16  }
  0x52   : > { %s7999_s15 = sshll.u32 %s9175_s23, 14  ;;  %s432_s13 = scalar_lea.vmem [#allocation10], %s6952_s18 }
  0x53   : > { %s9405_s5 = scalar_lea.hbm %s10598_s7, %s7999_s15  ;;  %s439_s11 = sshll.u32 %s432_s13, 4  ;;  %s9409_s11 = int_to_ptr.vmem [resolvable:$true] %s439_s11 }
  0x54   : > { %s9095_s3 = scalar_lea.hbm %s9405_s5, 16384  ;;  %s9100_s26 = scalar_lea.hbm %s10598_s7, 32768 }
  0x55   : > { %p9096_p0 = scmp.ne.s32.totalorder %s9405_s5, %s9095_s3  ;;  %p9101_p13 = scmp.lt.u32.totalorder %s9405_s5, %s10598_s7 }
  0x56   : > { %p9102_p1 = scmp.lt.u32.totalorder %s9100_s26, %s9095_s3  ;;  %p9104_p7 = scmp.lt.u32.totalorder %s9095_s3, %s9405_s5 }
  0x57   : > { %p9098_p5 = pnand %p9096_p0, %p9331_p12 }
  0x58   : > { %p9103_p2 = por %p9102_p1, %p9101_p13 }
  0x59   : > { %p9099_p11 = pneg %p9098_p5 }
  0x5a   : > { %p9105_p10 = por %p9104_p7, %p9103_p2 }
  0x5c   : > { %p9106_p3 = pnand %p9105_p10, %p9099_p11 }
  0x5e   : > { %9109 = shalt.err (!%p9106_p3)
}
  0x5f   : > { %s9110_s30 = scalar_lea.vmem %s9409_s11, 16384  ;;  %s9187_s18 = smov [#allocation10]  }
  0x60   : > { %p9111_p4 = scmp.ne.s32.totalorder %s9409_s11, %s9110_s30  ;;  %s9115_s15 = sshll.u32 %s9187_s18, 4  ;;  %s9116_s15 = int_to_ptr.vmem [resolvable:$false] %s9115_s15 }
  0x61   : > { %s9117_s17 = scalar_lea.vmem %s9116_s15, 32768  ;;  %p9118_p0 = scmp.lt.s32.totalorder %s9409_s11, %s9116_s15 }
  0x62   : > { %p9113_p6 = pnand %p9111_p4, %p9331_p12  ;;  %p9119_p5 = scmp.lt.s32.totalorder %s9117_s17, %s9110_s30 }
  0x64   : > { %p9114_p8 = pneg %p9113_p6  ;;  %p9120_p13 = por %p9119_p5, %p9118_p0 }
  0x66   : > { %p9121_p1 = pnand %p9120_p13, %p9114_p8 }
  0x68   : > { %9124 = shalt.err (!%p9121_p1)
}
  0x69   : > { %s10626_s3 = smov 8   ;;  %s10627_s29 = smov 128  }
  0x6a   : > { %8194 = dma.hbm_to_vmem [thread:$0]  (!%p9308_p9), %s9405_s5, 16384, %s9409_s11, %s9325_s27, %s10627_s29, %s10627_s29, %s10626_s3  }
  0x6b   : > { %p10628_p12 = scmp.ne.s32.totalorder %s10622_s19, 0 }
  0x6c   : > { %s461_s25 = sand.u32 (!%p10628_p12), 1, %s9163_s20   ;;  %p10629_p11 = scmp.ne.s32.totalorder (!%p10628_p12), %s10616_s28, 0 }
  0x6d   : > { %459 = sbr.rel (%p10628_p12) target bundleno = 10090 (0x276a), region = 64  ;;  %s6956_s13 = sshll.u32 (!%p10628_p12), %s461_s25, 9 }
  0x6e   : > { %s462_s21 = scalar_lea.sflag (!%p10628_p12), [#allocation7], %s461_s25  ;;  %s9439_s12 = scalar_lea.vmem (!%p10628_p12), [#allocation6], %s6956_s13 }
  0x74   : > { %9150 = dma.done.wait (%p10629_p11), %s462_s21, 8192  }
  0x75   : > { %9152 = vsyncadd (%p10629_p11), %s462_s21, 4294959104  ;;  %s10630_s14 = sadd.s32 4294967295, %s9179_s24   ;;  %s9447_s5 = scalar_lea.vmem [#allocation8], %s6956_s13 }
  0x76   : > { %s470_s26 = sand.u32 1, %s10630_s14  }
  0x77   : > { %s471_s27 = scalar_lea.sflag [#allocation9], %s470_s26 }
  0x78   : > { %9154 = dma.done.wait (%p10629_p11), %s471_s27, 24576  }
  0x79   : > { %9156 = vsyncadd (%p10629_p11), %s471_s27, 4294942720  ;;  %s6958_s19 = sshll.u32 %s461_s25, 10  ;;  %p554_p9 = scmp.lt.s32.totalorder %s9171_s22, 1 }
  0x7a   : > { %s9470_s25 = scalar_lea.vmem [#allocation10], %s6958_s19  ;;  %p6965_p2 = scmp.ne.s32.totalorder %s9171_s22, 0 }
  0x7b   : > { %s555_s11 = scalar_select %p554_p9, %s9171_s22, 1 }
  0x7c   : > { %577 = sbr.rel (%p6965_p2) target bundleno = 5226 (0x146a), region = 80  ;;  %v8251_v1 = vld [vmem:[%s10592_s1 + $0x4] ss:$8 sps:$4 sm:$0xff] (!%p6965_p2)   ;;  %v8253_v2 = vld [vmem:[%s10592_s1] ss:$8 sps:$4 sm:$0xff] (!%p6965_p2)   ;;  %v9188_v3 = vmov (!%p6965_p2), 0   ;;  %v602_v22 = vlaneseq (!%p6965_p2) }
  0x7d   : > { %s8000_s10 = sshll.u32 %s555_s11, 4  ;;  %s8001_s16 = sshll.u32 %s555_s11, 5  ;;  %732 = vmatprep.mubr.bf16.mxu0 (!%p6965_p2), %v9188_v3  ;;  %v9189_v4 = vmov (!%p6965_p2), 0.0   ;;  %700 = vmatprep.subr.bf16.mxu0 (!%p6965_p2), %v8251_v1  ;;  %v8254_v5 = vld [vmem:[%s10592_s1 + $0x14] ss:$8 sps:$4 sm:$0xff] (!%p6965_p2)   ;;  %vm580_vm0 = vcmask (!%p6965_p2), 310272  }
  0x7e   : > { %s9458_s15 = scalar_lea.vmem %s10595_s4, %s8000_s10  ;;  %s9463_s29 = scalar_lea.vmem %s10597_s6, %s8001_s16  ;;  %578 = vst [vmem:[#allocation2] sm:$0xff] (!%p6965_p2), %v9189_v4  ;;  %701 = vmatpush1.bf16.msra.mxu0 (!%p6965_p2), %v8253_v2  ;;  %v8256_v6 = vld [vmem:[%s10592_s1 + $0x10] ss:$8 sps:$4 sm:$0xff] (!%p6965_p2)   ;;  %v8257_v7 = vld [vmem:[%s10592_s1 + $0x24] ss:$8 sps:$4 sm:$0xff] (!%p6965_p2)   ;;  %v603_v23 = vshrl.u32 (!%p6965_p2), %v602_v22, 7 }
  0x7f   : > { %s9468_s21 = scalar_lea.vmem %s10599_s8, %s8001_s16  ;;  %702 = vmatprep.subr.bf16.mxu0 (!%p6965_p2), %v8254_v5  ;;  %v8259_v8 = vld [vmem:[%s10592_s1 + $0x20] ss:$8 sps:$4 sm:$0xff] (!%p6965_p2)   ;;  %v8260_v9 = vld [vmem:[%s10592_s1 + $0x34] ss:$8 sps:$4 sm:$0xff] (!%p6965_p2)   ;;  %v8262_v10 = vld [vmem:[%s10592_s1 + $0x30] ss:$8 sps:$4 sm:$0xff] (!%p6965_p2)  }
  0x80   : > { %v579_v11 = vld [vmem:[%s10591_s0] sm:$0xff] (!%p6965_p2)  ;;  %v8266_v14 = vld [vmem:[%s10592_s1 + $0x54] ss:$8 sps:$4 sm:$0xff] (!%p6965_p2)   ;;  %v8268_v15 = vld [vmem:[%s10592_s1 + $0x50] ss:$8 sps:$4 sm:$0xff] (!%p6965_p2)   ;;  %v9526_v24 = vsub.s32 (!%p6965_p2), 0, %v603_v23 }
  0x81   : > { %v8263_v12 = vld [vmem:[%s10592_s1 + $0x44] ss:$8 sps:$4 sm:$0xff] (!%p6965_p2)   ;;  %581 = vst.msk [vmem:[#allocation2] sm:$0xff] (!%p6965_p2), %vm580_vm0, %v579_v11  ;;  %v8265_v13 = vld [vmem:[%s10592_s1 + $0x40] ss:$8 sps:$4 sm:$0xff] (!%p6965_p2)   ;;  %v9533_v26 = vsub.s32 (!%p6965_p2), 4, %v603_v23 }
  0x82   : > { %703 = vmatpush1.bf16.msra.mxu0 (!%p6965_p2), %v8256_v6  ;;  %v8269_v16 = vld [vmem:[%s10592_s1 + $0x64] ss:$8 sps:$4 sm:$0xff] (!%p6965_p2)   ;;  %v8271_v17 = vld [vmem:[%s10592_s1 + $0x60] ss:$8 sps:$4 sm:$0xff] (!%p6965_p2)   ;;  %v8272_v18 = vld [vmem:[%s10592_s1 + $0x74] ss:$8 sps:$4 sm:$0xff] (!%p6965_p2)  }
  0x83   : > { %704 = vmatprep.subr.bf16.mxu0 %v8257_v7  ;;  %v8274_v19 = vld [vmem:[%s10592_s1 + $0x70] ss:$8 sps:$4 sm:$0xff]   ;;  %v9531_v25 = vld [vmem:[%s10593_s2] sm:$0x77]  ;;  %v9567_v0 = vsub.s32 1, %v603_v23  ;;  %v9569_v1 = vsub.s32 5, %v603_v23 }
  0x84   : > { %v605_v27 = vrot.slane %v9531_v25, %v9526_v24  ;;  %v609_v28 = vrot.slane %v9531_v25, %v9533_v26  ;;  %v8275_v41 = vld [vmem:[%s9439_s12 + $0x40] sm:$0xff]   ;;  %v8277_v43 = vld [vmem:[%s9439_s12 + $0x48] sm:$0xff]   ;;  %v8279_v45 = vld [vmem:[%s9439_s12 + $0x50] sm:$0xff]   ;;  %v9571_v2 = vsub.s32 2, %v603_v23  ;;  %v9573_v4 = vsub.s32 6, %v603_v23 }
  0x85   : > { %v8276_v42 = vld [vmem:[%s9439_s12] sm:$0xff]   ;;  %8003 = vmatprep.subr.bf16.mxu1 %v8275_v41  ;;  %v8278_v44 = vld [vmem:[%s9439_s12 + $0x8] sm:$0xff]   ;;  %v8280_v46 = vld [vmem:[%s9439_s12 + $0x10] sm:$0xff]   ;;  %v762_v5 = vrot.slane %v9531_v25, %v9567_v0  ;;  %v766_v6 = vrot.slane %v9531_v25, %v9569_v1 }
  0x86   : > { %705 = vmatpush1.bf16.msra.mxu0 %v8259_v8  ;;  %v615_v29 = vrot.slane %v605_v27, %v9526_v24  ;;  %v619_v30 = vrot.slane %v609_v28, %v9526_v24  ;;  %8004 = vmatpush3.bf16.msra.mxu1 %v8276_v42  ;;  %v8281_v47 = vld [vmem:[%s9439_s12 + $0x58] sm:$0xff]   ;;  %v8283_v49 = vld [vmem:[%s9439_s12 + $0x60] sm:$0xff]   ;;  %v8285_v51 = vld [vmem:[%s9439_s12 + $0x68] sm:$0xff]   ;;  %v786_v7 = vrot.slane %v9531_v25, %v9573_v4 }
  0x87   : > { %706 = vmatprep.subr.bf16.mxu0 %v8260_v9  ;;  %8005 = vmatprep.subr.bf16.mxu1 %v8277_v43  ;;  %v8282_v48 = vld [vmem:[%s9439_s12 + $0x18] sm:$0xff]   ;;  %v8284_v50 = vld [vmem:[%s9439_s12 + $0x20] sm:$0xff]   ;;  %v8286_v52 = vld [vmem:[%s9439_s12 + $0x28] sm:$0xff]   ;;  %v782_v8 = vrot.slane %v9531_v25, %v9571_v2  ;;  %v772_v11 = vrot.slane %v762_v5, %v9567_v0 }
  0x88   : > { %v582_v20 = vld [vmem:[#allocation2] sm:$0xff]  ;;  %v8291_v28 = vld [vmem:[%s9447_s5] ss:$8 sps:$4 sm:$0xff]   ;;  %v8299_v41 = vld [vmem:[%s9447_s5 + $0x24] ss:$8 sps:$4 sm:$0xff]  }
  0x89   : > { %v600_v21 = vpack.c.bf16 %v582_v20, %v582_v20  ;;  %v8287_v53 = vld [vmem:[%s9439_s12 + $0x70] sm:$0xff]   ;;  %v8289_v55 = vld [vmem:[%s9439_s12 + $0x78] sm:$0xff]   ;;  %v8297_v42 = vld [vmem:[%s9447_s5 + $0x20] ss:$8 sps:$4 sm:$0xff]  }
  0x8a   : > { %707 = vmatpush1.bf16.msra.mxu0 %v8262_v10  ;;  %8006 = vmatpush3.bf16.msra.mxu1 %v8278_v44  ;;  %v8288_v54 = vld [vmem:[%s9439_s12 + $0x30] sm:$0xff]   ;;  %v8290_v56 = vld [vmem:[%s9439_s12 + $0x38] sm:$0xff]  }
  0x8b   : > { %708 = vmatprep.subr.bf16.mxu0 %v8263_v12  ;;  %8007 = vmatprep.subr.bf16.mxu1 %v8279_v45  ;;  %v776_v12 = vrot.slane %v766_v6, %v9567_v0  ;;  %v8302_v43 = vld [vmem:[%s9447_s5 + $0x34] ss:$8 sps:$4 sm:$0xff]   ;;  %v8300_v44 = vld [vmem:[%s9447_s5 + $0x30] ss:$8 sps:$4 sm:$0xff]   ;;  %v8305_v45 = vld [vmem:[%s9447_s5 + $0x44] ss:$8 sps:$4 sm:$0xff]  }
  0x8e   : > { %709 = vmatpush1.bf16.msra.mxu0 %v8265_v13  ;;  %8008 = vmatpush3.bf16.msra.mxu1 %v8280_v46  ;;  %v8303_v46 = vld [vmem:[%s9447_s5 + $0x40] ss:$8 sps:$4 sm:$0xff]  }
  0x8f   : > { %710 = vmatprep.subr.bf16.mxu0 %v8266_v14  ;;  %8009 = vmatprep.subr.bf16.mxu1 %v8281_v47  ;;  %v8308_v47 = vld [vmem:[%s9447_s5 + $0x54] ss:$8 sps:$4 sm:$0xff]  }
  0x92   : > { %711 = vmatpush1.bf16.msra.mxu0 %v8268_v15  ;;  %8010 = vmatpush3.bf16.msra.mxu1 %v8282_v48  ;;  %v8306_v48 = vld [vmem:[%s9447_s5 + $0x50] ss:$8 sps:$4 sm:$0xff]  }
  0x93   : > { %712 = vmatprep.subr.bf16.mxu0 %v8269_v16  ;;  %8011 = vmatprep.subr.bf16.mxu1 %v8283_v49  ;;  %v796_v16 = vrot.slane %v786_v7, %v9571_v2  ;;  %v8311_v49 = vld [vmem:[%s9447_s5 + $0x64] ss:$8 sps:$4 sm:$0xff]  }
  0x96   : > { %713 = vmatpush1.bf16.msra.mxu0 %v8271_v17  ;;  %8012 = vmatpush3.bf16.msra.mxu1 %v8284_v50  ;;  %v792_v17 = vrot.slane %v782_v8, %v9571_v2  ;;  %v8309_v50 = vld [vmem:[%s9447_s5 + $0x60] ss:$8 sps:$4 sm:$0xff]  }
  0x97   : > { %714 = vmatprep.subr.bf16.mxu0 %v8272_v18  ;;  %8013 = vmatprep.subr.bf16.mxu1 %v8285_v51  ;;  %v8314_v51 = vld [vmem:[%s9447_s5 + $0x74] ss:$8 sps:$4 sm:$0xff]  }
  0x9a   : > { %715 = vmatpush1.bf16.msra.mxu0 %v8274_v19  ;;  %8014 = vmatpush3.bf16.msra.mxu1 %v8286_v52  ;;  %v8312_v52 = vld [vmem:[%s9447_s5 + $0x70] ss:$8 sps:$4 sm:$0xff]  }
  0x9b   : > { %8015 = vmatprep.subr.bf16.mxu1 %v8287_v53 }
  0x9d   : > { %733 = vmatmul.mubr.bf16.vlgmr.msra.gmra.mrb[0].mxu0 %v600_v21 }
  0x9e   : > { %1130 = vmatprep.mubr.bf16.mxu0 %v9188_v3  ;;  %8016 = vmatpush3.bf16.msra.mxu1 %v8288_v54 }
  0x9f   : > { %8017 = vmatprep.subr.bf16.mxu1 %v8289_v55 }
  0xa2   : > { %8018 = vmatpush3.bf16.msra.mxu1 %v8290_v56 }
 0x170   : > { %v734_v31 = vpop.f32.mrb[0].mxu0 }
 0x171   : > { %v9541_v32 = vadd.f32 %v734_v31, %v615_v29  ;;  %v736_v33 = vpop.f32.mrb[1].mxu0  ;;  %v8293_v29 = vld [vmem:[%s9447_s5 + $0x4] ss:$8 sps:$4 sm:$0xff]  }
 0x172   : > { %v9543_v34 = vadd.f32 %v736_v33, %v619_v30  ;;  %v738_v35 = vpop.f32.mrb[2].mxu0  ;;  %1098 = vmatprep.subr.bf16.mxu0 %v8293_v29  ;;  %v801_v30 = vld [vmem:[%s9458_s15] sm:$0x7] }
 0x173   : > { %v739_v36 = vpop.f32.mrb[3].mxu0  ;;  %v744_v38 = vmul.f32 %v9541_v32, %v9541_v32  ;;  %1099 = vmatpush1.bf16.msra.mxu0 %v8291_v28  ;;  %v8338_v28 = vld [vmem:[%s9470_s25 + $0x74] ss:$8 sps:$4 sm:$0xff]   ;;  %v8336_v29 = vld [vmem:[%s9470_s25 + $0x70] ss:$8 sps:$4 sm:$0xff]  }
 0x174   : > { %v741_v37 = vadd.f32 %v9543_v34, %v9541_v32  ;;  %v745_v39 = vmul.f32 %v9543_v34, %v9543_v34 }
 0x176   : > { %742 = vadd.xlane.f32.xlu0 %v741_v37  ;;  %v746_v40 = vadd.f32 %v745_v39, %v744_v38  ;;  %v8296_v39 = vld [vmem:[%s9447_s5 + $0x14] ss:$8 sps:$4 sm:$0xff]  }
 0x177   : > { %1100 = vmatprep.subr.bf16.mxu0 %v8296_v39 }
 0x17a   : > { %747 = vadd.xlane.f32.xlu0 %v746_v40  ;;  %v8294_v40 = vld [vmem:[%s9447_s5 + $0x10] ss:$8 sps:$4 sm:$0xff]  }
 0x17b   : > { %1101 = vmatpush1.bf16.msra.mxu0 %v8294_v40 }
 0x17c   : > { %1102 = vmatprep.subr.bf16.mxu0 %v8299_v41 }
 0x17f   : > { %1103 = vmatpush1.bf16.msra.mxu0 %v8297_v42 }
 0x180   : > { %1104 = vmatprep.subr.bf16.mxu0 %v8302_v43 }
 0x183   : > { %1105 = vmatpush1.bf16.msra.mxu0 %v8300_v44 }
 0x184   : > { %1106 = vmatprep.subr.bf16.mxu0 %v8305_v45 }
 0x187   : > { %1107 = vmatpush1.bf16.msra.mxu0 %v8303_v46 }
 0x188   : > { %1108 = vmatprep.subr.bf16.mxu0 %v8308_v47 }
 0x18b   : > { %1109 = vmatpush1.bf16.msra.mxu0 %v8306_v48 }
 0x18c   : > { %1110 = vmatprep.subr.bf16.mxu0 %v8311_v49  ;;  %v8344_v49 = vld [vmem:[%s9470_s25 + $0x94] ss:$8 sps:$4 sm:$0xff]  }
 0x18f   : > { %1111 = vmatpush1.bf16.msra.mxu0 %v8309_v50  ;;  %v8342_v50 = vld [vmem:[%s9470_s25 + $0x90] ss:$8 sps:$4 sm:$0xff]  }
 0x190   : > { %1112 = vmatprep.subr.bf16.mxu0 %v8314_v51  ;;  %v8347_v51 = vld [vmem:[%s9470_s25 + $0xa4] ss:$8 sps:$4 sm:$0xff]  }
 0x193   : > { %1113 = vmatpush1.bf16.msra.mxu0 %v8312_v52  ;;  %v8345_v52 = vld [vmem:[%s9470_s25 + $0xa0] ss:$8 sps:$4 sm:$0xff]  }
 0x203   : > { %v743_v57 = vpop.xlane.xlu0 %742 }
 0x204   : > { %v749_v58 = vmul.f32 0.00390625, %v743_v57 }
 0x206   : > { %v751_v60 = vmul.f32 %v749_v58, %v749_v58  ;;  %v753_v9 = vsub.f32 %v9541_v32, %v749_v58  ;;  %v754_v10 = vsub.f32 %v9543_v34, %v749_v58  ;;  %v840_v32 = vrot.slane %v801_v30, %v9526_v24 }
 0x207   : > { %v748_v59 = vpop.xlane.xlu0 %747 }
 0x208   : > { %v750_v61 = vmul.f32 0.00390625, %v748_v59 }
 0x20a   : > { %v752_v62 = vsub.f32 %v750_v61, %v751_v60  ;;  %v993_v60 = vrot.slane %v801_v30, %v9567_v0 }
 0x20c   : > { %v755_v63 = vadd.f32 1e-05, %v752_v62 }
 0x20e   : > { %8627 = vrsqrt.f32 %v755_v63  ;;  %v998_v63 = vrot.slane %v801_v30, %v9571_v2  ;;  %v8341_v30 = vld [vmem:[%s9470_s25 + $0x84] ss:$8 sps:$4 sm:$0xff]  }
 0x218   : > { %v8628_v13 = vpop.eup %8627 }
 0x219   : > { %v757_v14 = vmul.f32 %v8628_v13, %v753_v9  ;;  %v758_v15 = vmul.f32 %v8628_v13, %v754_v10  ;;  %v8315_v10 = vld [vmem:[%s9470_s25] ss:$8 sps:$4 sm:$0xff]   ;;  %v8318_v13 = vld [vmem:[%s9470_s25 + $0x10] ss:$8 sps:$4 sm:$0xff]  }
 0x21b   : > { %v777_v18 = vmul.f32 %v772_v11, %v757_v14  ;;  %v778_v19 = vmul.f32 %v776_v12, %v758_v15  ;;  %v8317_v11 = vld [vmem:[%s9470_s25 + $0x4] ss:$8 sps:$4 sm:$0xff]   ;;  %v8320_v12 = vld [vmem:[%s9470_s25 + $0x14] ss:$8 sps:$4 sm:$0xff]   ;;  %v8321_v15 = vld [vmem:[%s9470_s25 + $0x20] ss:$8 sps:$4 sm:$0xff]  }
 0x21c   : > { %1436 = vmatprep.subr.bf16.mxu1 %v8317_v11  ;;  %v8323_v14 = vld [vmem:[%s9470_s25 + $0x24] ss:$8 sps:$4 sm:$0xff]  }
 0x21d   : > { %v798_v20 = vadd.f32 %v796_v16, %v778_v19  ;;  %v797_v21 = vadd.f32 %v792_v17, %v777_v18  ;;  %v8326_v16 = vld [vmem:[%s9470_s25 + $0x34] ss:$8 sps:$4 sm:$0xff]   ;;  %v8324_v17 = vld [vmem:[%s9470_s25 + $0x30] ss:$8 sps:$4 sm:$0xff]   ;;  %v8329_v18 = vld [vmem:[%s9470_s25 + $0x44] ss:$8 sps:$4 sm:$0xff]  }
 0x21e   : > { %v8327_v19 = vld [vmem:[%s9470_s25 + $0x40] ss:$8 sps:$4 sm:$0xff]  }
 0x21f   : > { %v9589_v22 = vmax.f32 %v798_v20, 0.0  ;;  %v9591_v23 = vmax.f32 %v797_v21, 0.0  ;;  %v8332_v20 = vld [vmem:[%s9470_s25 + $0x54] ss:$8 sps:$4 sm:$0xff]   ;;  %v8330_v21 = vld [vmem:[%s9470_s25 + $0x50] ss:$8 sps:$4 sm:$0xff]  }
 0x221   : > { %v836_v25 = vpack.c.bf16 %v9589_v22, %v9589_v22  ;;  %3772 = vst [vmem:[#allocation4 + $0x8] sm:$0xff] %v9589_v22  ;;  %v835_v27 = vpack.c.bf16 %v9591_v23, %v9591_v23  ;;  %3771 = vst [vmem:[#allocation4] sm:$0xff] %v9591_v23 }
 0x223   : > { %969 = vmatprep.mubr.bf16.mxu1 %v836_v25  ;;  %v8335_v25 = vld [vmem:[%s9470_s25 + $0x64] ss:$8 sps:$4 sm:$0xff]  }
 0x224   : > { %970 = vmatmul.mubr.bf16.vlgmr.msra.gmra.mrb[0].mxu1 %v835_v27  ;;  %v8333_v27 = vld [vmem:[%s9470_s25 + $0x60] ss:$8 sps:$4 sm:$0xff]  }
 0x225   : > { %1437 = vmatpush1.bf16.msra.mxu1 %v8315_v10 }
 0x226   : > { %1438 = vmatprep.subr.bf16.mxu1 %v8320_v12 }
 0x229   : > { %1439 = vmatpush1.bf16.msra.mxu1 %v8318_v13 }
 0x22a   : > { %1440 = vmatprep.subr.bf16.mxu1 %v8323_v14 }
 0x22d   : > { %1441 = vmatpush1.bf16.msra.mxu1 %v8321_v15 }
 0x22e   : > { %1442 = vmatprep.subr.bf16.mxu1 %v8326_v16 }
 0x231   : > { %1443 = vmatpush1.bf16.msra.mxu1 %v8324_v17 }
 0x232   : > { %1444 = vmatprep.subr.bf16.mxu1 %v8329_v18 }
 0x235   : > { %1445 = vmatpush1.bf16.msra.mxu1 %v8327_v19 }
 0x236   : > { %1446 = vmatprep.subr.bf16.mxu1 %v8332_v20 }
 0x239   : > { %1447 = vmatpush1.bf16.msra.mxu1 %v8330_v21 }
 0x23a   : > { %1448 = vmatprep.subr.bf16.mxu1 %v8335_v25 }
 0x23d   : > { %1449 = vmatpush1.bf16.msra.mxu1 %v8333_v27 }
 0x23e   : > { %1450 = vmatprep.subr.bf16.mxu1 %v8338_v28 }
 0x241   : > { %1451 = vmatpush1.bf16.msra.mxu1 %v8336_v29 }
 0x242   : > { %1452 = vmatprep.subr.bf16.mxu1 %v8341_v30 }
 0x2f7   : > { %v8019_v31 = vpop.f32.mrb[0].mxu1 }
 0x2f8   : > { %v8020_v33 = vpop.f32.mrb[1].mxu1 }
 0x2f9   : > { %v8021_v34 = vadd.f32 %v8020_v33, %v8019_v31  ;;  %v8022_v35 = vpop.f32.mrb[2].mxu1  ;;  %v8339_v31 = vld [vmem:[%s9470_s25 + $0x80] ss:$8 sps:$4 sm:$0xff]  }
 0x2fa   : > { %v8023_v36 = vpop.f32.mrb[3].mxu1  ;;  %1453 = vmatpush1.bf16.msra.mxu1 %v8339_v31 }
 0x2fb   : > { %v972_v37 = vadd.f32 %v8021_v34, %v840_v32  ;;  %v9638_v32 = vld [vmem:[%s9463_s29] sm:$0x77]  ;;  %1454 = vmatprep.subr.bf16.mxu1 %v8344_v49 }
 0x2fc   : > { %v1145_v33 = vrot.slane %v9638_v32, %v9526_v24  ;;  %v1149_v34 = vrot.slane %v9638_v32, %v9533_v26  ;;  %v1187_v11 = vrot.slane %v9638_v32, %v9569_v1  ;;  %v1183_v12 = vrot.slane %v9638_v32, %v9567_v0 }
 0x2fd   : > { %977 = vadd.xlane.f32.xlu1 %v972_v37  ;;  %v979_v38 = vmul.f32 %v972_v37, %v972_v37  ;;  %v1207_v13 = vrot.slane %v9638_v32, %v9573_v4  ;;  %v1203_v14 = vrot.slane %v9638_v32, %v9571_v2 }
 0x2fe   : > { %v1155_v35 = vrot.slane %v1145_v33, %v9526_v24  ;;  %1455 = vmatpush1.bf16.msra.mxu1 %v8342_v50  ;;  %v1197_v17 = vrot.slane %v1187_v11, %v9567_v0  ;;  %v1193_v18 = vrot.slane %v1183_v12, %v9567_v0 }
 0x2ff   : > { %1456 = vmatprep.subr.bf16.mxu1 %v8347_v51  ;;  %v1217_v21 = vrot.slane %v1207_v13, %v9571_v2  ;;  %v1213_v27 = vrot.slane %v1203_v14, %v9571_v2 }
 0x301   : > { %980 = vadd.xlane.f32.xlu1 %v979_v38 }
 0x302   : > { %1457 = vmatpush1.bf16.msra.mxu1 %v8345_v52 }
 0x38a   : > { %v978_v53 = vpop.xlane.xlu1 %977 }
 0x38b   : > { %v982_v54 = vmul.f32 0.0078125, %v978_v53  ;;  %v8348_v53 = vld [vmem:[%s9470_s25 + $0xb0] ss:$8 sps:$4 sm:$0xff]  }
 0x38d   : > { %v984_v56 = vmul.f32 %v982_v54, %v982_v54  ;;  %v986_v61 = vsub.f32 %v972_v37, %v982_v54  ;;  %v1159_v37 = vrot.slane %v1149_v34, %v9526_v24  ;;  %v8350_v54 = vld [vmem:[%s9470_s25 + $0xb4] ss:$8 sps:$4 sm:$0xff]  }
 0x38e   : > { %v981_v55 = vpop.xlane.xlu1 %980  ;;  %1458 = vmatprep.subr.bf16.mxu1 %v8350_v54  ;;  %v8366_v54 = vld [vmem:[%s9439_s12 + $0x88] sm:$0xff]  }
 0x38f   : > { %v983_v57 = vmul.f32 0.0078125, %v981_v55  ;;  %v8353_v55 = vld [vmem:[%s9470_s25 + $0xc4] ss:$8 sps:$4 sm:$0xff]   ;;  %1459 = vmatpush1.bf16.msra.mxu1 %v8348_v53 }
 0x390   : > { %1460 = vmatprep.subr.bf16.mxu1 %v8353_v55  ;;  %v8365_v53 = vld [vmem:[%s9439_s12 + $0xc8] sm:$0xff]   ;;  %v8367_v55 = vld [vmem:[%s9439_s12 + $0xd0] sm:$0xff]  }
 0x391   : > { %v985_v58 = vsub.f32 %v983_v57, %v984_v56  ;;  %v8351_v56 = vld [vmem:[%s9470_s25 + $0xc0] ss:$8 sps:$4 sm:$0xff]   ;;  %v8356_v57 = vld [vmem:[%s9470_s25 + $0xd4] ss:$8 sps:$4 sm:$0xff]  }
 0x393   : > { %v987_v59 = vadd.f32 1e-05, %v985_v58  ;;  %1461 = vmatpush1.bf16.msra.mxu1 %v8351_v56  ;;  %v8354_v58 = vld [vmem:[%s9470_s25 + $0xd0] ss:$8 sps:$4 sm:$0xff]  }
 0x394   : > { %1462 = vmatprep.subr.bf16.mxu1 %v8356_v57  ;;  %v8368_v56 = vld [vmem:[%s9439_s12 + $0x90] sm:$0xff]   ;;  %v8369_v57 = vld [vmem:[%s9439_s12 + $0xd8] sm:$0xff]  }
 0x395   : > { %8629 = vrsqrt.f32 %v987_v59  ;;  %v8359_v59 = vld [vmem:[%s9470_s25 + $0xe4] ss:$8 sps:$4 sm:$0xff]  }
 0x397   : > { %1463 = vmatpush1.bf16.msra.mxu1 %v8354_v58  ;;  %v8370_v58 = vld [vmem:[%s9439_s12 + $0x98] sm:$0xff]  }
 0x398   : > { %1464 = vmatprep.subr.bf16.mxu1 %v8359_v59  ;;  %v8371_v59 = vld [vmem:[%s9439_s12 + $0xe0] sm:$0xff]  }
 0x39f   : > { %v8630_v62 = vpop.eup %8629 }
 0x3a0   : > { %v989_v5 = vmul.f32 %v8630_v62, %v986_v61  ;;  %v8362_v61 = vld [vmem:[%s9470_s25 + $0xf4] ss:$8 sps:$4 sm:$0xff]   ;;  %v8360_v62 = vld [vmem:[%s9470_s25 + $0xf0] ss:$8 sps:$4 sm:$0xff]  }
 0x3a2   : > { %v994_v6 = vmul.f32 %v993_v60, %v989_v5  ;;  %v8357_v60 = vld [vmem:[%s9470_s25 + $0xe0] ss:$8 sps:$4 sm:$0xff]  }
 0x3a3   : > { %1465 = vmatpush1.bf16.msra.mxu1 %v8357_v60  ;;  %v8372_v60 = vld [vmem:[%s9439_s12 + $0xa0] sm:$0xff]  }
 0x3a4   : > { %v999_v7 = vadd.f32 %v998_v63, %v994_v6  ;;  %1466 = vmatprep.subr.bf16.mxu1 %v8362_v61  ;;  %v8373_v61 = vld [vmem:[%s9439_s12 + $0xe8] sm:$0xff]  }
 0x3a6   : > { %v1000_v8 = vmax.f32 %v999_v7, 0.0 }
 0x3a7   : > { %1467 = vmatpush1.bf16.msra.mxu1 %v8360_v62  ;;  %v8374_v62 = vld [vmem:[%s9439_s12 + $0xa8] sm:$0xff]  }
 0x3a8   : > { %v1017_v9 = vpack.c.bf16 %v1000_v8, %v1000_v8 }
 0x3aa   : > { %1131 = vmatmul.mubr.bf16.vlgmr.msra.gmra.mrb[4].mxu0 %v1017_v9 }
 0x47d   : > { %v1132_v36 = vpop.f32.mrb[4].mxu0 }
 0x47e   : > { %v1139_v38 = vadd.f32 %v1132_v36, %v9591_v23  ;;  %v1134_v39 = vpop.f32.mrb[5].mxu0  ;;  %v8363_v36 = vld [vmem:[%s9439_s12 + $0xc0] sm:$0xff]  }
 0x47f   : > { %v1140_v40 = vadd.f32 %v1134_v39, %v9589_v22  ;;  %v1136_v41 = vpop.f32.mrb[6].mxu0  ;;  %8025 = vmatprep.subr.bf16.mxu0 %v8363_v36 }
 0x480   : > { %v1160_v42 = vadd.f32 %v1155_v35, %v1139_v38  ;;  %v1137_v43 = vpop.f32.mrb[7].mxu0  ;;  %v9677_v38 = vld [vmem:[%s9468_s21] sm:$0x77] }
 0x481   : > { %v1161_v44 = vadd.f32 %v1159_v37, %v1140_v40  ;;  %v8364_v37 = vld [vmem:[%s9439_s12 + $0x80] sm:$0xff]   ;;  %v1261_v39 = vrot.slane %v9677_v38, %v9526_v24  ;;  %v1265_v40 = vrot.slane %v9677_v38, %v9533_v26 }
 0x482   : > { %v1165_v45 = vmul.f32 %v1160_v42, %v1160_v42  ;;  %8026 = vmatpush3.bf16.msra.mxu0 %v8364_v37 }
 0x483   : > { %v1162_v46 = vadd.f32 %v1161_v44, %v1160_v42  ;;  %v1166_v47 = vmul.f32 %v1161_v44, %v1161_v44  ;;  %v1271_v41 = vrot.slane %v1261_v39, %v9526_v24  ;;  %8027 = vmatprep.subr.bf16.mxu0 %v8365_v53  ;;  %v8387_v53 = vld [vmem:[%s9447_s5 + $0xa4] ss:$8 sps:$4 sm:$0xff]  }
 0x485   : > { %1163 = vadd.xlane.f32.xlu0 %v1162_v46  ;;  %v1167_v48 = vadd.f32 %v1166_v47, %v1165_v45 }
 0x486   : > { %8028 = vmatpush3.bf16.msra.mxu0 %v8366_v54  ;;  %v8385_v54 = vld [vmem:[%s9447_s5 + $0xa0] ss:$8 sps:$4 sm:$0xff]  }
 0x487   : > { %1168 = vadd.xlane.f32.xlu1 %v1167_v48  ;;  %8029 = vmatprep.subr.bf16.mxu0 %v8367_v55  ;;  %v8390_v55 = vld [vmem:[%s9447_s5 + $0xb4] ss:$8 sps:$4 sm:$0xff]  }
 0x48a   : > { %8030 = vmatpush3.bf16.msra.mxu0 %v8368_v56  ;;  %v8388_v56 = vld [vmem:[%s9447_s5 + $0xb0] ss:$8 sps:$4 sm:$0xff]  }
 0x48b   : > { %8031 = vmatprep.subr.bf16.mxu0 %v8369_v57  ;;  %v8393_v57 = vld [vmem:[%s9447_s5 + $0xc4] ss:$8 sps:$4 sm:$0xff]  }
 0x48e   : > { %8032 = vmatpush3.bf16.msra.mxu0 %v8370_v58  ;;  %v8391_v58 = vld [vmem:[%s9447_s5 + $0xc0] ss:$8 sps:$4 sm:$0xff]  }
 0x48f   : > { %8033 = vmatprep.subr.bf16.mxu0 %v8371_v59  ;;  %v8396_v59 = vld [vmem:[%s9447_s5 + $0xd4] ss:$8 sps:$4 sm:$0xff]  }
 0x492   : > { %8034 = vmatpush3.bf16.msra.mxu0 %v8372_v60  ;;  %v8394_v60 = vld [vmem:[%s9447_s5 + $0xd0] ss:$8 sps:$4 sm:$0xff]  }
 0x493   : > { %8035 = vmatprep.subr.bf16.mxu0 %v8373_v61  ;;  %v8399_v61 = vld [vmem:[%s9447_s5 + $0xe4] ss:$8 sps:$4 sm:$0xff]  }
 0x496   : > { %8036 = vmatpush3.bf16.msra.mxu0 %v8374_v62  ;;  %v8397_v62 = vld [vmem:[%s9447_s5 + $0xe0] ss:$8 sps:$4 sm:$0xff]  }
 0x512   : > { %v1164_v63 = vpop.xlane.xlu0 %1163 }
 0x513   : > { %v1170_v5 = vmul.f32 0.00390625, %v1164_v63  ;;  %v8375_v63 = vld [vmem:[%s9439_s12 + $0xf0] sm:$0xff]  }
 0x514   : > { %v1169_v6 = vpop.xlane.xlu1 %1168  ;;  %8037 = vmatprep.subr.bf16.mxu0 %v8375_v63  ;;  %v8402_v63 = vld [vmem:[%s9447_s5 + $0xf4] ss:$8 sps:$4 sm:$0xff]  }
 0x515   : > { %v1171_v7 = vmul.f32 0.00390625, %v1169_v6  ;;  %v1172_v8 = vmul.f32 %v1170_v5, %v1170_v5  ;;  %v1174_v15 = vsub.f32 %v1160_v42, %v1170_v5  ;;  %v1175_v16 = vsub.f32 %v1161_v44, %v1170_v5  ;;  %v8376_v5 = vld [vmem:[%s9439_s12 + $0xb0] sm:$0xff]   ;;  %v8377_v6 = vld [vmem:[%s9439_s12 + $0xf8] sm:$0xff]  }
 0x516   : > { %v1275_v42 = vrot.slane %v1265_v40, %v9526_v24  ;;  %8038 = vmatpush3.bf16.msra.mxu0 %v8376_v5  ;;  %v8379_v40 = vld [vmem:[%s9447_s5 + $0x80] ss:$8 sps:$4 sm:$0xff]   ;;  %v8400_v5 = vld [vmem:[%s9447_s5 + $0xf0] ss:$8 sps:$4 sm:$0xff]  }
 0x517   : > { %v1173_v9 = vsub.f32 %v1171_v7, %v1172_v8  ;;  %v8378_v7 = vld [vmem:[%s9439_s12 + $0xb8] sm:$0xff]   ;;  %8039 = vmatprep.subr.bf16.mxu0 %v8377_v6 }
 0x519   : > { %v1176_v10 = vadd.f32 1e-05, %v1173_v9 }
 0x51a   : > { %8040 = vmatpush3.bf16.msra.mxu0 %v8378_v7 }
 0x51b   : > { %8631 = vrsqrt.f32 %v1176_v10 }
 0x525   : > { %v8632_v19 = vpop.eup %8631 }
 0x526   : > { %v1179_v20 = vmul.f32 %v8632_v19, %v1175_v16  ;;  %v1178_v25 = vmul.f32 %v8632_v19, %v1174_v15  ;;  %v1502_v15 = vrot.slane %v9677_v38, %v9569_v1  ;;  %v1498_v16 = vrot.slane %v9677_v38, %v9567_v0 }
 0x528   : > { %v1199_v28 = vmul.f32 %v1197_v17, %v1179_v20  ;;  %v1198_v29 = vmul.f32 %v1193_v18, %v1178_v25  ;;  %v1522_v17 = vrot.slane %v9677_v38, %v9573_v4  ;;  %v1518_v18 = vrot.slane %v9677_v38, %v9571_v2 }
 0x529   : > { %v1508_v25 = vrot.slane %v1498_v16, %v9567_v0 }
 0x52a   : > { %v1219_v30 = vadd.f32 %v1217_v21, %v1199_v28  ;;  %v1218_v31 = vadd.f32 %v1213_v27, %v1198_v29  ;;  %v1512_v21 = vrot.slane %v1502_v15, %v9567_v0  ;;  %v1532_v29 = vrot.slane %v1522_v17, %v9571_v2 }
 0x52c   : > { %v1221_v32 = vmax.f32 %v1219_v30, 0.0  ;;  %v1220_v33 = vmax.f32 %v1218_v31, 0.0  ;;  %v1528_v31 = vrot.slane %v1518_v18, %v9571_v2 }
 0x52e   : > { %v1256_v34 = vpack.c.bf16 %v1221_v32, %v1221_v32  ;;  %v1255_v35 = vpack.c.bf16 %v1220_v33, %v1220_v33 }
 0x530   : > { %1468 = vmatprep.mubr.bf16.mxu1 %v1256_v34 }
 0x531   : > { %1469 = vmatmul.mubr.bf16.vlgmr.msra.gmra.mrb[4].mxu1 %v1255_v35 }
 0x604   : > { %v1470_v43 = vpop.f32.mrb[4].mxu1 }
 0x605   : > { %v1471_v44 = vadd.f32 %v1470_v43, %v1271_v41  ;;  %v1472_v45 = vpop.f32.mrb[5].mxu1  ;;  %v8381_v41 = vld [vmem:[%s9447_s5 + $0x84] ss:$8 sps:$4 sm:$0xff]  }
 0x606   : > { %v1473_v46 = vadd.f32 %v1472_v45, %v1275_v42  ;;  %v1474_v47 = vpop.f32.mrb[6].mxu1  ;;  %1838 = vmatprep.subr.bf16.mxu0 %v8381_v41  ;;  %v7046_v42 = vld [vmem:[%s9458_s15 + $0x4] sm:$0x7]  ;;  %v8421_v41 = vld [vmem:[%s9470_s25 + $0x160] ss:$8 sps:$4 sm:$0xff]  }
 0x607   : > { %v1475_v48 = vpop.f32.mrb[7].mxu1  ;;  %v1480_v49 = vmul.f32 %v1471_v44, %v1471_v44  ;;  %v1737_v16 = vrot.slane %v7046_v42, %v9571_v2 }
 0x608   : > { %v1477_v50 = vadd.f32 %v1473_v46, %v1471_v44  ;;  %v1481_v51 = vmul.f32 %v1473_v46, %v1473_v46 }
 0x60a   : > { %1478 = vadd.xlane.f32.xlu0 %v1477_v50  ;;  %v1482_v52 = vadd.f32 %v1481_v51, %v1480_v49  ;;  %v8384_v51 = vld [vmem:[%s9447_s5 + $0x94] ss:$8 sps:$4 sm:$0xff]  }
 0x60c   : > { %1483 = vadd.xlane.f32.xlu1 %v1482_v52  ;;  %v8382_v52 = vld [vmem:[%s9447_s5 + $0x90] ss:$8 sps:$4 sm:$0xff]  }
 0x697   : > { %v1479_v8 = vpop.xlane.xlu0 %1478 }
 0x698   : > { %v1485_v9 = vmul.f32 0.00390625, %v1479_v8 }
 0x699   : > { %v1484_v10 = vpop.xlane.xlu1 %1483 }
 0x69a   : > { %v1486_v11 = vmul.f32 0.00390625, %v1484_v10  ;;  %v1487_v12 = vmul.f32 %v1485_v9, %v1485_v9  ;;  %v1489_v19 = vsub.f32 %v1471_v44, %v1485_v9  ;;  %v1490_v20 = vsub.f32 %v1473_v46, %v1485_v9 }
 0x69b   : > { %v1579_v44 = vrot.slane %v7046_v42, %v9526_v24 }
 0x69c   : > { %v1488_v13 = vsub.f32 %v1486_v11, %v1487_v12 }
 0x69e   : > { %v1491_v14 = vadd.f32 1e-05, %v1488_v13  ;;  %v1732_v13 = vrot.slane %v7046_v42, %v9567_v0  ;;  %v8426_v42 = vld [vmem:[%s9470_s25 + $0x174] ss:$8 sps:$4 sm:$0xff]  }
 0x6a0   : > { %8633 = vrsqrt.f32 %v1491_v14 }
 0x6aa   : > { %v8634_v27 = vpop.eup %8633 }
 0x6ab   : > { %v1494_v28 = vmul.f32 %v8634_v27, %v1490_v20  ;;  %v1493_v30 = vmul.f32 %v8634_v27, %v1489_v19  ;;  %v8405_v27 = vld [vmem:[%s9470_s25 + $0x104] ss:$8 sps:$4 sm:$0xff]  }
 0x6ac   : > { %2180 = vmatprep.subr.bf16.mxu1 %v8405_v27 }
 0x6ad   : > { %v1514_v32 = vmul.f32 %v1512_v21, %v1494_v28  ;;  %v1513_v33 = vmul.f32 %v1508_v25, %v1493_v30  ;;  %v8403_v25 = vld [vmem:[%s9470_s25 + $0x100] ss:$8 sps:$4 sm:$0xff]   ;;  %v8408_v28 = vld [vmem:[%s9470_s25 + $0x114] ss:$8 sps:$4 sm:$0xff]   ;;  %v8411_v30 = vld [vmem:[%s9470_s25 + $0x124] ss:$8 sps:$4 sm:$0xff]  }
 0x6ae   : > { %2181 = vmatpush1.bf16.msra.mxu1 %v8403_v25 }
 0x6af   : > { %v1534_v34 = vadd.f32 %v1532_v29, %v1514_v32  ;;  %v1533_v35 = vadd.f32 %v1528_v31, %v1513_v33  ;;  %v8406_v29 = vld [vmem:[%s9470_s25 + $0x110] ss:$8 sps:$4 sm:$0xff]   ;;  %2182 = vmatprep.subr.bf16.mxu1 %v8408_v28  ;;  %v8409_v31 = vld [vmem:[%s9470_s25 + $0x120] ss:$8 sps:$4 sm:$0xff]   ;;  %v8414_v32 = vld [vmem:[%s9470_s25 + $0x134] ss:$8 sps:$4 sm:$0xff]  }
 0x6b0   : > { %v8412_v33 = vld [vmem:[%s9470_s25 + $0x130] ss:$8 sps:$4 sm:$0xff]  }
 0x6b1   : > { %v9711_v36 = vmax.f32 %v1534_v34, 0.0  ;;  %v9713_v37 = vmax.f32 %v1533_v35, 0.0  ;;  %v8417_v34 = vld [vmem:[%s9470_s25 + $0x144] ss:$8 sps:$4 sm:$0xff]   ;;  %v8415_v35 = vld [vmem:[%s9470_s25 + $0x140] ss:$8 sps:$4 sm:$0xff]  }
 0x6b2   : > { %2183 = vmatpush1.bf16.msra.mxu1 %v8406_v29 }
 0x6b3   : > { %v1575_v38 = vpack.c.bf16 %v9711_v36, %v9711_v36  ;;  %v1574_v39 = vpack.c.bf16 %v9713_v37, %v9713_v37  ;;  %2184 = vmatprep.subr.bf16.mxu1 %v8411_v30 }
 0x6b5   : > { %1708 = vmatprep.mubr.bf16.mxu0 %v1575_v38  ;;  %v8420_v38 = vld [vmem:[%s9470_s25 + $0x154] ss:$8 sps:$4 sm:$0xff]  }
 0x6b6   : > { %1709 = vmatmul.mubr.bf16.vlgmr.msra.gmra.mrb[8].mxu0 %v1574_v39  ;;  %2185 = vmatpush1.bf16.msra.mxu1 %v8409_v31  ;;  %v8418_v39 = vld [vmem:[%s9470_s25 + $0x150] ss:$8 sps:$4 sm:$0xff]  }
 0x6b7   : > { %1870 = vmatprep.mubr.bf16.mxu0 %v9188_v3  ;;  %1839 = vmatpush1.bf16.msra.mxu0 %v8379_v40  ;;  %v8423_v40 = vld [vmem:[%s9470_s25 + $0x164] ss:$8 sps:$4 sm:$0xff]  }
 0x6b8   : > { %1840 = vmatprep.subr.bf16.mxu0 %v8384_v51  ;;  %2186 = vmatprep.subr.bf16.mxu1 %v8414_v32 }
 0x6ba   : > { %2187 = vmatpush1.bf16.msra.mxu1 %v8412_v33 }
 0x6bb   : > { %1841 = vmatpush1.bf16.msra.mxu0 %v8382_v52  ;;  %2188 = vmatprep.subr.bf16.mxu1 %v8417_v34 }
 0x6bc   : > { %1842 = vmatprep.subr.bf16.mxu0 %v8387_v53 }
 0x6be   : > { %2189 = vmatpush1.bf16.msra.mxu1 %v8415_v35 }
 0x6bf   : > { %1843 = vmatpush1.bf16.msra.mxu0 %v8385_v54  ;;  %2190 = vmatprep.subr.bf16.mxu1 %v8420_v38 }
 0x6c0   : > { %1844 = vmatprep.subr.bf16.mxu0 %v8390_v55 }
 0x6c2   : > { %2191 = vmatpush1.bf16.msra.mxu1 %v8418_v39 }
 0x6c3   : > { %1845 = vmatpush1.bf16.msra.mxu0 %v8388_v56  ;;  %2192 = vmatprep.subr.bf16.mxu1 %v8423_v40 }
 0x6c4   : > { %1846 = vmatprep.subr.bf16.mxu0 %v8393_v57 }
 0x6c6   : > { %2193 = vmatpush1.bf16.msra.mxu1 %v8421_v41 }
 0x6c7   : > { %1847 = vmatpush1.bf16.msra.mxu0 %v8391_v58  ;;  %2194 = vmatprep.subr.bf16.mxu1 %v8426_v42 }
 0x6c8   : > { %1848 = vmatprep.subr.bf16.mxu0 %v8396_v59 }
 0x6cb   : > { %1849 = vmatpush1.bf16.msra.mxu0 %v8394_v60 }
 0x6cc   : > { %1850 = vmatprep.subr.bf16.mxu0 %v8399_v61  ;;  %v8427_v61 = vld [vmem:[%s9470_s25 + $0x180] ss:$8 sps:$4 sm:$0xff]  }
 0x6cf   : > { %1851 = vmatpush1.bf16.msra.mxu0 %v8397_v62  ;;  %v8430_v62 = vld [vmem:[%s9470_s25 + $0x190] ss:$8 sps:$4 sm:$0xff]  }
 0x6d0   : > { %1852 = vmatprep.subr.bf16.mxu0 %v8402_v63  ;;  %v8435_v63 = vld [vmem:[%s9470_s25 + $0x1a4] ss:$8 sps:$4 sm:$0xff]  }
 0x6d3   : > { %1853 = vmatpush1.bf16.msra.mxu0 %v8400_v5  ;;  %v8433_v5 = vld [vmem:[%s9470_s25 + $0x1a0] ss:$8 sps:$4 sm:$0xff]  }
 0x789   : > { %v8041_v43 = vpop.f32.mrb[8].mxu0 }
 0x78a   : > { %v8042_v45 = vpop.f32.mrb[9].mxu0 }
 0x78b   : > { %v8043_v46 = vadd.f32 %v8042_v45, %v8041_v43  ;;  %v8044_v47 = vpop.f32.mrb[10].mxu0  ;;  %v8424_v43 = vld [vmem:[%s9470_s25 + $0x170] ss:$8 sps:$4 sm:$0xff]  }
 0x78c   : > { %v8045_v48 = vpop.f32.mrb[11].mxu0  ;;  %2195 = vmatpush1.bf16.msra.mxu1 %v8424_v43 }
 0x78d   : > { %v1711_v49 = vadd.f32 %v8043_v46, %v1579_v44  ;;  %v9757_v44 = vld [vmem:[%s9463_s29 + $0x8] sm:$0x77] }
 0x78e   : > { %v1885_v45 = vrot.slane %v9757_v44, %v9526_v24  ;;  %v1889_v46 = vrot.slane %v9757_v44, %v9533_v26  ;;  %v1927_v27 = vrot.slane %v9757_v44, %v9569_v1  ;;  %v1923_v28 = vrot.slane %v9757_v44, %v9567_v0 }
 0x78f   : > { %1716 = vadd.xlane.f32.xlu0 %v1711_v49  ;;  %v1718_v50 = vmul.f32 %v1711_v49, %v1711_v49  ;;  %v1947_v29 = vrot.slane %v9757_v44, %v9573_v4  ;;  %v1943_v30 = vrot.slane %v9757_v44, %v9571_v2 }
 0x790   : > { %v1895_v47 = vrot.slane %v1885_v45, %v9526_v24  ;;  %v1937_v33 = vrot.slane %v1927_v27, %v9567_v0  ;;  %v1933_v34 = vrot.slane %v1923_v28, %v9567_v0 }
 0x791   : > { %1719 = vadd.xlane.f32.xlu1 %v1718_v50  ;;  %v1957_v39 = vrot.slane %v1947_v29, %v9571_v2  ;;  %v1953_v41 = vrot.slane %v1943_v30, %v9571_v2 }
 0x81c   : > { %v1717_v6 = vpop.xlane.xlu0 %1716 }
 0x81d   : > { %v1721_v7 = vmul.f32 0.0078125, %v1717_v6  ;;  %v8438_v6 = vld [vmem:[%s9470_s25 + $0x1b4] ss:$8 sps:$4 sm:$0xff]  }
 0x81e   : > { %v1720_v8 = vpop.xlane.xlu1 %1719 }
 0x81f   : > { %v1723_v9 = vmul.f32 %v1721_v7, %v1721_v7  ;;  %v1722_v10 = vmul.f32 0.0078125, %v1720_v8  ;;  %v1725_v14 = vsub.f32 %v1711_v49, %v1721_v7  ;;  %v1899_v49 = vrot.slane %v1889_v46, %v9526_v24  ;;  %v8436_v7 = vld [vmem:[%s9470_s25 + $0x1b0] ss:$8 sps:$4 sm:$0xff]   ;;  %v8441_v8 = vld [vmem:[%s9470_s25 + $0x1c4] ss:$8 sps:$4 sm:$0xff]  }
 0x821   : > { %v1724_v11 = vsub.f32 %v1722_v10, %v1723_v9  ;;  %v8439_v9 = vld [vmem:[%s9470_s25 + $0x1c0] ss:$8 sps:$4 sm:$0xff]   ;;  %v8444_v10 = vld [vmem:[%s9470_s25 + $0x1d4] ss:$8 sps:$4 sm:$0xff]  }
 0x823   : > { %v1726_v12 = vadd.f32 1e-05, %v1724_v11  ;;  %v8442_v11 = vld [vmem:[%s9470_s25 + $0x1d0] ss:$8 sps:$4 sm:$0xff]  }
 0x825   : > { %8635 = vrsqrt.f32 %v1726_v12  ;;  %v8447_v12 = vld [vmem:[%s9470_s25 + $0x1e4] ss:$8 sps:$4 sm:$0xff]  }
 0x82f   : > { %v8636_v15 = vpop.eup %8635 }
 0x830   : > { %v1728_v17 = vmul.f32 %v8636_v15, %v1725_v14  ;;  %v8450_v14 = vld [vmem:[%s9470_s25 + $0x1f4] ss:$8 sps:$4 sm:$0xff]   ;;  %v8448_v15 = vld [vmem:[%s9470_s25 + $0x1f0] ss:$8 sps:$4 sm:$0xff]  }
 0x832   : > { %v1733_v18 = vmul.f32 %v1732_v13, %v1728_v17  ;;  %v8445_v13 = vld [vmem:[%s9470_s25 + $0x1e0] ss:$8 sps:$4 sm:$0xff]  }
 0x834   : > { %v1738_v19 = vadd.f32 %v1737_v16, %v1733_v18 }
 0x836   : > { %v1739_v20 = vmax.f32 %v1738_v19, 0.0 }
 0x838   : > { %v1757_v21 = vpack.c.bf16 %v1739_v20, %v1739_v20 }
 0x83a   : > { %1871 = vmatmul.mubr.bf16.vlgmr.msra.gmra.mrb[12].mxu0 %v1757_v21 }
 0x90d   : > { %v1872_v48 = vpop.f32.mrb[12].mxu0 }
 0x90e   : > { %v1879_v50 = vadd.f32 %v1872_v48, %v9713_v37  ;;  %v1874_v51 = vpop.f32.mrb[13].mxu0  ;;  %v8429_v37 = vld [vmem:[%s9470_s25 + $0x184] ss:$8 sps:$4 sm:$0xff]  }
 0x90f   : > { %v1880_v52 = vadd.f32 %v1874_v51, %v9711_v36  ;;  %v1876_v53 = vpop.f32.mrb[14].mxu0  ;;  %2196 = vmatprep.subr.bf16.mxu1 %v8429_v37  ;;  %v8432_v36 = vld [vmem:[%s9470_s25 + $0x194] ss:$8 sps:$4 sm:$0xff]  }
 0x910   : > { %v1900_v54 = vadd.f32 %v1895_v47, %v1879_v50  ;;  %v1877_v55 = vpop.f32.mrb[15].mxu0  ;;  %2197 = vmatpush1.bf16.msra.mxu1 %v8427_v61  ;;  %v8452_v53 = vld [vmem:[%s9439_s12 + $0x100] sm:$0xff]  }
 0x911   : > { %v1901_v56 = vadd.f32 %v1899_v49, %v1880_v52  ;;  %2198 = vmatprep.subr.bf16.mxu1 %v8432_v36  ;;  %v8451_v52 = vld [vmem:[%s9439_s12 + $0x140] sm:$0xff]  }
 0x912   : > { %v1905_v57 = vmul.f32 %v1900_v54, %v1900_v54  ;;  %8047 = vmatprep.subr.bf16.mxu0 %v8451_v52 }
 0x913   : > { %v1902_v58 = vadd.f32 %v1901_v56, %v1900_v54  ;;  %v1906_v59 = vmul.f32 %v1901_v56, %v1901_v56  ;;  %8048 = vmatpush3.bf16.msra.mxu0 %v8452_v53 }
 0x914   : > { %2199 = vmatpush1.bf16.msra.mxu1 %v8430_v62 }
 0x915   : > { %1903 = vadd.xlane.f32.xlu0 %v1902_v58  ;;  %v1907_v60 = vadd.f32 %v1906_v59, %v1905_v57  ;;  %2200 = vmatprep.subr.bf16.mxu1 %v8435_v63 }
 0x917   : > { %1908 = vadd.xlane.f32.xlu1 %v1907_v60 }
 0x918   : > { %2201 = vmatpush1.bf16.msra.mxu1 %v8433_v5 }
 0x919   : > { %2202 = vmatprep.subr.bf16.mxu1 %v8438_v6  ;;  %v8453_v6 = vld [vmem:[%s9439_s12 + $0x148] sm:$0xff]  }
 0x91a   : > { %8049 = vmatprep.subr.bf16.mxu0 %v8453_v6  ;;  %v8478_v6 = vld [vmem:[%s9447_s5 + $0x134] ss:$8 sps:$4 sm:$0xff]  }
 0x91c   : > { %2203 = vmatpush1.bf16.msra.mxu1 %v8436_v7  ;;  %v8454_v7 = vld [vmem:[%s9439_s12 + $0x108] sm:$0xff]  }
 0x91d   : > { %2204 = vmatprep.subr.bf16.mxu1 %v8441_v8  ;;  %8050 = vmatpush3.bf16.msra.mxu0 %v8454_v7  ;;  %v8455_v8 = vld [vmem:[%s9439_s12 + $0x150] sm:$0xff]  }
 0x91e   : > { %8051 = vmatprep.subr.bf16.mxu0 %v8455_v8  ;;  %v8476_v7 = vld [vmem:[%s9447_s5 + $0x130] ss:$8 sps:$4 sm:$0xff]   ;;  %v8481_v8 = vld [vmem:[%s9447_s5 + $0x144] ss:$8 sps:$4 sm:$0xff]  }
 0x920   : > { %2205 = vmatpush1.bf16.msra.mxu1 %v8439_v9  ;;  %v8456_v9 = vld [vmem:[%s9439_s12 + $0x110] sm:$0xff]  }
 0x921   : > { %2206 = vmatprep.subr.bf16.mxu1 %v8444_v10  ;;  %8052 = vmatpush3.bf16.msra.mxu0 %v8456_v9  ;;  %v8457_v10 = vld [vmem:[%s9439_s12 + $0x158] sm:$0xff]   ;;  %v8479_v9 = vld [vmem:[%s9447_s5 + $0x140] ss:$8 sps:$4 sm:$0xff]  }
 0x922   : > { %8053 = vmatprep.subr.bf16.mxu0 %v8457_v10  ;;  %v8484_v10 = vld [vmem:[%s9447_s5 + $0x154] ss:$8 sps:$4 sm:$0xff]  }
 0x924   : > { %2207 = vmatpush1.bf16.msra.mxu1 %v8442_v11  ;;  %v8458_v11 = vld [vmem:[%s9439_s12 + $0x118] sm:$0xff]  }
 0x925   : > { %2208 = vmatprep.subr.bf16.mxu1 %v8447_v12  ;;  %8054 = vmatpush3.bf16.msra.mxu0 %v8458_v11  ;;  %v8459_v12 = vld [vmem:[%s9439_s12 + $0x160] sm:$0xff]   ;;  %v8482_v11 = vld [vmem:[%s9447_s5 + $0x150] ss:$8 sps:$4 sm:$0xff]  }
 0x926   : > { %8055 = vmatprep.subr.bf16.mxu0 %v8459_v12  ;;  %v8487_v12 = vld [vmem:[%s9447_s5 + $0x164] ss:$8 sps:$4 sm:$0xff]  }
 0x928   : > { %2209 = vmatpush1.bf16.msra.mxu1 %v8445_v13  ;;  %v8460_v13 = vld [vmem:[%s9439_s12 + $0x120] sm:$0xff]  }
 0x929   : > { %2210 = vmatprep.subr.bf16.mxu1 %v8450_v14  ;;  %8056 = vmatpush3.bf16.msra.mxu0 %v8460_v13  ;;  %v8461_v14 = vld [vmem:[%s9439_s12 + $0x168] sm:$0xff]  }
 0x92a   : > { %8057 = vmatprep.subr.bf16.mxu0 %v8461_v14  ;;  %v8485_v13 = vld [vmem:[%s9447_s5 + $0x160] ss:$8 sps:$4 sm:$0xff]   ;;  %v8490_v14 = vld [vmem:[%s9447_s5 + $0x174] ss:$8 sps:$4 sm:$0xff]  }
 0x92c   : > { %2211 = vmatpush1.bf16.msra.mxu1 %v8448_v15  ;;  %v8462_v15 = vld [vmem:[%s9439_s12 + $0x128] sm:$0xff]  }
 0x92d   : > { %8058 = vmatpush3.bf16.msra.mxu0 %v8462_v15  ;;  %v8488_v15 = vld [vmem:[%s9447_s5 + $0x170] ss:$8 sps:$4 sm:$0xff]  }
 0x9a2   : > { %v1904_v16 = vpop.xlane.xlu0 %1903 }
 0x9a3   : > { %v1910_v17 = vmul.f32 0.00390625, %v1904_v16  ;;  %v8463_v16 = vld [vmem:[%s9439_s12 + $0x170] sm:$0xff]  }
 0x9a4   : > { %v1909_v18 = vpop.xlane.xlu1 %1908  ;;  %8059 = vmatprep.subr.bf16.mxu0 %v8463_v16 }
 0x9a5   : > { %v1911_v19 = vmul.f32 0.00390625, %v1909_v18  ;;  %v1912_v20 = vmul.f32 %v1910_v17, %v1910_v17  ;;  %v1914_v31 = vsub.f32 %v1900_v54, %v1910_v17  ;;  %v1915_v32 = vsub.f32 %v1901_v56, %v1910_v17  ;;  %v9800_v54 = vld [vmem:[%s9468_s21 + $0x8] sm:$0x77]  ;;  %v8464_v17 = vld [vmem:[%s9439_s12 + $0x130] sm:$0xff]  }
 0x9a6   : > { %v2005_v55 = vrot.slane %v9800_v54, %v9526_v24  ;;  %v2009_v56 = vrot.slane %v9800_v54, %v9533_v26  ;;  %v8465_v18 = vld [vmem:[%s9439_s12 + $0x178] sm:$0xff]   ;;  %8060 = vmatpush3.bf16.msra.mxu0 %v8464_v17 }
 0x9a7   : > { %v1913_v21 = vsub.f32 %v1911_v19, %v1912_v20  ;;  %v8466_v19 = vld [vmem:[%s9439_s12 + $0x138] sm:$0xff]   ;;  %8061 = vmatprep.subr.bf16.mxu0 %v8465_v18 }
 0x9a9   : > { %v1916_v25 = vadd.f32 1e-05, %v1913_v21 }
 0x9aa   : > { %8062 = vmatpush3.bf16.msra.mxu0 %v8466_v19 }
 0x9ab   : > { %8637 = vrsqrt.f32 %v1916_v25 }
 0x9b5   : > { %v8638_v35 = vpop.eup %8637 }
 0x9b6   : > { %v1919_v38 = vmul.f32 %v8638_v35, %v1915_v32  ;;  %v1918_v40 = vmul.f32 %v8638_v35, %v1914_v31  ;;  %v2246_v31 = vrot.slane %v9800_v54, %v9569_v1  ;;  %v2242_v32 = vrot.slane %v9800_v54, %v9567_v0 }
 0x9b8   : > { %v1939_v42 = vmul.f32 %v1937_v33, %v1919_v38  ;;  %v1938_v43 = vmul.f32 %v1933_v34, %v1918_v40  ;;  %v2266_v33 = vrot.slane %v9800_v54, %v9573_v4  ;;  %v2262_v34 = vrot.slane %v9800_v54, %v9571_v2  ;;  %v8467_v54 = vld [vmem:[%s9447_s5 + $0x100] ss:$8 sps:$4 sm:$0xff]  }
 0x9b9   : > { %v2252_v40 = vrot.slane %v2242_v32, %v9567_v0 }
 0x9ba   : > { %v1959_v45 = vadd.f32 %v1957_v39, %v1939_v42  ;;  %v1958_v44 = vadd.f32 %v1953_v41, %v1938_v43  ;;  %v2256_v39 = vrot.slane %v2246_v31, %v9567_v0 }
 0x9bc   : > { %v1961_v46 = vmax.f32 %v1959_v45, 0.0  ;;  %v1960_v47 = vmax.f32 %v1958_v44, 0.0  ;;  %v2276_v45 = vrot.slane %v2266_v33, %v9571_v2  ;;  %v2272_v44 = vrot.slane %v2262_v34, %v9571_v2 }
 0x9be   : > { %v1963_v48 = vadd.f32 %v1961_v46, %v9589_v22  ;;  %v1962_v49 = vadd.f32 %v1960_v47, %v9591_v23  ;;  %v2015_v22 = vrot.slane %v2005_v55, %v9526_v24  ;;  %v2019_v23 = vrot.slane %v2009_v56, %v9526_v24  ;;  %v8469_v55 = vld [vmem:[%s9447_s5 + $0x104] ss:$8 sps:$4 sm:$0xff]   ;;  %v7193_v56 = vld [vmem:[%s9458_s15 + $0x8] sm:$0x7] }
 0x9bf   : > { %2582 = vmatprep.subr.bf16.mxu0 %v8469_v55  ;;  %v8512_v55 = vld [vmem:[%s9470_s25 + $0x270] ss:$8 sps:$4 sm:$0xff]  }
 0x9c0   : > { %v2000_v50 = vpack.c.bf16 %v1963_v48, %v1963_v48  ;;  %v1999_v51 = vpack.c.bf16 %v1962_v49, %v1962_v49 }
 0x9c2   : > { %2212 = vmatprep.mubr.bf16.mxu1 %v2000_v50 }
 0x9c3   : > { %2213 = vmatmul.mubr.bf16.vlgmr.msra.gmra.mrb[8].mxu1 %v1999_v51 }
 0xa96   : > { %v2214_v57 = vpop.f32.mrb[8].mxu1 }
 0xa97   : > { %v2215_v58 = vadd.f32 %v2214_v57, %v2015_v22  ;;  %v2216_v59 = vpop.f32.mrb[9].mxu1 }
 0xa98   : > { %v2217_v60 = vadd.f32 %v2216_v59, %v2019_v23  ;;  %v2218_v37 = vpop.f32.mrb[10].mxu1  ;;  %v2323_v23 = vrot.slane %v7193_v56, %v9526_v24 }
 0xa99   : > { %v2219_v61 = vpop.f32.mrb[11].mxu1  ;;  %v2224_v36 = vmul.f32 %v2215_v58, %v2215_v58 }
 0xa9a   : > { %v2221_v62 = vadd.f32 %v2217_v60, %v2215_v58  ;;  %v2225_v63 = vmul.f32 %v2217_v60, %v2217_v60 }
 0xa9c   : > { %2222 = vadd.xlane.f32.xlu0 %v2221_v62  ;;  %v2226_v5 = vadd.f32 %v2225_v63, %v2224_v36  ;;  %v8472_v36 = vld [vmem:[%s9447_s5 + $0x114] ss:$8 sps:$4 sm:$0xff]   ;;  %v8470_v62 = vld [vmem:[%s9447_s5 + $0x110] ss:$8 sps:$4 sm:$0xff]   ;;  %v8475_v63 = vld [vmem:[%s9447_s5 + $0x124] ss:$8 sps:$4 sm:$0xff]  }
 0xa9e   : > { %2227 = vadd.xlane.f32.xlu1 %v2226_v5  ;;  %v8473_v5 = vld [vmem:[%s9447_s5 + $0x120] ss:$8 sps:$4 sm:$0xff]  }
 0xb29   : > { %v2223_v20 = vpop.xlane.xlu0 %2222 }
 0xb2a   : > { %v2229_v21 = vmul.f32 0.00390625, %v2223_v20 }
 0xb2b   : > { %v2228_v25 = vpop.xlane.xlu1 %2227 }
 0xb2c   : > { %v2230_v27 = vmul.f32 0.00390625, %v2228_v25  ;;  %v2231_v28 = vmul.f32 %v2229_v21, %v2229_v21  ;;  %v2233_v35 = vsub.f32 %v2215_v58, %v2229_v21  ;;  %v2234_v38 = vsub.f32 %v2217_v60, %v2229_v21 }
 0xb2e   : > { %v2232_v29 = vsub.f32 %v2230_v27, %v2231_v28  ;;  %v2476_v27 = vrot.slane %v7193_v56, %v9567_v0 }
 0xb30   : > { %v2235_v30 = vadd.f32 1e-05, %v2232_v29 }
 0xb32   : > { %8639 = vrsqrt.f32 %v2235_v30  ;;  %v2481_v30 = vrot.slane %v7193_v56, %v9571_v2  ;;  %v8517_v56 = vld [vmem:[%s9470_s25 + $0x284] ss:$8 sps:$4 sm:$0xff]  }
 0xb3c   : > { %v8640_v41 = vpop.eup %8639 }
 0xb3d   : > { %v2237_v42 = vmul.f32 %v8640_v41, %v2233_v35  ;;  %v2238_v43 = vmul.f32 %v8640_v41, %v2234_v38  ;;  %v8491_v38 = vld [vmem:[%s9470_s25 + $0x200] ss:$8 sps:$4 sm:$0xff]   ;;  %v8494_v41 = vld [vmem:[%s9470_s25 + $0x210] ss:$8 sps:$4 sm:$0xff]  }
 0xb3f   : > { %v2258_v46 = vmul.f32 %v2256_v39, %v2238_v43  ;;  %v2257_v47 = vmul.f32 %v2252_v40, %v2237_v42  ;;  %v8493_v39 = vld [vmem:[%s9470_s25 + $0x204] ss:$8 sps:$4 sm:$0xff]   ;;  %v8496_v40 = vld [vmem:[%s9470_s25 + $0x214] ss:$8 sps:$4 sm:$0xff]   ;;  %v8497_v43 = vld [vmem:[%s9470_s25 + $0x220] ss:$8 sps:$4 sm:$0xff]  }
 0xb40   : > { %2922 = vmatprep.subr.bf16.mxu1 %v8493_v39  ;;  %v8499_v42 = vld [vmem:[%s9470_s25 + $0x224] ss:$8 sps:$4 sm:$0xff]  }
 0xb41   : > { %v2278_v48 = vadd.f32 %v2276_v45, %v2258_v46  ;;  %v2277_v49 = vadd.f32 %v2272_v44, %v2257_v47  ;;  %2923 = vmatpush1.bf16.msra.mxu1 %v8491_v38  ;;  %v8502_v45 = vld [vmem:[%s9470_s25 + $0x234] ss:$8 sps:$4 sm:$0xff]   ;;  %v8500_v44 = vld [vmem:[%s9470_s25 + $0x230] ss:$8 sps:$4 sm:$0xff]   ;;  %v8505_v46 = vld [vmem:[%s9470_s25 + $0x244] ss:$8 sps:$4 sm:$0xff]  }
 0xb42   : > { %2924 = vmatprep.subr.bf16.mxu1 %v8496_v40  ;;  %v8503_v47 = vld [vmem:[%s9470_s25 + $0x240] ss:$8 sps:$4 sm:$0xff]  }
 0xb43   : > { %v9834_v50 = vmax.f32 %v2278_v48, 0.0  ;;  %v9836_v51 = vmax.f32 %v2277_v49, 0.0  ;;  %v8508_v48 = vld [vmem:[%s9470_s25 + $0x254] ss:$8 sps:$4 sm:$0xff]   ;;  %v8506_v49 = vld [vmem:[%s9470_s25 + $0x250] ss:$8 sps:$4 sm:$0xff]  }
 0xb45   : > { %v2319_v52 = vpack.c.bf16 %v9834_v50, %v9834_v50  ;;  %v2318_v53 = vpack.c.bf16 %v9836_v51, %v9836_v51  ;;  %2925 = vmatpush1.bf16.msra.mxu1 %v8494_v41 }
 0xb46   : > { %2926 = vmatprep.subr.bf16.mxu1 %v8499_v42 }
 0xb47   : > { %2452 = vmatprep.mubr.bf16.mxu0 %v2319_v52  ;;  %v8511_v52 = vld [vmem:[%s9470_s25 + $0x264] ss:$8 sps:$4 sm:$0xff]  }
 0xb48   : > { %2453 = vmatmul.mubr.bf16.vlgmr.msra.gmra.mrb[16].mxu0 %v2318_v53  ;;  %v8509_v53 = vld [vmem:[%s9470_s25 + $0x260] ss:$8 sps:$4 sm:$0xff]  }
 0xb49   : > { %2614 = vmatprep.mubr.bf16.mxu0 %v9188_v3  ;;  %2583 = vmatpush1.bf16.msra.mxu0 %v8467_v54  ;;  %v8514_v54 = vld [vmem:[%s9470_s25 + $0x274] ss:$8 sps:$4 sm:$0xff]  }
 0xb4a   : > { %2584 = vmatprep.subr.bf16.mxu0 %v8472_v36  ;;  %2927 = vmatpush1.bf16.msra.mxu1 %v8497_v43 }
 0xb4b   : > { %2928 = vmatprep.subr.bf16.mxu1 %v8502_v45 }
 0xb4d   : > { %2585 = vmatpush1.bf16.msra.mxu0 %v8470_v62 }
 0xb4e   : > { %2586 = vmatprep.subr.bf16.mxu0 %v8475_v63  ;;  %2929 = vmatpush1.bf16.msra.mxu1 %v8500_v44 }
 0xb4f   : > { %2930 = vmatprep.subr.bf16.mxu1 %v8505_v46 }
 0xb51   : > { %2587 = vmatpush1.bf16.msra.mxu0 %v8473_v5 }
 0xb52   : > { %2588 = vmatprep.subr.bf16.mxu0 %v8478_v6  ;;  %2931 = vmatpush1.bf16.msra.mxu1 %v8503_v47 }
 0xb53   : > { %2932 = vmatprep.subr.bf16.mxu1 %v8508_v48 }
 0xb55   : > { %2589 = vmatpush1.bf16.msra.mxu0 %v8476_v7 }
 0xb56   : > { %2590 = vmatprep.subr.bf16.mxu0 %v8481_v8  ;;  %2933 = vmatpush1.bf16.msra.mxu1 %v8506_v49 }
 0xb57   : > { %2934 = vmatprep.subr.bf16.mxu1 %v8511_v52 }
 0xb59   : > { %2591 = vmatpush1.bf16.msra.mxu0 %v8479_v9 }
 0xb5a   : > { %2592 = vmatprep.subr.bf16.mxu0 %v8484_v10  ;;  %2935 = vmatpush1.bf16.msra.mxu1 %v8509_v53 }
 0xb5b   : > { %2936 = vmatprep.subr.bf16.mxu1 %v8514_v54 }
 0xb5d   : > { %2593 = vmatpush1.bf16.msra.mxu0 %v8482_v11 }
 0xb5e   : > { %2594 = vmatprep.subr.bf16.mxu0 %v8487_v12  ;;  %2937 = vmatpush1.bf16.msra.mxu1 %v8512_v55  ;;  %v8520_v12 = vld [vmem:[%s9470_s25 + $0x294] ss:$8 sps:$4 sm:$0xff]  }
 0xb5f   : > { %2938 = vmatprep.subr.bf16.mxu1 %v8517_v56 }
 0xb61   : > { %2595 = vmatpush1.bf16.msra.mxu0 %v8485_v13  ;;  %v8518_v13 = vld [vmem:[%s9470_s25 + $0x290] ss:$8 sps:$4 sm:$0xff]  }
 0xb62   : > { %2596 = vmatprep.subr.bf16.mxu0 %v8490_v14  ;;  %v8523_v14 = vld [vmem:[%s9470_s25 + $0x2a4] ss:$8 sps:$4 sm:$0xff]  }
 0xb65   : > { %2597 = vmatpush1.bf16.msra.mxu0 %v8488_v15  ;;  %v8521_v15 = vld [vmem:[%s9470_s25 + $0x2a0] ss:$8 sps:$4 sm:$0xff]  }
 0xc1b   : > { %v8063_v22 = vpop.f32.mrb[16].mxu0 }
 0xc1c   : > { %v8064_v57 = vpop.f32.mrb[17].mxu0 }
 0xc1d   : > { %v8065_v58 = vadd.f32 %v8064_v57, %v8063_v22  ;;  %v8066_v59 = vpop.f32.mrb[18].mxu0  ;;  %v8515_v22 = vld [vmem:[%s9470_s25 + $0x280] ss:$8 sps:$4 sm:$0xff]  }
 0xc1e   : > { %v8067_v60 = vpop.f32.mrb[19].mxu0  ;;  %2939 = vmatpush1.bf16.msra.mxu1 %v8515_v22 }
 0xc1f   : > { %v2455_v37 = vadd.f32 %v8065_v58, %v2323_v23  ;;  %v9882_v23 = vld [vmem:[%s9463_s29 + $0x10] sm:$0x77]  ;;  %2940 = vmatprep.subr.bf16.mxu1 %v8520_v12 }
 0xc20   : > { %v2629_v57 = vrot.slane %v9882_v23, %v9526_v24  ;;  %v2633_v58 = vrot.slane %v9882_v23, %v9533_v26  ;;  %v2671_v39 = vrot.slane %v9882_v23, %v9569_v1  ;;  %v2667_v40 = vrot.slane %v9882_v23, %v9567_v0 }
 0xc21   : > { %2460 = vadd.xlane.f32.xlu0 %v2455_v37  ;;  %v2462_v61 = vmul.f32 %v2455_v37, %v2455_v37  ;;  %v2691_v41 = vrot.slane %v9882_v23, %v9573_v4  ;;  %v2687_v42 = vrot.slane %v9882_v23, %v9571_v2 }
 0xc22   : > { %v2639_v59 = vrot.slane %v2629_v57, %v9526_v24  ;;  %2941 = vmatpush1.bf16.msra.mxu1 %v8518_v13  ;;  %v2681_v44 = vrot.slane %v2671_v39, %v9567_v0  ;;  %v2677_v46 = vrot.slane %v2667_v40, %v9567_v0 }
 0xc23   : > { %2463 = vadd.xlane.f32.xlu1 %v2462_v61  ;;  %2942 = vmatprep.subr.bf16.mxu1 %v8523_v14  ;;  %v2701_v49 = vrot.slane %v2691_v41, %v9571_v2  ;;  %v2697_v53 = vrot.slane %v2687_v42, %v9571_v2 }
 0xc26   : > { %2943 = vmatpush1.bf16.msra.mxu1 %v8521_v15 }
 0xcae   : > { %v2461_v16 = vpop.xlane.xlu0 %2460 }
 0xcaf   : > { %v2465_v17 = vmul.f32 0.0078125, %v2461_v16  ;;  %v8524_v16 = vld [vmem:[%s9470_s25 + $0x2b0] ss:$8 sps:$4 sm:$0xff]  }
 0xcb0   : > { %v2464_v18 = vpop.xlane.xlu1 %2463 }
 0xcb1   : > { %v2467_v19 = vmul.f32 %v2465_v17, %v2465_v17  ;;  %v2466_v20 = vmul.f32 0.0078125, %v2464_v18  ;;  %v2469_v28 = vsub.f32 %v2455_v37, %v2465_v17  ;;  %v2643_v37 = vrot.slane %v2633_v58, %v9526_v24  ;;  %v8526_v17 = vld [vmem:[%s9470_s25 + $0x2b4] ss:$8 sps:$4 sm:$0xff]   ;;  %v8529_v18 = vld [vmem:[%s9470_s25 + $0x2c4] ss:$8 sps:$4 sm:$0xff]  }
 0xcb2   : > { %2944 = vmatprep.subr.bf16.mxu1 %v8526_v17  ;;  %v8542_v17 = vld [vmem:[%s9439_s12 + $0x188] sm:$0xff]  }
 0xcb3   : > { %v2468_v21 = vsub.f32 %v2466_v20, %v2467_v19  ;;  %2945 = vmatpush1.bf16.msra.mxu1 %v8524_v16  ;;  %v8527_v19 = vld [vmem:[%s9470_s25 + $0x2c0] ss:$8 sps:$4 sm:$0xff]   ;;  %v8532_v20 = vld [vmem:[%s9470_s25 + $0x2d4] ss:$8 sps:$4 sm:$0xff]  }
 0xcb4   : > { %2946 = vmatprep.subr.bf16.mxu1 %v8529_v18  ;;  %v8541_v16 = vld [vmem:[%s9439_s12 + $0x1c8] sm:$0xff]   ;;  %v8543_v18 = vld [vmem:[%s9439_s12 + $0x1d0] sm:$0xff]  }
 0xcb5   : > { %v2470_v25 = vadd.f32 1e-05, %v2468_v21  ;;  %v8530_v21 = vld [vmem:[%s9470_s25 + $0x2d0] ss:$8 sps:$4 sm:$0xff]  }
 0xcb7   : > { %8641 = vrsqrt.f32 %v2470_v25  ;;  %2947 = vmatpush1.bf16.msra.mxu1 %v8527_v19  ;;  %v8535_v25 = vld [vmem:[%s9470_s25 + $0x2e4] ss:$8 sps:$4 sm:$0xff]   ;;  %v8544_v19 = vld [vmem:[%s9439_s12 + $0x190] sm:$0xff]  }
 0xcb8   : > { %2948 = vmatprep.subr.bf16.mxu1 %v8532_v20  ;;  %v8545_v20 = vld [vmem:[%s9439_s12 + $0x1d8] sm:$0xff]  }
 0xcbb   : > { %2949 = vmatpush1.bf16.msra.mxu1 %v8530_v21  ;;  %v8546_v21 = vld [vmem:[%s9439_s12 + $0x198] sm:$0xff]  }
 0xcbc   : > { %2950 = vmatprep.subr.bf16.mxu1 %v8535_v25  ;;  %v8547_v25 = vld [vmem:[%s9439_s12 + $0x1e0] sm:$0xff]  }
 0xcc1   : > { %v8642_v29 = vpop.eup %8641 }
 0xcc2   : > { %v2472_v31 = vmul.f32 %v8642_v29, %v2469_v28  ;;  %v8538_v28 = vld [vmem:[%s9470_s25 + $0x2f4] ss:$8 sps:$4 sm:$0xff]   ;;  %v8536_v29 = vld [vmem:[%s9470_s25 + $0x2f0] ss:$8 sps:$4 sm:$0xff]  }
 0xcc4   : > { %v2477_v32 = vmul.f32 %v2476_v27, %v2472_v31  ;;  %v8533_v27 = vld [vmem:[%s9470_s25 + $0x2e0] ss:$8 sps:$4 sm:$0xff]  }
 0xcc5   : > { %2951 = vmatpush1.bf16.msra.mxu1 %v8533_v27  ;;  %v8548_v27 = vld [vmem:[%s9439_s12 + $0x1a0] sm:$0xff]  }
 0xcc6   : > { %v2482_v33 = vadd.f32 %v2481_v30, %v2477_v32  ;;  %2952 = vmatprep.subr.bf16.mxu1 %v8538_v28  ;;  %v8549_v28 = vld [vmem:[%s9439_s12 + $0x1e8] sm:$0xff]  }
 0xcc8   : > { %v2483_v34 = vmax.f32 %v2482_v33, 0.0 }
 0xcc9   : > { %2953 = vmatpush1.bf16.msra.mxu1 %v8536_v29  ;;  %v8550_v29 = vld [vmem:[%s9439_s12 + $0x1a8] sm:$0xff]  }
 0xcca   : > { %v2501_v35 = vpack.c.bf16 %v2483_v34, %v2483_v34 }
 0xccc   : > { %2615 = vmatmul.mubr.bf16.vlgmr.msra.gmra.mrb[20].mxu0 %v2501_v35 }
 0xd9f   : > { %v2616_v60 = vpop.f32.mrb[20].mxu0 }
 0xda0   : > { %v2623_v61 = vadd.f32 %v2616_v60, %v9836_v51  ;;  %v2618_v36 = vpop.f32.mrb[21].mxu0  ;;  %v8539_v60 = vld [vmem:[%s9439_s12 + $0x1c0] sm:$0xff]  }
 0xda1   : > { %v2624_v62 = vadd.f32 %v2618_v36, %v9834_v50  ;;  %v2620_v63 = vpop.f32.mrb[22].mxu0  ;;  %8069 = vmatprep.subr.bf16.mxu0 %v8539_v60 }
 0xda2   : > { %v2644_v5 = vadd.f32 %v2639_v59, %v2623_v61  ;;  %v2621_v6 = vpop.f32.mrb[23].mxu0  ;;  %v9921_v61 = vld [vmem:[%s9468_s21 + $0x10] sm:$0x77] }
 0xda3   : > { %v2645_v7 = vadd.f32 %v2643_v37, %v2624_v62  ;;  %v8540_v37 = vld [vmem:[%s9439_s12 + $0x180] sm:$0xff]   ;;  %v2747_v36 = vrot.slane %v9921_v61, %v9526_v24  ;;  %v2751_v62 = vrot.slane %v9921_v61, %v9533_v26 }
 0xda4   : > { %v2649_v8 = vmul.f32 %v2644_v5, %v2644_v5  ;;  %8070 = vmatpush3.bf16.msra.mxu0 %v8540_v37 }
 0xda5   : > { %v2646_v9 = vadd.f32 %v2645_v7, %v2644_v5  ;;  %v2650_v10 = vmul.f32 %v2645_v7, %v2645_v7  ;;  %v2757_v63 = vrot.slane %v2747_v36, %v9526_v24  ;;  %8071 = vmatprep.subr.bf16.mxu0 %v8541_v16  ;;  %v8561_v16 = vld [vmem:[%s9447_s5 + $0x1a0] ss:$8 sps:$4 sm:$0xff]  }
 0xda7   : > { %2647 = vadd.xlane.f32.xlu0 %v2646_v9  ;;  %v2651_v11 = vadd.f32 %v2650_v10, %v2649_v8 }
 0xda8   : > { %8072 = vmatpush3.bf16.msra.mxu0 %v8542_v17  ;;  %v8566_v17 = vld [vmem:[%s9447_s5 + $0x1b4] ss:$8 sps:$4 sm:$0xff]  }
 0xda9   : > { %2652 = vadd.xlane.f32.xlu1 %v2651_v11  ;;  %8073 = vmatprep.subr.bf16.mxu0 %v8543_v18  ;;  %v8564_v18 = vld [vmem:[%s9447_s5 + $0x1b0] ss:$8 sps:$4 sm:$0xff]  }
 0xdac   : > { %8074 = vmatpush3.bf16.msra.mxu0 %v8544_v19  ;;  %v8569_v19 = vld [vmem:[%s9447_s5 + $0x1c4] ss:$8 sps:$4 sm:$0xff]  }
 0xdad   : > { %8075 = vmatprep.subr.bf16.mxu0 %v8545_v20  ;;  %v8567_v20 = vld [vmem:[%s9447_s5 + $0x1c0] ss:$8 sps:$4 sm:$0xff]  }
 0xdb0   : > { %8076 = vmatpush3.bf16.msra.mxu0 %v8546_v21  ;;  %v8572_v21 = vld [vmem:[%s9447_s5 + $0x1d4] ss:$8 sps:$4 sm:$0xff]  }
 0xdb1   : > { %8077 = vmatprep.subr.bf16.mxu0 %v8547_v25  ;;  %v8570_v25 = vld [vmem:[%s9447_s5 + $0x1d0] ss:$8 sps:$4 sm:$0xff]  }
 0xdb4   : > { %8078 = vmatpush3.bf16.msra.mxu0 %v8548_v27  ;;  %v8575_v27 = vld [vmem:[%s9447_s5 + $0x1e4] ss:$8 sps:$4 sm:$0xff]  }
 0xdb5   : > { %8079 = vmatprep.subr.bf16.mxu0 %v8549_v28  ;;  %v8573_v28 = vld [vmem:[%s9447_s5 + $0x1e0] ss:$8 sps:$4 sm:$0xff]  }
 0xdb8   : > { %8080 = vmatpush3.bf16.msra.mxu0 %v8550_v29  ;;  %v8578_v29 = vld [vmem:[%s9447_s5 + $0x1f4] ss:$8 sps:$4 sm:$0xff]  }
 0xe34   : > { %v2648_v30 = vpop.xlane.xlu0 %2647 }
 0xe35   : > { %v2654_v31 = vmul.f32 0.00390625, %v2648_v30  ;;  %v8551_v30 = vld [vmem:[%s9439_s12 + $0x1f0] sm:$0xff]  }
 0xe36   : > { %v2653_v32 = vpop.xlane.xlu1 %2652  ;;  %8081 = vmatprep.subr.bf16.mxu0 %v8551_v30  ;;  %v8576_v30 = vld [vmem:[%s9447_s5 + $0x1f0] ss:$8 sps:$4 sm:$0xff]  }
 0xe37   : > { %v2655_v33 = vmul.f32 0.00390625, %v2653_v32  ;;  %v2656_v34 = vmul.f32 %v2654_v31, %v2654_v31  ;;  %v2658_v43 = vsub.f32 %v2644_v5, %v2654_v31  ;;  %v2659_v45 = vsub.f32 %v2645_v7, %v2654_v31  ;;  %v8552_v31 = vld [vmem:[%s9439_s12 + $0x1b0] sm:$0xff]   ;;  %v8553_v32 = vld [vmem:[%s9439_s12 + $0x1f8] sm:$0xff]  }
 0xe38   : > { %v2761_v5 = vrot.slane %v2751_v62, %v9526_v24  ;;  %8082 = vmatpush3.bf16.msra.mxu0 %v8552_v31  ;;  %v8555_v62 = vld [vmem:[%s9447_s5 + $0x180] ss:$8 sps:$4 sm:$0xff]  }
 0xe39   : > { %v2657_v35 = vsub.f32 %v2655_v33, %v2656_v34  ;;  %v8554_v33 = vld [vmem:[%s9439_s12 + $0x1b8] sm:$0xff]   ;;  %8083 = vmatprep.subr.bf16.mxu0 %v8553_v32 }
 0xe3b   : > { %v2660_v38 = vadd.f32 1e-05, %v2657_v35 }
 0xe3c   : > { %8084 = vmatpush3.bf16.msra.mxu0 %v8554_v33 }
 0xe3d   : > { %8643 = vrsqrt.f32 %v2660_v38 }
 0xe47   : > { %v8644_v47 = vpop.eup %8643 }
 0xe48   : > { %v2663_v48 = vmul.f32 %v8644_v47, %v2659_v45  ;;  %v2662_v52 = vmul.f32 %v8644_v47, %v2658_v43  ;;  %v2988_v43 = vrot.slane %v9921_v61, %v9569_v1  ;;  %v2984_v45 = vrot.slane %v9921_v61, %v9567_v0 }
 0xe4a   : > { %v2683_v54 = vmul.f32 %v2681_v44, %v2663_v48  ;;  %v2682_v55 = vmul.f32 %v2677_v46, %v2662_v52  ;;  %v3008_v44 = vrot.slane %v9921_v61, %v9573_v4  ;;  %v3004_v46 = vrot.slane %v9921_v61, %v9571_v2 }
 0xe4b   : > { %v2994_v52 = vrot.slane %v2984_v45, %v9567_v0 }
 0xe4c   : > { %v2703_v56 = vadd.f32 %v2701_v49, %v2683_v54  ;;  %v2702_v22 = vadd.f32 %v2697_v53, %v2682_v55  ;;  %v2998_v49 = vrot.slane %v2988_v43, %v9567_v0  ;;  %v3018_v55 = vrot.slane %v3008_v44, %v9571_v2 }
 0xe4e   : > { %v2705_v23 = vmax.f32 %v2703_v56, 0.0  ;;  %v2704_v57 = vmax.f32 %v2702_v22, 0.0  ;;  %v3014_v22 = vrot.slane %v3004_v46, %v9571_v2 }
 0xe50   : > { %v2742_v58 = vpack.c.bf16 %v2705_v23, %v2705_v23  ;;  %v2741_v59 = vpack.c.bf16 %v2704_v57, %v2704_v57 }
 0xe52   : > { %2954 = vmatprep.mubr.bf16.mxu1 %v2742_v58 }
 0xe53   : > { %2955 = vmatmul.mubr.bf16.vlgmr.msra.gmra.mrb[12].mxu1 %v2741_v59 }
 0xf26   : > { %v2956_v6 = vpop.f32.mrb[12].mxu1 }
 0xf27   : > { %v2957_v7 = vadd.f32 %v2956_v6, %v2757_v63  ;;  %v2958_v8 = vpop.f32.mrb[13].mxu1  ;;  %v8557_v63 = vld [vmem:[%s9447_s5 + $0x184] ss:$8 sps:$4 sm:$0xff]  }
 0xf28   : > { %v2959_v9 = vadd.f32 %v2958_v8, %v2761_v5  ;;  %v2960_v10 = vpop.f32.mrb[14].mxu1  ;;  %3324 = vmatprep.subr.bf16.mxu0 %v8557_v63  ;;  %v7340_v5 = vld [vmem:[%s9458_s15 + $0xc] sm:$0x7]  ;;  %v8602_v63 = vld [vmem:[%s9470_s25 + $0x374] ss:$8 sps:$4 sm:$0xff]  }
 0xf29   : > { %v2961_v11 = vpop.f32.mrb[15].mxu1  ;;  %v2966_v12 = vmul.f32 %v2957_v7, %v2957_v7  ;;  %v3223_v43 = vrot.slane %v7340_v5, %v9571_v2 }
 0xf2a   : > { %v2963_v13 = vadd.f32 %v2959_v9, %v2957_v7  ;;  %v2967_v14 = vmul.f32 %v2959_v9, %v2959_v9 }
 0xf2c   : > { %2964 = vadd.xlane.f32.xlu0 %v2963_v13  ;;  %v2968_v15 = vadd.f32 %v2967_v14, %v2966_v12  ;;  %v8560_v13 = vld [vmem:[%s9447_s5 + $0x194] ss:$8 sps:$4 sm:$0xff]   ;;  %v8558_v14 = vld [vmem:[%s9447_s5 + $0x190] ss:$8 sps:$4 sm:$0xff]  }
 0xf2e   : > { %2969 = vadd.xlane.f32.xlu1 %v2968_v15  ;;  %v8563_v15 = vld [vmem:[%s9447_s5 + $0x1a4] ss:$8 sps:$4 sm:$0xff]  }
 0xfb9   : > { %v2965_v34 = vpop.xlane.xlu0 %2964 }
 0xfba   : > { %v2971_v35 = vmul.f32 0.00390625, %v2965_v34 }
 0xfbb   : > { %v2970_v38 = vpop.xlane.xlu1 %2969 }
 0xfbc   : > { %v2972_v39 = vmul.f32 0.00390625, %v2970_v38  ;;  %v2973_v40 = vmul.f32 %v2971_v35, %v2971_v35  ;;  %v2975_v47 = vsub.f32 %v2957_v7, %v2971_v35  ;;  %v2976_v48 = vsub.f32 %v2959_v9, %v2971_v35 }
 0xfbd   : > { %v3065_v7 = vrot.slane %v7340_v5, %v9526_v24 }
 0xfbe   : > { %v2974_v41 = vsub.f32 %v2972_v39, %v2973_v40  ;;  %v3218_v40 = vrot.slane %v7340_v5, %v9567_v0  ;;  %v8600_v5 = vld [vmem:[%s9470_s25 + $0x370] ss:$8 sps:$4 sm:$0xff]  }
 0xfc0   : > { %v2977_v42 = vadd.f32 1e-05, %v2974_v41 }
 0xfc2   : > { %8645 = vrsqrt.f32 %v2977_v42 }
 0xfcc   : > { %v8646_v53 = vpop.eup %8645 }
 0xfcd   : > { %v2980_v54 = vmul.f32 %v8646_v53, %v2976_v48  ;;  %v2979_v56 = vmul.f32 %v8646_v53, %v2975_v47  ;;  %v8584_v53 = vld [vmem:[%s9470_s25 + $0x314] ss:$8 sps:$4 sm:$0xff]  }
 0xfcf   : > { %v3000_v23 = vmul.f32 %v2998_v49, %v2980_v54  ;;  %v2999_v57 = vmul.f32 %v2994_v52, %v2979_v56  ;;  %v8579_v49 = vld [vmem:[%s9470_s25 + $0x300] ss:$8 sps:$4 sm:$0xff]   ;;  %v8581_v52 = vld [vmem:[%s9470_s25 + $0x304] ss:$8 sps:$4 sm:$0xff]   ;;  %v8582_v54 = vld [vmem:[%s9470_s25 + $0x310] ss:$8 sps:$4 sm:$0xff]  }
 0xfd0   : > { %3668 = vmatprep.subr.bf16.mxu1 %v8581_v52  ;;  %v8585_v56 = vld [vmem:[%s9470_s25 + $0x320] ss:$8 sps:$4 sm:$0xff]  }
 0xfd1   : > { %v3020_v58 = vadd.f32 %v3018_v55, %v3000_v23  ;;  %v3019_v59 = vadd.f32 %v3014_v22, %v2999_v57  ;;  %3669 = vmatpush1.bf16.msra.mxu1 %v8579_v49  ;;  %v8587_v55 = vld [vmem:[%s9470_s25 + $0x324] ss:$8 sps:$4 sm:$0xff]   ;;  %v8590_v22 = vld [vmem:[%s9470_s25 + $0x334] ss:$8 sps:$4 sm:$0xff]   ;;  %v8588_v23 = vld [vmem:[%s9470_s25 + $0x330] ss:$8 sps:$4 sm:$0xff]  }
 0xfd2   : > { %3670 = vmatprep.subr.bf16.mxu1 %v8584_v53  ;;  %v8593_v57 = vld [vmem:[%s9470_s25 + $0x344] ss:$8 sps:$4 sm:$0xff]  }
 0xfd3   : > { %v9955_v60 = vmax.f32 %v3020_v58, 0.0  ;;  %v9957_v37 = vmax.f32 %v3019_v59, 0.0  ;;  %v8591_v58 = vld [vmem:[%s9470_s25 + $0x340] ss:$8 sps:$4 sm:$0xff]   ;;  %v8596_v59 = vld [vmem:[%s9470_s25 + $0x354] ss:$8 sps:$4 sm:$0xff]  }
 0xfd5   : > { %v3061_v61 = vpack.c.bf16 %v9955_v60, %v9955_v60  ;;  %v3060_v36 = vpack.c.bf16 %v9957_v37, %v9957_v37  ;;  %3671 = vmatpush1.bf16.msra.mxu1 %v8582_v54 }
 0xfd6   : > { %3672 = vmatprep.subr.bf16.mxu1 %v8587_v55 }
 0xfd7   : > { %3194 = vmatprep.mubr.bf16.mxu0 %v3061_v61  ;;  %v8594_v61 = vld [vmem:[%s9470_s25 + $0x350] ss:$8 sps:$4 sm:$0xff]  }
 0xfd8   : > { %3195 = vmatmul.mubr.bf16.vlgmr.msra.gmra.mrb[24].mxu0 %v3060_v36  ;;  %v8599_v36 = vld [vmem:[%s9470_s25 + $0x364] ss:$8 sps:$4 sm:$0xff]  }
 0xfd9   : > { %3356 = vmatprep.mubr.bf16.mxu0 %v9188_v3  ;;  %3325 = vmatpush1.bf16.msra.mxu0 %v8555_v62  ;;  %v8597_v62 = vld [vmem:[%s9470_s25 + $0x360] ss:$8 sps:$4 sm:$0xff]  }
 0xfda   : > { %3326 = vmatprep.subr.bf16.mxu0 %v8560_v13  ;;  %3673 = vmatpush1.bf16.msra.mxu1 %v8585_v56 }
 0xfdb   : > { %3674 = vmatprep.subr.bf16.mxu1 %v8590_v22 }
 0xfdd   : > { %3327 = vmatpush1.bf16.msra.mxu0 %v8558_v14 }
 0xfde   : > { %3328 = vmatprep.subr.bf16.mxu0 %v8563_v15  ;;  %3675 = vmatpush1.bf16.msra.mxu1 %v8588_v23 }
 0xfdf   : > { %3676 = vmatprep.subr.bf16.mxu1 %v8593_v57 }
 0xfe1   : > { %3329 = vmatpush1.bf16.msra.mxu0 %v8561_v16 }
 0xfe2   : > { %3330 = vmatprep.subr.bf16.mxu0 %v8566_v17  ;;  %3677 = vmatpush1.bf16.msra.mxu1 %v8591_v58 }
 0xfe3   : > { %3678 = vmatprep.subr.bf16.mxu1 %v8596_v59 }
 0xfe5   : > { %3331 = vmatpush1.bf16.msra.mxu0 %v8564_v18 }
 0xfe6   : > { %3332 = vmatprep.subr.bf16.mxu0 %v8569_v19  ;;  %3679 = vmatpush1.bf16.msra.mxu1 %v8594_v61 }
 0xfe7   : > { %3680 = vmatprep.subr.bf16.mxu1 %v8599_v36 }
 0xfe9   : > { %3333 = vmatpush1.bf16.msra.mxu0 %v8567_v20 }
 0xfea   : > { %3334 = vmatprep.subr.bf16.mxu0 %v8572_v21  ;;  %3681 = vmatpush1.bf16.msra.mxu1 %v8597_v62 }
 0xfeb   : > { %3682 = vmatprep.subr.bf16.mxu1 %v8602_v63 }
 0xfed   : > { %3335 = vmatpush1.bf16.msra.mxu0 %v8570_v25  ;;  %v8603_v25 = vld [vmem:[%s9470_s25 + $0x380] ss:$8 sps:$4 sm:$0xff]  }
 0xfee   : > { %3336 = vmatprep.subr.bf16.mxu0 %v8575_v27  ;;  %3683 = vmatpush1.bf16.msra.mxu1 %v8600_v5  ;;  %v8606_v27 = vld [vmem:[%s9470_s25 + $0x390] ss:$8 sps:$4 sm:$0xff]  }
 0xff1   : > { %3337 = vmatpush1.bf16.msra.mxu0 %v8573_v28  ;;  %v8611_v28 = vld [vmem:[%s9470_s25 + $0x3a4] ss:$8 sps:$4 sm:$0xff]  }
 0xff2   : > { %3338 = vmatprep.subr.bf16.mxu0 %v8578_v29  ;;  %v8609_v29 = vld [vmem:[%s9470_s25 + $0x3a0] ss:$8 sps:$4 sm:$0xff]  }
 0xff5   : > { %3339 = vmatpush1.bf16.msra.mxu0 %v8576_v30  ;;  %v8614_v30 = vld [vmem:[%s9470_s25 + $0x3b4] ss:$8 sps:$4 sm:$0xff]  }
0x10ab   : > { %v8085_v6 = vpop.f32.mrb[24].mxu0 }
0x10ac   : > { %v8086_v8 = vpop.f32.mrb[25].mxu0 }
0x10ad   : > { %v8087_v9 = vadd.f32 %v8086_v8, %v8085_v6  ;;  %v8088_v10 = vpop.f32.mrb[26].mxu0  ;;  %v10001_v6 = vld [vmem:[%s9463_s29 + $0x18] sm:$0x77] }
0x10ae   : > { %v8089_v11 = vpop.f32.mrb[27].mxu0  ;;  %v3375_v8 = vrot.slane %v10001_v6, %v9533_v26  ;;  %v3413_v49 = vrot.slane %v10001_v6, %v9569_v1  ;;  %v3409_v52 = vrot.slane %v10001_v6, %v9567_v0  ;;  %v3433_v53 = vrot.slane %v10001_v6, %v9573_v4 }
0x10af   : > { %v3197_v3 = vadd.f32 %v8087_v9, %v3065_v7  ;;  %v3371_v7 = vrot.slane %v10001_v6, %v9526_v24  ;;  %v3429_v54 = vrot.slane %v10001_v6, %v9571_v2 }
0x10b0   : > { %v3385_v11 = vrot.slane %v3375_v8, %v9526_v24  ;;  %v3423_v22 = vrot.slane %v3413_v49, %v9567_v0  ;;  %v3419_v23 = vrot.slane %v3409_v52, %v9567_v0  ;;  %v3443_v61 = vrot.slane %v3433_v53, %v9571_v2 }
0x10b1   : > { %3202 = vadd.xlane.f32.xlu0 %v3197_v3  ;;  %v3204_v12 = vmul.f32 %v3197_v3, %v3197_v3  ;;  %v3381_v9 = vrot.slane %v3371_v7, %v9526_v24  ;;  %v3439_v36 = vrot.slane %v3429_v54, %v9571_v2 }
0x10b3   : > { %3205 = vadd.xlane.f32.xlu1 %v3204_v12 }
0x113e   : > { %v3203_v31 = vpop.xlane.xlu0 %3202 }
0x113f   : > { %v3207_v32 = vmul.f32 0.0078125, %v3203_v31  ;;  %v8612_v31 = vld [vmem:[%s9470_s25 + $0x3b0] ss:$8 sps:$4 sm:$0xff]  }
0x1140   : > { %v3206_v33 = vpop.xlane.xlu1 %3205 }
0x1141   : > { %v3209_v34 = vmul.f32 %v3207_v32, %v3207_v32  ;;  %v3208_v35 = vmul.f32 0.0078125, %v3206_v33  ;;  %v3211_v41 = vsub.f32 %v3197_v3, %v3207_v32  ;;  %v8617_v32 = vld [vmem:[%s9470_s25 + $0x3c4] ss:$8 sps:$4 sm:$0xff]   ;;  %v8615_v33 = vld [vmem:[%s9470_s25 + $0x3c0] ss:$8 sps:$4 sm:$0xff]  }
0x1143   : > { %v3210_v38 = vsub.f32 %v3208_v35, %v3209_v34  ;;  %v8618_v34 = vld [vmem:[%s9470_s25 + $0x3d0] ss:$8 sps:$4 sm:$0xff]   ;;  %v8620_v35 = vld [vmem:[%s9470_s25 + $0x3d4] ss:$8 sps:$4 sm:$0xff]  }
0x1145   : > { %v3212_v39 = vadd.f32 1e-05, %v3210_v38  ;;  %v8623_v38 = vld [vmem:[%s9470_s25 + $0x3e4] ss:$8 sps:$4 sm:$0xff]  }
0x1147   : > { %8647 = vrsqrt.f32 %v3212_v39  ;;  %v8621_v39 = vld [vmem:[%s9470_s25 + $0x3e0] ss:$8 sps:$4 sm:$0xff]  }
0x1151   : > { %v8648_v42 = vpop.eup %8647 }
0x1152   : > { %v3214_v45 = vmul.f32 %v8648_v42, %v3211_v41  ;;  %v8624_v41 = vld [vmem:[%s9470_s25 + $0x3f0] ss:$8 sps:$4 sm:$0xff]  }
0x1154   : > { %v3219_v44 = vmul.f32 %v3218_v40, %v3214_v45  ;;  %v8626_v40 = vld [vmem:[%s9470_s25 + $0x3f4] ss:$8 sps:$4 sm:$0xff]  }
0x1156   : > { %v3224_v46 = vadd.f32 %v3223_v43, %v3219_v44 }
0x1158   : > { %v3225_v47 = vmax.f32 %v3224_v46, 0.0 }
0x115a   : > { %v3243_v48 = vpack.c.bf16 %v3225_v47, %v3225_v47 }
0x115c   : > { %3357 = vmatmul.mubr.bf16.vlgmr.msra.gmra.mrb[28].mxu0 %v3243_v48 }
0x122f   : > { %v3358_v10 = vpop.f32.mrb[28].mxu0 }
0x1230   : > { %v3365_v3 = vadd.f32 %v3358_v10, %v9957_v37  ;;  %v3360_v12 = vpop.f32.mrb[29].mxu0  ;;  %v8605_v37 = vld [vmem:[%s9470_s25 + $0x384] ss:$8 sps:$4 sm:$0xff]  }
0x1231   : > { %v3366_v13 = vadd.f32 %v3360_v12, %v9955_v60  ;;  %v3362_v14 = vpop.f32.mrb[30].mxu0  ;;  %3684 = vmatprep.subr.bf16.mxu1 %v8605_v37  ;;  %v8608_v60 = vld [vmem:[%s9470_s25 + $0x394] ss:$8 sps:$4 sm:$0xff]  }
0x1232   : > { %v3386_v15 = vadd.f32 %v3381_v9, %v3365_v3  ;;  %v3363_v16 = vpop.f32.mrb[31].mxu0  ;;  %3685 = vmatpush1.bf16.msra.mxu1 %v8603_v25  ;;  %v8654_v12 = vld [vmem:[#allocation4] sm:$0xff] }
0x1233   : > { %v3387_v17 = vadd.f32 %v3385_v11, %v3366_v13  ;;  %3686 = vmatprep.subr.bf16.mxu1 %v8608_v60  ;;  %v8653_v11 = vld [vmem:[#allocation4 + $0x8] sm:$0xff]  ;;  %v7454_v16 = vld [vmem:[%s9468_s21 + $0x18] sm:$0x77] }
0x1234   : > { %v3391_v18 = vmul.f32 %v3386_v15, %v3386_v15 }
0x1235   : > { %v3388_v19 = vadd.f32 %v3387_v17, %v3386_v15  ;;  %v3392_v20 = vmul.f32 %v3387_v17, %v3387_v17 }
0x1236   : > { %3687 = vmatpush1.bf16.msra.mxu1 %v8606_v27 }
0x1237   : > { %3389 = vadd.xlane.f32.xlu0 %v3388_v19  ;;  %v3393_v21 = vadd.f32 %v3392_v20, %v3391_v18  ;;  %3688 = vmatprep.subr.bf16.mxu1 %v8611_v28  ;;  %v3497_v18 = vrot.slane %v7454_v16, %v9533_v26 }
0x1239   : > { %3394 = vadd.xlane.f32.xlu1 %v3393_v21  ;;  %v3507_v20 = vrot.slane %v3497_v18, %v9526_v24 }
0x123a   : > { %3689 = vmatpush1.bf16.msra.mxu1 %v8609_v29 }
0x123b   : > { %3690 = vmatprep.subr.bf16.mxu1 %v8614_v30 }
0x123e   : > { %3691 = vmatpush1.bf16.msra.mxu1 %v8612_v31 }
0x123f   : > { %3692 = vmatprep.subr.bf16.mxu1 %v8617_v32 }
0x1242   : > { %3693 = vmatpush1.bf16.msra.mxu1 %v8615_v33 }
0x1243   : > { %3694 = vmatprep.subr.bf16.mxu1 %v8620_v35 }
0x1246   : > { %3695 = vmatpush1.bf16.msra.mxu1 %v8618_v34 }
0x1247   : > { %3696 = vmatprep.subr.bf16.mxu1 %v8623_v38 }
0x124a   : > { %3697 = vmatpush1.bf16.msra.mxu1 %v8621_v39  ;;  %v3734_v39 = vrot.slane %v7454_v16, %v9569_v1 }
0x124b   : > { %3698 = vmatprep.subr.bf16.mxu1 %v8626_v40  ;;  %v3750_v40 = vrot.slane %v7454_v16, %v9571_v2 }
0x124e   : > { %3699 = vmatpush1.bf16.msra.mxu1 %v8624_v41  ;;  %v3754_v41 = vrot.slane %v7454_v16, %v9573_v4 }
0x12c4   : > { %v3390_v42 = vpop.xlane.xlu0 %3389 }
0x12c5   : > { %v3396_v43 = vmul.f32 0.00390625, %v3390_v42 }
0x12c6   : > { %v3395_v45 = vpop.xlane.xlu1 %3394 }
0x12c7   : > { %v3397_v44 = vmul.f32 0.00390625, %v3395_v45  ;;  %v3398_v46 = vmul.f32 %v3396_v43, %v3396_v43  ;;  %v3400_v55 = vsub.f32 %v3386_v15, %v3396_v43  ;;  %v3401_v56 = vsub.f32 %v3387_v17, %v3396_v43 }
0x12c8   : > { %v3493_v17 = vrot.slane %v7454_v16, %v9526_v24 }
0x12c9   : > { %v3399_v47 = vsub.f32 %v3397_v44, %v3398_v46  ;;  %v3744_v44 = vrot.slane %v3734_v39, %v9567_v0 }
0x12ca   : > { %v3503_v19 = vrot.slane %v3493_v17, %v9526_v24  ;;  %v3730_v24 = vrot.slane %v7454_v16, %v9567_v0 }
0x12cb   : > { %v3402_v48 = vadd.f32 1e-05, %v3399_v47  ;;  %v3760_v47 = vrot.slane %v3750_v40, %v9571_v2 }
0x12cc   : > { %v3740_v45 = vrot.slane %v3730_v24, %v9567_v0 }
0x12cd   : > { %8649 = vrsqrt.f32 %v3402_v48  ;;  %v3764_v48 = vrot.slane %v3754_v41, %v9571_v2 }
0x12d7   : > { %v8650_v57 = vpop.eup %8649 }
0x12d8   : > { %v3404_v58 = vmul.f32 %v8650_v57, %v3400_v55  ;;  %v3405_v59 = vmul.f32 %v8650_v57, %v3401_v56 }
0x12da   : > { %v3425_v62 = vmul.f32 %v3423_v22, %v3405_v59  ;;  %v3424_v63 = vmul.f32 %v3419_v23, %v3404_v58 }
0x12dc   : > { %v3445_v5 = vadd.f32 %v3443_v61, %v3425_v62  ;;  %v3444_v7 = vadd.f32 %v3439_v36, %v3424_v63 }
0x12de   : > { %v3447_v8 = vmax.f32 %v3445_v5, 0.0  ;;  %v3446_v6 = vmax.f32 %v3444_v7, 0.0 }
0x12e0   : > { %v3449_v9 = vadd.f32 %v3447_v8, %v9834_v50  ;;  %v3448_v10 = vadd.f32 %v3446_v6, %v9836_v51 }
0x12e2   : > { %v3451_v3 = vadd.f32 %v8653_v11, %v3449_v9  ;;  %v3450_v13 = vadd.f32 %v8654_v12, %v3448_v10 }
0x12e4   : > { %v3488_v14 = vpack.c.bf16 %v3451_v3, %v3451_v3  ;;  %v3487_v15 = vpack.c.bf16 %v3450_v13, %v3450_v13 }
0x12e6   : > { %3700 = vmatprep.mubr.bf16.mxu1 %v3488_v14 }
0x12e7   : > { %3701 = vmatmul.mubr.bf16.vlgmr.msra.gmra.mrb[16].mxu1 %v3487_v15 }
0x13ba   : > { %v3702_v50 = vpop.f32.mrb[16].mxu1 }
0x13bb   : > { %v3703_v21 = vadd.f32 %v3702_v50, %v3503_v19  ;;  %v3704_v51 = vpop.f32.mrb[17].mxu1 }
0x13bc   : > { %v3705_v37 = vadd.f32 %v3704_v51, %v3507_v20  ;;  %v3706_v25 = vpop.f32.mrb[18].mxu1 }
0x13bd   : > { %v3707_v60 = vpop.f32.mrb[19].mxu1  ;;  %v3712_v27 = vmul.f32 %v3703_v21, %v3703_v21 }
0x13be   : > { %v3709_v28 = vadd.f32 %v3705_v37, %v3703_v21  ;;  %v3713_v29 = vmul.f32 %v3705_v37, %v3705_v37 }
0x13c0   : > { %3710 = vadd.xlane.f32.xlu0 %v3709_v28  ;;  %v3714_v30 = vadd.f32 %v3713_v29, %v3712_v27 }
0x13c2   : > { %3715 = vadd.xlane.f32.xlu1 %v3714_v30 }
0x144d   : > { %v3711_v31 = vpop.xlane.xlu0 %3710 }
0x144e   : > { %v3717_v32 = vmul.f32 0.00390625, %v3711_v31 }
0x144f   : > { %v3716_v33 = vpop.xlane.xlu1 %3715 }
0x1450   : > { %v3718_v26 = vmul.f32 0.00390625, %v3716_v33  ;;  %v3719_v34 = vmul.f32 %v3717_v32, %v3717_v32  ;;  %v3721_v42 = vsub.f32 %v3703_v21, %v3717_v32  ;;  %v3722_v43 = vsub.f32 %v3705_v37, %v3717_v32 }
0x1452   : > { %v3720_v35 = vsub.f32 %v3718_v26, %v3719_v34 }
0x1454   : > { %v3723_v38 = vadd.f32 1e-05, %v3720_v35 }
0x1456   : > { %8651 = vrsqrt.f32 %v3723_v38 }
0x1460   : > { %v8652_v46 = vpop.eup %8651 }
0x1461   : > { %v3725_v49 = vmul.f32 %v8652_v46, %v3721_v42  ;;  %v3726_v52 = vmul.f32 %v8652_v46, %v3722_v43 }
0x1463   : > { %v3745_v53 = vmul.f32 %v3740_v45, %v3725_v49  ;;  %v3746_v54 = vmul.f32 %v3744_v44, %v3726_v52 }
0x1465   : > { %v3765_v1 = vadd.f32 %v3760_v47, %v3745_v53  ;;  %v3766_v55 = vadd.f32 %v3764_v48, %v3746_v54 }
0x1467   : > { %v3767_v56 = vmax.f32 %v3765_v1, 0.0  ;;  %v3768_v22 = vmax.f32 %v3766_v55, 0.0 }
0x1469   : > { %3769 = vst [vmem:[#allocation3] sm:$0xff] %v3767_v56  ;;  %3770 = vst [vmem:[#allocation3 + $0x8] sm:$0xff] %v3768_v22 }
0x146a PF: > { %p7487_p7 = scmp.ne.s32.totalorder %s9171_s22, 1 }
0x146b   : > { %v8655_v0 = vld [vmem:[%s9439_s12 + $0x40] sm:$0xff] (!%p7487_p7)   ;;  %v8657_v4 = vld [vmem:[%s9439_s12 + $0x48] sm:$0xff] (!%p7487_p7)   ;;  %v8659_v57 = vld [vmem:[%s9439_s12 + $0x50] sm:$0xff] (!%p7487_p7)   ;;  %v3817_v15 = vlaneseq (!%p7487_p7)  ;;  %v9190_v35 = vmov (!%p7487_p7), 0   ;;  %vm6776_vm1 = vcmask (!%p7487_p7), 7168  }
0x146c   : > { %3776 = sbr.rel (%p7487_p7) target bundleno = 10090 (0x276a), region = 84  ;;  %v8656_v2 = vld [vmem:[%s9439_s12] sm:$0xff] (!%p7487_p7)   ;;  %8091 = vmatprep.subr.bf16.mxu1 (!%p7487_p7), %v8655_v0  ;;  %v8658_v23 = vld [vmem:[%s9439_s12 + $0x8] sm:$0xff] (!%p7487_p7)   ;;  %v8660_v58 = vld [vmem:[%s9439_s12 + $0x10] sm:$0xff] (!%p7487_p7)  }
0x146d   : > { %8092 = vmatpush3.bf16.msra.mxu1 (!%p7487_p7), %v8656_v2  ;;  %v8661_v59 = vld [vmem:[%s9439_s12 + $0x58] sm:$0xff] (!%p7487_p7)   ;;  %v8663_v36 = vld [vmem:[%s9439_s12 + $0x60] sm:$0xff] (!%p7487_p7)   ;;  %v8665_v63 = vld [vmem:[%s9439_s12 + $0x68] sm:$0xff] (!%p7487_p7)   ;;  %v10081_v16 = vshrl.u32 (!%p7487_p7), %v3817_v15, 7 }
0x146e   : > { %8093 = vmatprep.subr.bf16.mxu1 (!%p7487_p7), %v8657_v4  ;;  %v8662_v61 = vld [vmem:[%s9439_s12 + $0x18] sm:$0xff] (!%p7487_p7)   ;;  %v8664_v62 = vld [vmem:[%s9439_s12 + $0x20] sm:$0xff] (!%p7487_p7)   ;;  %v8666_v7 = vld [vmem:[%s9439_s12 + $0x28] sm:$0xff] (!%p7487_p7)  }
0x146f   : > { %v8667_v6 = vld [vmem:[%s9439_s12 + $0x70] sm:$0xff] (!%p7487_p7)   ;;  %v8669_v10 = vld [vmem:[%s9439_s12 + $0x78] sm:$0xff] (!%p7487_p7)   ;;  %v8671_v13 = vld [vmem:[%s9447_s5] ss:$8 sps:$4 sm:$0xff] (!%p7487_p7)   ;;  %v10084_v17 = vsub.s32 (!%p7487_p7), 0, %v10081_v16  ;;  %v10104_v49 = vsub.s32 (!%p7487_p7), 1, %v10081_v16 }
0x1470   : > { %v10066_v5 = vld [vmem:[#allocation3 + $0x8] sm:$0xff] (!%p7487_p7)  ;;  %v8668_v9 = vld [vmem:[%s9439_s12 + $0x30] sm:$0xff] (!%p7487_p7)   ;;  %v8670_v11 = vld [vmem:[%s9439_s12 + $0x38] sm:$0xff] (!%p7487_p7)   ;;  %v10107_v52 = vsub.s32 (!%p7487_p7), 2, %v10081_v16  ;;  %v10131_v15 = vsub.s32 (!%p7487_p7), 4, %v10081_v16 }
0x1471   : > { %8094 = vmatpush3.bf16.msra.mxu1 (!%p7487_p7), %v8658_v23  ;;  %v3816_v8 = vpack.c.bf16 (!%p7487_p7), %v10066_v5, %v10066_v5  ;;  %v10075_v3 = vld [vmem:[#allocation3] sm:$0xff] (!%p7487_p7)  ;;  %v3781_v18 = vld [vmem:[%s9458_s15] sm:$0x7] (!%p7487_p7) }
0x1472   : > { %8095 = vmatprep.subr.bf16.mxu1 (!%p7487_p7), %v8659_v57  ;;  %v3815_v12 = vpack.c.bf16 (!%p7487_p7), %v10075_v3, %v10075_v3  ;;  %v8673_v14 = vld [vmem:[%s9447_s5 + $0x4] ss:$8 sps:$4 sm:$0xff] (!%p7487_p7)   ;;  %v3820_v20 = vrot.slane (!%p7487_p7), %v3781_v18, %v10084_v17  ;;  %v8676_v27 = vld [vmem:[%s9447_s5 + $0x14] ss:$8 sps:$4 sm:$0xff] (!%p7487_p7)   ;;  %v8674_v28 = vld [vmem:[%s9447_s5 + $0x10] ss:$8 sps:$4 sm:$0xff] (!%p7487_p7)   ;;  %v3973_v53 = vrot.slane (!%p7487_p7), %v3781_v18, %v10104_v49  ;;  %v3978_v55 = vrot.slane (!%p7487_p7), %v3781_v18, %v10107_v52 }
0x1473   : > { %3949 = vmatprep.mubr.bf16.mxu1 %v3816_v8  ;;  %v8679_v29 = vld [vmem:[%s9447_s5 + $0x24] ss:$8 sps:$4 sm:$0xff]   ;;  %v8677_v30 = vld [vmem:[%s9447_s5 + $0x20] ss:$8 sps:$4 sm:$0xff]   ;;  %v8682_v31 = vld [vmem:[%s9447_s5 + $0x34] ss:$8 sps:$4 sm:$0xff]  }
0x1474   : > { %v8680_v32 = vld [vmem:[%s9447_s5 + $0x30] ss:$8 sps:$4 sm:$0xff]   ;;  %v8685_v33 = vld [vmem:[%s9447_s5 + $0x44] ss:$8 sps:$4 sm:$0xff]   ;;  %v8683_v26 = vld [vmem:[%s9447_s5 + $0x40] ss:$8 sps:$4 sm:$0xff]  }
0x1475   : > { %8096 = vmatpush3.bf16.msra.mxu1 %v8660_v58  ;;  %v8688_v34 = vld [vmem:[%s9447_s5 + $0x54] ss:$8 sps:$4 sm:$0xff]   ;;  %v8686_v38 = vld [vmem:[%s9447_s5 + $0x50] ss:$8 sps:$4 sm:$0xff]   ;;  %v8691_v24 = vld [vmem:[%s9447_s5 + $0x64] ss:$8 sps:$4 sm:$0xff]  }
0x1476   : > { %8097 = vmatprep.subr.bf16.mxu1 %v8661_v59  ;;  %v8689_v39 = vld [vmem:[%s9447_s5 + $0x60] ss:$8 sps:$4 sm:$0xff]   ;;  %v8694_v40 = vld [vmem:[%s9447_s5 + $0x74] ss:$8 sps:$4 sm:$0xff]   ;;  %v8692_v41 = vld [vmem:[%s9447_s5 + $0x70] ss:$8 sps:$4 sm:$0xff]  }
0x1477   : > { %v8695_v23 = vld [vmem:[%s9470_s25 + $0x4] ss:$8 sps:$4 sm:$0xff]   ;;  %v8697_v57 = vld [vmem:[%s9470_s25] ss:$8 sps:$4 sm:$0xff]   ;;  %v8698_v58 = vld [vmem:[%s9470_s25 + $0x14] ss:$8 sps:$4 sm:$0xff]  }
0x1478   : > { %4416 = vmatprep.subr.bf16.mxu0 %v8695_v23  ;;  %v8700_v59 = vld [vmem:[%s9470_s25 + $0x10] ss:$8 sps:$4 sm:$0xff]   ;;  %v8709_v8 = vld [vmem:[%s9470_s25 + $0x40] ss:$8 sps:$4 sm:$0xff]  }
0x1479   : > { %8098 = vmatpush3.bf16.msra.mxu1 %v8662_v61  ;;  %4417 = vmatpush1.bf16.msra.mxu0 %v8697_v57  ;;  %v8701_v61 = vld [vmem:[%s9470_s25 + $0x24] ss:$8 sps:$4 sm:$0xff]  }
0x147a   : > { %8099 = vmatprep.subr.bf16.mxu1 %v8663_v36  ;;  %4418 = vmatprep.subr.bf16.mxu0 %v8698_v58  ;;  %v8703_v36 = vld [vmem:[%s9470_s25 + $0x20] ss:$8 sps:$4 sm:$0xff]  }
0x147d   : > { %8100 = vmatpush3.bf16.msra.mxu1 %v8664_v62  ;;  %4419 = vmatpush1.bf16.msra.mxu0 %v8700_v59  ;;  %v8704_v62 = vld [vmem:[%s9470_s25 + $0x34] ss:$8 sps:$4 sm:$0xff]  }
0x147e   : > { %8101 = vmatprep.subr.bf16.mxu1 %v8665_v63  ;;  %4420 = vmatprep.subr.bf16.mxu0 %v8701_v61  ;;  %v8706_v63 = vld [vmem:[%s9470_s25 + $0x30] ss:$8 sps:$4 sm:$0xff]  }
0x1481   : > { %8102 = vmatpush3.bf16.msra.mxu1 %v8666_v7  ;;  %4421 = vmatpush1.bf16.msra.mxu0 %v8703_v36  ;;  %v8707_v7 = vld [vmem:[%s9470_s25 + $0x44] ss:$8 sps:$4 sm:$0xff]  }
0x1482   : > { %8103 = vmatprep.subr.bf16.mxu1 %v8667_v6  ;;  %4422 = vmatprep.subr.bf16.mxu0 %v8704_v62  ;;  %v8710_v6 = vld [vmem:[%s9470_s25 + $0x54] ss:$8 sps:$4 sm:$0xff]  }
0x1485   : > { %8104 = vmatpush3.bf16.msra.mxu1 %v8668_v9  ;;  %4423 = vmatpush1.bf16.msra.mxu0 %v8706_v63  ;;  %v8712_v9 = vld [vmem:[%s9470_s25 + $0x50] ss:$8 sps:$4 sm:$0xff]  }
0x1486   : > { %8105 = vmatprep.subr.bf16.mxu1 %v8669_v10  ;;  %4424 = vmatprep.subr.bf16.mxu0 %v8707_v7  ;;  %v8713_v10 = vld [vmem:[%s9470_s25 + $0x64] ss:$8 sps:$4 sm:$0xff]  }
0x1489   : > { %8106 = vmatpush3.bf16.msra.mxu1 %v8670_v11  ;;  %4425 = vmatpush1.bf16.msra.mxu0 %v8709_v8  ;;  %v8715_v11 = vld [vmem:[%s9470_s25 + $0x60] ss:$8 sps:$4 sm:$0xff]  }
0x148a   : > { %4078 = vmatprep.subr.bf16.mxu1 %v8673_v14  ;;  %4426 = vmatprep.subr.bf16.mxu0 %v8710_v6  ;;  %v10128_v14 = vld [vmem:[%s9463_s29] sm:$0x77] }
0x148b   : > { %v4125_v18 = vrot.slane %v10128_v14, %v10084_v17  ;;  %v4163_v57 = vrot.slane %v10128_v14, %v10104_v49  ;;  %v4183_v59 = vrot.slane %v10128_v14, %v10107_v52 }
0x148c   : > { %3950 = vmatmul.mubr.bf16.vlgmr.msra.gmra.mrb[0].mxu1 %v3815_v12  ;;  %v8716_v12 = vld [vmem:[%s9470_s25 + $0x74] ss:$8 sps:$4 sm:$0xff]  }
0x148d   : > { %4079 = vmatpush1.bf16.msra.mxu1 %v8671_v13  ;;  %4110 = vmatprep.mubr.bf16.mxu1 %v9190_v35  ;;  %v8718_v13 = vld [vmem:[%s9470_s25 + $0x70] ss:$8 sps:$4 sm:$0xff]  }
0x148e   : > { %4080 = vmatprep.subr.bf16.mxu1 %v8676_v27  ;;  %4427 = vmatpush1.bf16.msra.mxu0 %v8712_v9  ;;  %v4193_v9 = vrot.slane %v4183_v59, %v10107_v52 }
0x148f   : > { %4428 = vmatprep.subr.bf16.mxu0 %v8713_v10 }
0x1491   : > { %4081 = vmatpush1.bf16.msra.mxu1 %v8674_v28 }
0x1492   : > { %4082 = vmatprep.subr.bf16.mxu1 %v8679_v29  ;;  %4429 = vmatpush1.bf16.msra.mxu0 %v8715_v11 }
0x1493   : > { %4430 = vmatprep.subr.bf16.mxu0 %v8716_v12 }
0x1495   : > { %4083 = vmatpush1.bf16.msra.mxu1 %v8677_v30 }
0x1496   : > { %4084 = vmatprep.subr.bf16.mxu1 %v8682_v31  ;;  %4431 = vmatpush1.bf16.msra.mxu0 %v8718_v13 }
0x1499   : > { %4085 = vmatpush1.bf16.msra.mxu1 %v8680_v32 }
0x149a   : > { %4086 = vmatprep.subr.bf16.mxu1 %v8685_v33  ;;  %v8721_v33 = vld [vmem:[%s9470_s25 + $0x80] ss:$8 sps:$4 sm:$0xff]  }
0x149d   : > { %4087 = vmatpush1.bf16.msra.mxu1 %v8683_v26  ;;  %v8722_v26 = vld [vmem:[%s9470_s25 + $0x94] ss:$8 sps:$4 sm:$0xff]  }
0x149e   : > { %4088 = vmatprep.subr.bf16.mxu1 %v8688_v34  ;;  %v8724_v34 = vld [vmem:[%s9470_s25 + $0x90] ss:$8 sps:$4 sm:$0xff]  }
0x14a1   : > { %4089 = vmatpush1.bf16.msra.mxu1 %v8686_v38  ;;  %v8725_v38 = vld [vmem:[%s9470_s25 + $0xa4] ss:$8 sps:$4 sm:$0xff]  }
0x14a2   : > { %4090 = vmatprep.subr.bf16.mxu1 %v8691_v24  ;;  %v8727_v24 = vld [vmem:[%s9470_s25 + $0xa0] ss:$8 sps:$4 sm:$0xff]  }
0x14a5   : > { %4091 = vmatpush1.bf16.msra.mxu1 %v8689_v39  ;;  %v8728_v39 = vld [vmem:[%s9470_s25 + $0xb4] ss:$8 sps:$4 sm:$0xff]  }
0x14a6   : > { %4092 = vmatprep.subr.bf16.mxu1 %v8694_v40  ;;  %v8730_v40 = vld [vmem:[%s9470_s25 + $0xb0] ss:$8 sps:$4 sm:$0xff]  }
0x14a9   : > { %4093 = vmatpush1.bf16.msra.mxu1 %v8692_v41  ;;  %v8731_v41 = vld [vmem:[%s9470_s25 + $0xc4] ss:$8 sps:$4 sm:$0xff]  }
0x155f   : > { %v8107_v19 = vpop.f32.mrb[0].mxu1 }
0x1560   : > { %v8108_v50 = vpop.f32.mrb[1].mxu1 }
0x1561   : > { %v8109_v21 = vadd.f32 %v8108_v50, %v8107_v19  ;;  %v8110_v51 = vpop.f32.mrb[2].mxu1  ;;  %v4129_v19 = vrot.slane %v10128_v14, %v10131_v15 }
0x1562   : > { %v8111_v37 = vpop.f32.mrb[3].mxu1 }
0x1563   : > { %v3952_v25 = vadd.f32 %v8109_v21, %v3820_v20  ;;  %v4135_v20 = vrot.slane %v4125_v18, %v10084_v17  ;;  %v4139_v21 = vrot.slane %v4129_v19, %v10084_v17 }
0x1565   : > { %3957 = vadd.xlane.f32.xlu0 %v3952_v25  ;;  %v3959_v60 = vmul.f32 %v3952_v25, %v3952_v25 }
0x1569   : > { %3960 = vadd.xlane.f32.xlu0 %v3959_v60 }
0x15f2   : > { %v3958_v42 = vpop.xlane.xlu0 %3957 }
0x15f3   : > { %v3962_v43 = vmul.f32 0.0078125, %v3958_v42  ;;  %v8733_v42 = vld [vmem:[%s9470_s25 + $0xc0] ss:$8 sps:$4 sm:$0xff]  }
0x15f5   : > { %v3964_v44 = vmul.f32 %v3962_v43, %v3962_v43  ;;  %v3966_v54 = vsub.f32 %v3952_v25, %v3962_v43  ;;  %v8734_v43 = vld [vmem:[%s9470_s25 + $0xd4] ss:$8 sps:$4 sm:$0xff]  }
0x15f6   : > { %v3961_v45 = vpop.xlane.xlu0 %3960 }
0x15f7   : > { %v3963_v46 = vmul.f32 0.0078125, %v3961_v45  ;;  %v8736_v45 = vld [vmem:[%s9470_s25 + $0xd0] ss:$8 sps:$4 sm:$0xff]  }
0x15f9   : > { %v3965_v47 = vsub.f32 %v3963_v46, %v3964_v44  ;;  %v8737_v44 = vld [vmem:[%s9470_s25 + $0xe4] ss:$8 sps:$4 sm:$0xff]   ;;  %v8739_v46 = vld [vmem:[%s9470_s25 + $0xe0] ss:$8 sps:$4 sm:$0xff]  }
0x15fb   : > { %v3967_v48 = vadd.f32 1e-05, %v3965_v47  ;;  %v8740_v47 = vld [vmem:[%s9470_s25 + $0xf4] ss:$8 sps:$4 sm:$0xff]  }
0x15fd   : > { %9007 = vrsqrt.f32 %v3967_v48  ;;  %v8742_v48 = vld [vmem:[%s9470_s25 + $0xf0] ss:$8 sps:$4 sm:$0xff]  }
0x1607   : > { %v9008_v1 = vpop.eup %9007 }
0x1608   : > { %v3969_v56 = vmul.f32 %v9008_v1, %v3966_v54 }
0x160a   : > { %v3974_v22 = vmul.f32 %v3973_v53, %v3969_v56 }
0x160c   : > { %v3979_v0 = vadd.f32 %v3978_v55, %v3974_v22 }
0x160e   : > { %v3980_v2 = vmax.f32 %v3979_v0, 0.0 }
0x1610   : > { %v3997_v4 = vpack.c.bf16 %v3980_v2, %v3980_v2  ;;  %v10163_v2 = vsub.s32 5, %v10081_v16 }
0x1612   : > { %4111 = vmatmul.mubr.bf16.vlgmr.msra.gmra.mrb[4].mxu1 %v3997_v4  ;;  %v10166_v4 = vsub.s32 6, %v10081_v16  ;;  %v4167_v23 = vrot.slane %v10128_v14, %v10163_v2  ;;  %v4173_v16 = vrot.slane %v4163_v57, %v10104_v49 }
0x1614   : > { %v4187_v58 = vrot.slane %v10128_v14, %v10166_v4  ;;  %v4177_v62 = vrot.slane %v4167_v23, %v10104_v49 }
0x1616   : > { %v4197_v8 = vrot.slane %v4187_v58, %v10107_v52 }
0x16e5   : > { %v4112_v50 = vpop.f32.mrb[4].mxu1 }
0x16e6   : > { %v4119_v51 = vadd.f32 %v4112_v50, %v10075_v3  ;;  %v4114_v37 = vpop.f32.mrb[5].mxu1  ;;  %v8743_v50 = vld [vmem:[%s9439_s12 + $0xc0] sm:$0xff]  }
0x16e7   : > { %v4120_v25 = vadd.f32 %v4114_v37, %v10066_v5  ;;  %v4116_v60 = vpop.f32.mrb[6].mxu1  ;;  %v8719_v5 = vld [vmem:[%s9470_s25 + $0x84] ss:$8 sps:$4 sm:$0xff]   ;;  %8113 = vmatprep.subr.bf16.mxu1 %v8743_v50 }
0x16e8   : > { %v10141_v27 = vadd.f32 %v4135_v20, %v4119_v51  ;;  %v4117_v28 = vpop.f32.mrb[7].mxu1  ;;  %4432 = vmatprep.subr.bf16.mxu0 %v8719_v5  ;;  %v10184_v51 = vld [vmem:[%s9468_s21] sm:$0x77] }
0x16e9   : > { %v4141_v29 = vadd.f32 %v4139_v21, %v4120_v25  ;;  %4433 = vmatpush1.bf16.msra.mxu0 %v8721_v33  ;;  %v8744_v21 = vld [vmem:[%s9439_s12 + $0x80] sm:$0xff]   ;;  %v4241_v37 = vrot.slane %v10184_v51, %v10084_v17  ;;  %v4245_v25 = vrot.slane %v10184_v51, %v10131_v15  ;;  %v4482_v58 = vrot.slane %v10184_v51, %v10163_v2 }
0x16ea   : > { %v4145_v31 = vmul.f32 %v10141_v27, %v10141_v27  ;;  %4434 = vmatprep.subr.bf16.mxu0 %v8722_v26  ;;  %8114 = vmatpush3.bf16.msra.mxu1 %v8744_v21  ;;  %v4478_v59 = vrot.slane %v10184_v51, %v10104_v49 }
0x16eb   : > { %v4142_v30 = vadd.f32 %v4141_v29, %v10141_v27  ;;  %v4146_v32 = vmul.f32 %v4141_v29, %v4141_v29  ;;  %v4251_v60 = vrot.slane %v4241_v37, %v10084_v17  ;;  %v8761_v37 = vld [vmem:[%s9447_s5 + $0x84] ss:$8 sps:$4 sm:$0xff]  }
0x16ed   : > { %4143 = vadd.xlane.f32.xlu1 %v4142_v30  ;;  %v4147_v3 = vadd.f32 %v4146_v32, %v4145_v31  ;;  %4435 = vmatpush1.bf16.msra.mxu0 %v8724_v34 }
0x16ee   : > { %4436 = vmatprep.subr.bf16.mxu0 %v8725_v38  ;;  %v8745_v38 = vld [vmem:[%s9439_s12 + $0xc8] sm:$0xff]  }
0x16ef   : > { %8115 = vmatprep.subr.bf16.mxu1 %v8745_v38  ;;  %v8770_v38 = vld [vmem:[%s9447_s5 + $0xb4] ss:$8 sps:$4 sm:$0xff]  }
0x16f1   : > { %4148 = vadd.xlane.f32.xlu1 %v4147_v3  ;;  %4437 = vmatpush1.bf16.msra.mxu0 %v8727_v24  ;;  %v8746_v24 = vld [vmem:[%s9439_s12 + $0x88] sm:$0xff]  }
0x16f2   : > { %4438 = vmatprep.subr.bf16.mxu0 %v8728_v39  ;;  %8116 = vmatpush3.bf16.msra.mxu1 %v8746_v24  ;;  %v8747_v39 = vld [vmem:[%s9439_s12 + $0xd0] sm:$0xff]  }
0x16f3   : > { %8117 = vmatprep.subr.bf16.mxu1 %v8747_v39  ;;  %v8768_v24 = vld [vmem:[%s9447_s5 + $0xb0] ss:$8 sps:$4 sm:$0xff]   ;;  %v8773_v39 = vld [vmem:[%s9447_s5 + $0xc4] ss:$8 sps:$4 sm:$0xff]  }
0x16f5   : > { %4439 = vmatpush1.bf16.msra.mxu0 %v8730_v40  ;;  %v8748_v40 = vld [vmem:[%s9439_s12 + $0x90] sm:$0xff]  }
0x16f6   : > { %4440 = vmatprep.subr.bf16.mxu0 %v8731_v41  ;;  %8118 = vmatpush3.bf16.msra.mxu1 %v8748_v40  ;;  %v8749_v41 = vld [vmem:[%s9439_s12 + $0xd8] sm:$0xff]   ;;  %v8771_v40 = vld [vmem:[%s9447_s5 + $0xc0] ss:$8 sps:$4 sm:$0xff]  }
0x16f7   : > { %8119 = vmatprep.subr.bf16.mxu1 %v8749_v41  ;;  %v8776_v41 = vld [vmem:[%s9447_s5 + $0xd4] ss:$8 sps:$4 sm:$0xff]  }
0x16f9   : > { %4441 = vmatpush1.bf16.msra.mxu0 %v8733_v42  ;;  %v8750_v42 = vld [vmem:[%s9439_s12 + $0x98] sm:$0xff]  }
0x16fa   : > { %4442 = vmatprep.subr.bf16.mxu0 %v8734_v43  ;;  %v8751_v43 = vld [vmem:[%s9439_s12 + $0xe0] sm:$0xff]   ;;  %8120 = vmatpush3.bf16.msra.mxu1 %v8750_v42  ;;  %v8774_v42 = vld [vmem:[%s9447_s5 + $0xd0] ss:$8 sps:$4 sm:$0xff]  }
0x16fb   : > { %8121 = vmatprep.subr.bf16.mxu1 %v8751_v43  ;;  %v8779_v43 = vld [vmem:[%s9447_s5 + $0xe4] ss:$8 sps:$4 sm:$0xff]  }
0x16fd   : > { %4443 = vmatpush1.bf16.msra.mxu0 %v8736_v45  ;;  %v8752_v45 = vld [vmem:[%s9439_s12 + $0xa0] sm:$0xff]  }
0x16fe   : > { %4444 = vmatprep.subr.bf16.mxu0 %v8737_v44  ;;  %v8753_v44 = vld [vmem:[%s9439_s12 + $0xe8] sm:$0xff]   ;;  %8122 = vmatpush3.bf16.msra.mxu1 %v8752_v45 }
0x16ff   : > { %8123 = vmatprep.subr.bf16.mxu1 %v8753_v44  ;;  %v8777_v45 = vld [vmem:[%s9447_s5 + $0xe0] ss:$8 sps:$4 sm:$0xff]   ;;  %v8782_v44 = vld [vmem:[%s9447_s5 + $0xf4] ss:$8 sps:$4 sm:$0xff]  }
0x1701   : > { %4445 = vmatpush1.bf16.msra.mxu0 %v8739_v46  ;;  %v8754_v46 = vld [vmem:[%s9439_s12 + $0xa8] sm:$0xff]  }
0x1702   : > { %4446 = vmatprep.subr.bf16.mxu0 %v8740_v47  ;;  %v8755_v47 = vld [vmem:[%s9439_s12 + $0xf0] sm:$0xff]   ;;  %8124 = vmatpush3.bf16.msra.mxu1 %v8754_v46 }
0x1703   : > { %8125 = vmatprep.subr.bf16.mxu1 %v8755_v47  ;;  %v8780_v46 = vld [vmem:[%s9447_s5 + $0xf0] ss:$8 sps:$4 sm:$0xff]  }
0x1705   : > { %4447 = vmatpush1.bf16.msra.mxu0 %v8742_v48  ;;  %v8756_v48 = vld [vmem:[%s9439_s12 + $0xb0] sm:$0xff]  }
0x1706   : > { %8126 = vmatpush3.bf16.msra.mxu1 %v8756_v48 }
0x177a   : > { %v4144_v53 = vpop.xlane.xlu1 %4143 }
0x177b   : > { %v4150_v54 = vmul.f32 0.00390625, %v4144_v53  ;;  %v8757_v53 = vld [vmem:[%s9439_s12 + $0xf8] sm:$0xff]  }
0x177c   : > { %8127 = vmatprep.subr.bf16.mxu1 %v8757_v53 }
0x177d   : > { %v4152_v55 = vmul.f32 %v4150_v54, %v4150_v54  ;;  %v4154_v61 = vsub.f32 %v10141_v27, %v4150_v54  ;;  %v4155_v36 = vsub.f32 %v4141_v29, %v4150_v54  ;;  %v4255_v27 = vrot.slane %v4245_v25, %v10084_v17  ;;  %v8758_v54 = vld [vmem:[%s9439_s12 + $0xb8] sm:$0xff]  }
0x177e   : > { %v4149_v1 = vpop.xlane.xlu1 %4148  ;;  %8128 = vmatpush3.bf16.msra.mxu1 %v8758_v54  ;;  %v7552_v25 = vld [vmem:[%s9458_s15 + $0x4] sm:$0x7] }
0x177f   : > { %v4151_v56 = vmul.f32 0.00390625, %v4149_v1  ;;  %4818 = vmatprep.subr.bf16.mxu1 %v8761_v37  ;;  %v8804_v37 = vld [vmem:[%s9470_s25 + $0x170] ss:$8 sps:$4 sm:$0xff]  }
0x1781   : > { %v4153_v22 = vsub.f32 %v4151_v56, %v4152_v55 }
0x1783   : > { %v4156_v0 = vadd.f32 1e-05, %v4153_v22 }
0x1785   : > { %9009 = vrsqrt.f32 %v4156_v0 }
0x178f   : > { %v9010_v63 = vpop.eup %9009 }
0x1790   : > { %v4159_v7 = vmul.f32 %v9010_v63, %v4155_v36  ;;  %v4158_v6 = vmul.f32 %v9010_v63, %v4154_v61  ;;  %v4502_v61 = vrot.slane %v10184_v51, %v10166_v4  ;;  %v4498_v36 = vrot.slane %v10184_v51, %v10107_v52  ;;  %v8759_v51 = vld [vmem:[%s9447_s5 + $0x80] ss:$8 sps:$4 sm:$0xff]  }
0x1791   : > { %v4492_v63 = vrot.slane %v4482_v58, %v10104_v49 }
0x1792   : > { %v4179_v10 = vmul.f32 %v4177_v62, %v4159_v7  ;;  %v4178_v11 = vmul.f32 %v4173_v16, %v4158_v6  ;;  %v4488_v7 = vrot.slane %v4478_v59, %v10104_v49 }
0x1794   : > { %v4199_v12 = vadd.f32 %v4197_v8, %v4179_v10  ;;  %v4198_v13 = vadd.f32 %v4193_v9, %v4178_v11  ;;  %v4512_v9 = vrot.slane %v4502_v61, %v10107_v52  ;;  %v4508_v11 = vrot.slane %v4498_v36, %v10107_v52 }
0x1796   : > { %v4201_v14 = vmax.f32 %v4199_v12, 0.0  ;;  %v4200_v18 = vmax.f32 %v4198_v13, 0.0 }
0x1798   : > { %v4236_v19 = vpack.c.bf16 %v4201_v14, %v4201_v14  ;;  %v4235_v20 = vpack.c.bf16 %v4200_v18, %v4200_v18 }
0x179a   : > { %4448 = vmatprep.mubr.bf16.mxu0 %v4236_v19 }
0x179b   : > { %4449 = vmatmul.mubr.bf16.vlgmr.msra.gmra.mrb[0].mxu0 %v4235_v20 }
0x186e   : > { %v4450_v28 = vpop.f32.mrb[0].mxu0 }
0x186f   : > { %v4451_v29 = vadd.f32 %v4450_v28, %v4251_v60  ;;  %v4452_v30 = vpop.f32.mrb[1].mxu0 }
0x1870   : > { %v4453_v31 = vadd.f32 %v4452_v30, %v4255_v27  ;;  %v4454_v32 = vpop.f32.mrb[2].mxu0  ;;  %v4559_v27 = vrot.slane %v7552_v25, %v10084_v17 }
0x1871   : > { %v4455_v3 = vpop.f32.mrb[3].mxu0  ;;  %v4460_v5 = vmul.f32 %v4451_v29, %v4451_v29 }
0x1872   : > { %v4457_v33 = vadd.f32 %v4453_v31, %v4451_v29  ;;  %v4461_v26 = vmul.f32 %v4453_v31, %v4453_v31 }
0x1874   : > { %4458 = vadd.xlane.f32.xlu0 %v4457_v33  ;;  %v4462_v34 = vadd.f32 %v4461_v26, %v4460_v5  ;;  %v8764_v5 = vld [vmem:[%s9447_s5 + $0x94] ss:$8 sps:$4 sm:$0xff]   ;;  %v8762_v33 = vld [vmem:[%s9447_s5 + $0x90] ss:$8 sps:$4 sm:$0xff]   ;;  %v8767_v26 = vld [vmem:[%s9447_s5 + $0xa4] ss:$8 sps:$4 sm:$0xff]  }
0x1876   : > { %4463 = vadd.xlane.f32.xlu1 %v4462_v34  ;;  %v8765_v34 = vld [vmem:[%s9447_s5 + $0xa0] ss:$8 sps:$4 sm:$0xff]  }
0x1901   : > { %v4459_v1 = vpop.xlane.xlu0 %4458 }
0x1902   : > { %v4465_v55 = vmul.f32 0.00390625, %v4459_v1 }
0x1903   : > { %v4464_v56 = vpop.xlane.xlu1 %4463 }
0x1904   : > { %v4466_v22 = vmul.f32 0.00390625, %v4464_v56  ;;  %v4467_v0 = vmul.f32 %v4465_v55, %v4465_v55  ;;  %v4469_v62 = vsub.f32 %v4451_v29, %v4465_v55  ;;  %v4470_v16 = vsub.f32 %v4453_v31, %v4465_v55 }
0x1906   : > { %v4468_v23 = vsub.f32 %v4466_v22, %v4467_v0  ;;  %v4712_v22 = vrot.slane %v7552_v25, %v10104_v49 }
0x1908   : > { %v4471_v57 = vadd.f32 1e-05, %v4468_v23 }
0x190a   : > { %9011 = vrsqrt.f32 %v4471_v57  ;;  %v4717_v57 = vrot.slane %v7552_v25, %v10107_v52  ;;  %v10264_v25 = vld [vmem:[%s9463_s29 + $0x8] sm:$0x77] }
0x1914   : > { %v9012_v8 = vpop.eup %9011 }
0x1915   : > { %v4474_v6 = vmul.f32 %v9012_v8, %v4470_v16  ;;  %v4473_v10 = vmul.f32 %v9012_v8, %v4469_v62  ;;  %v8783_v16 = vld [vmem:[%s9470_s25 + $0x100] ss:$8 sps:$4 sm:$0xff]   ;;  %v8786_v8 = vld [vmem:[%s9470_s25 + $0x110] ss:$8 sps:$4 sm:$0xff]  }
0x1917   : > { %v4494_v12 = vmul.f32 %v4492_v63, %v4474_v6  ;;  %v4493_v13 = vmul.f32 %v4488_v7, %v4473_v10  ;;  %v8785_v63 = vld [vmem:[%s9470_s25 + $0x104] ss:$8 sps:$4 sm:$0xff]   ;;  %v8788_v7 = vld [vmem:[%s9470_s25 + $0x114] ss:$8 sps:$4 sm:$0xff]  }
0x1918   : > { %5160 = vmatprep.subr.bf16.mxu0 %v8785_v63  ;;  %v8791_v6 = vld [vmem:[%s9470_s25 + $0x124] ss:$8 sps:$4 sm:$0xff]   ;;  %v8794_v10 = vld [vmem:[%s9470_s25 + $0x134] ss:$8 sps:$4 sm:$0xff]   ;;  %v4927_v63 = vrot.slane %v10264_v25, %v10166_v4 }
0x1919   : > { %v4514_v14 = vadd.f32 %v4512_v9, %v4494_v12  ;;  %v4513_v18 = vadd.f32 %v4508_v11, %v4493_v13  ;;  %5161 = vmatpush1.bf16.msra.mxu0 %v8783_v16  ;;  %v8789_v9 = vld [vmem:[%s9470_s25 + $0x120] ss:$8 sps:$4 sm:$0xff]   ;;  %v8792_v11 = vld [vmem:[%s9470_s25 + $0x130] ss:$8 sps:$4 sm:$0xff]   ;;  %v8797_v12 = vld [vmem:[%s9470_s25 + $0x144] ss:$8 sps:$4 sm:$0xff]   ;;  %v4903_v16 = vrot.slane %v10264_v25, %v10104_v49 }
0x191a   : > { %5162 = vmatprep.subr.bf16.mxu0 %v8788_v7  ;;  %v8795_v13 = vld [vmem:[%s9470_s25 + $0x140] ss:$8 sps:$4 sm:$0xff]   ;;  %v4923_v7 = vrot.slane %v10264_v25, %v10107_v52 }
0x191b   : > { %v10218_v19 = vmax.f32 %v4514_v14, 0.0  ;;  %v10220_v20 = vmax.f32 %v4513_v18, 0.0  ;;  %v8800_v14 = vld [vmem:[%s9470_s25 + $0x154] ss:$8 sps:$4 sm:$0xff]   ;;  %v8798_v18 = vld [vmem:[%s9470_s25 + $0x150] ss:$8 sps:$4 sm:$0xff]  }
0x191d   : > { %v4555_v50 = vpack.c.bf16 %v10218_v19, %v10218_v19  ;;  %v4554_v21 = vpack.c.bf16 %v10220_v20, %v10220_v20  ;;  %5163 = vmatpush1.bf16.msra.mxu0 %v8786_v8 }
0x191e   : > { %5164 = vmatprep.subr.bf16.mxu0 %v8791_v6 }
0x191f   : > { %4688 = vmatprep.mubr.bf16.mxu1 %v4555_v50  ;;  %v8803_v50 = vld [vmem:[%s9470_s25 + $0x164] ss:$8 sps:$4 sm:$0xff]  }
0x1920   : > { %4689 = vmatmul.mubr.bf16.vlgmr.msra.gmra.mrb[8].mxu1 %v4554_v21  ;;  %v8801_v21 = vld [vmem:[%s9470_s25 + $0x160] ss:$8 sps:$4 sm:$0xff]  }
0x1921   : > { %4850 = vmatprep.mubr.bf16.mxu1 %v9190_v35  ;;  %4819 = vmatpush1.bf16.msra.mxu1 %v8759_v51  ;;  %v8806_v51 = vld [vmem:[%s9470_s25 + $0x174] ss:$8 sps:$4 sm:$0xff]  }
0x1922   : > { %4820 = vmatprep.subr.bf16.mxu1 %v8764_v5  ;;  %5165 = vmatpush1.bf16.msra.mxu0 %v8789_v9 }
0x1923   : > { %5166 = vmatprep.subr.bf16.mxu0 %v8794_v10  ;;  %v4913_v10 = vrot.slane %v4903_v16, %v10104_v49 }
0x1925   : > { %4821 = vmatpush1.bf16.msra.mxu1 %v8762_v33 }
0x1926   : > { %4822 = vmatprep.subr.bf16.mxu1 %v8767_v26  ;;  %5167 = vmatpush1.bf16.msra.mxu0 %v8792_v11 }
0x1927   : > { %5168 = vmatprep.subr.bf16.mxu0 %v8797_v12 }
0x1929   : > { %4823 = vmatpush1.bf16.msra.mxu1 %v8765_v34 }
0x192a   : > { %4824 = vmatprep.subr.bf16.mxu1 %v8770_v38  ;;  %5169 = vmatpush1.bf16.msra.mxu0 %v8795_v13  ;;  %v4937_v13 = vrot.slane %v4927_v63, %v10107_v52 }
0x192b   : > { %5170 = vmatprep.subr.bf16.mxu0 %v8800_v14 }
0x192d   : > { %4825 = vmatpush1.bf16.msra.mxu1 %v8768_v24 }
0x192e   : > { %4826 = vmatprep.subr.bf16.mxu1 %v8773_v39  ;;  %5171 = vmatpush1.bf16.msra.mxu0 %v8798_v18  ;;  %v4933_v18 = vrot.slane %v4923_v7, %v10107_v52 }
0x192f   : > { %5172 = vmatprep.subr.bf16.mxu0 %v8803_v50 }
0x1931   : > { %4827 = vmatpush1.bf16.msra.mxu1 %v8771_v40 }
0x1932   : > { %4828 = vmatprep.subr.bf16.mxu1 %v8776_v41  ;;  %5173 = vmatpush1.bf16.msra.mxu0 %v8801_v21  ;;  %v8807_v41 = vld [vmem:[%s9470_s25 + $0x180] ss:$8 sps:$4 sm:$0xff]  }
0x1933   : > { %5174 = vmatprep.subr.bf16.mxu0 %v8806_v51 }
0x1935   : > { %4829 = vmatpush1.bf16.msra.mxu1 %v8774_v42  ;;  %v8810_v42 = vld [vmem:[%s9470_s25 + $0x190] ss:$8 sps:$4 sm:$0xff]  }
0x1936   : > { %4830 = vmatprep.subr.bf16.mxu1 %v8779_v43  ;;  %5175 = vmatpush1.bf16.msra.mxu0 %v8804_v37  ;;  %v8815_v43 = vld [vmem:[%s9470_s25 + $0x1a4] ss:$8 sps:$4 sm:$0xff]  }
0x1939   : > { %4831 = vmatpush1.bf16.msra.mxu1 %v8777_v45  ;;  %v8813_v45 = vld [vmem:[%s9470_s25 + $0x1a0] ss:$8 sps:$4 sm:$0xff]  }
0x193a   : > { %4832 = vmatprep.subr.bf16.mxu1 %v8782_v44  ;;  %v8818_v44 = vld [vmem:[%s9470_s25 + $0x1b4] ss:$8 sps:$4 sm:$0xff]  }
0x193d   : > { %4833 = vmatpush1.bf16.msra.mxu1 %v8780_v46  ;;  %v8816_v46 = vld [vmem:[%s9470_s25 + $0x1b0] ss:$8 sps:$4 sm:$0xff]  }
0x19f3   : > { %v8129_v60 = vpop.f32.mrb[8].mxu1 }
0x19f4   : > { %v8130_v28 = vpop.f32.mrb[9].mxu1 }
0x19f5   : > { %v8131_v29 = vadd.f32 %v8130_v28, %v8129_v60  ;;  %v8132_v30 = vpop.f32.mrb[10].mxu1  ;;  %v4865_v60 = vrot.slane %v10264_v25, %v10084_v17 }
0x19f6   : > { %v8133_v31 = vpop.f32.mrb[11].mxu1 }
0x19f7   : > { %v4691_v32 = vadd.f32 %v8131_v29, %v4559_v27  ;;  %v4869_v27 = vrot.slane %v10264_v25, %v10131_v15  ;;  %v4875_v28 = vrot.slane %v4865_v60, %v10084_v17 }
0x19f9   : > { %4696 = vadd.xlane.f32.xlu0 %v4691_v32  ;;  %v4698_v3 = vmul.f32 %v4691_v32, %v4691_v32  ;;  %v4879_v30 = vrot.slane %v4869_v27, %v10084_v17  ;;  %v9031_v27 = vld [vmem:[#allocation3 + $0x8] sm:$0xff] }
0x19fb   : > { %4699 = vadd.xlane.f32.xlu1 %v4698_v3 }
0x1a86   : > { %v4697_v47 = vpop.xlane.xlu0 %4696 }
0x1a87   : > { %v4701_v48 = vmul.f32 0.0078125, %v4697_v47  ;;  %v8821_v47 = vld [vmem:[%s9470_s25 + $0x1c4] ss:$8 sps:$4 sm:$0xff]  }
0x1a88   : > { %v4700_v53 = vpop.xlane.xlu1 %4699 }
0x1a89   : > { %v4703_v54 = vmul.f32 %v4701_v48, %v4701_v48  ;;  %v4702_v1 = vmul.f32 0.0078125, %v4700_v53  ;;  %v4705_v0 = vsub.f32 %v4691_v32, %v4701_v48  ;;  %v8819_v48 = vld [vmem:[%s9470_s25 + $0x1c0] ss:$8 sps:$4 sm:$0xff]   ;;  %v8824_v53 = vld [vmem:[%s9470_s25 + $0x1d4] ss:$8 sps:$4 sm:$0xff]  }
0x1a8b   : > { %v4704_v55 = vsub.f32 %v4702_v1, %v4703_v54  ;;  %v8822_v54 = vld [vmem:[%s9470_s25 + $0x1d0] ss:$8 sps:$4 sm:$0xff]   ;;  %v8827_v1 = vld [vmem:[%s9470_s25 + $0x1e4] ss:$8 sps:$4 sm:$0xff]  }
0x1a8d   : > { %v4706_v56 = vadd.f32 1e-05, %v4704_v55  ;;  %v8825_v55 = vld [vmem:[%s9470_s25 + $0x1e0] ss:$8 sps:$4 sm:$0xff]  }
0x1a8f   : > { %9013 = vrsqrt.f32 %v4706_v56  ;;  %v8830_v56 = vld [vmem:[%s9470_s25 + $0x1f4] ss:$8 sps:$4 sm:$0xff]  }
0x1a99   : > { %v9014_v23 = vpop.eup %9013 }
0x1a9a   : > { %v4708_v58 = vmul.f32 %v9014_v23, %v4705_v0 }
0x1a9c   : > { %v4713_v59 = vmul.f32 %v4712_v22, %v4708_v58  ;;  %v8828_v22 = vld [vmem:[%s9470_s25 + $0x1f0] ss:$8 sps:$4 sm:$0xff]  }
0x1a9e   : > { %v4718_v61 = vadd.f32 %v4717_v57, %v4713_v59 }
0x1aa0   : > { %v4719_v36 = vmax.f32 %v4718_v61, 0.0 }
0x1aa2   : > { %v4737_v62 = vpack.c.bf16 %v4719_v36, %v4719_v36 }
0x1aa4   : > { %4851 = vmatmul.mubr.bf16.vlgmr.msra.gmra.mrb[12].mxu1 %v4737_v62  ;;  %v4907_v62 = vrot.slane %v10264_v25, %v10163_v2 }
0x1aa6   : > { %v4917_v9 = vrot.slane %v4907_v62, %v10104_v49 }
0x1b77   : > { %v4852_v29 = vpop.f32.mrb[12].mxu1 }
0x1b78   : > { %v4859_v31 = vadd.f32 %v4852_v29, %v10220_v20  ;;  %v4854_v32 = vpop.f32.mrb[13].mxu1  ;;  %v8809_v20 = vld [vmem:[%s9470_s25 + $0x184] ss:$8 sps:$4 sm:$0xff]  }
0x1b79   : > { %v4860_v3 = vadd.f32 %v4854_v32, %v10218_v19  ;;  %v4856_v5 = vpop.f32.mrb[14].mxu1  ;;  %5176 = vmatprep.subr.bf16.mxu0 %v8809_v20  ;;  %v8812_v19 = vld [vmem:[%s9470_s25 + $0x194] ss:$8 sps:$4 sm:$0xff]  }
0x1b7a   : > { %v4880_v33 = vadd.f32 %v4875_v28, %v4859_v31  ;;  %v4857_v26 = vpop.f32.mrb[15].mxu1  ;;  %5177 = vmatpush1.bf16.msra.mxu0 %v8807_v41  ;;  %v9032_v29 = vld [vmem:[#allocation3] sm:$0xff] }
0x1b7b   : > { %v4881_v34 = vadd.f32 %v4879_v30, %v4860_v3  ;;  %5178 = vmatprep.subr.bf16.mxu0 %v8812_v19  ;;  %v8831_v3 = vld [vmem:[%s9439_s12 + $0x140] sm:$0xff]  }
0x1b7c   : > { %v4885_v38 = vmul.f32 %v4880_v33, %v4880_v33  ;;  %v8832_v5 = vld [vmem:[%s9439_s12 + $0x100] sm:$0xff]   ;;  %8135 = vmatprep.subr.bf16.mxu1 %v8831_v3 }
0x1b7d   : > { %v4882_v24 = vadd.f32 %v4881_v34, %v4880_v33  ;;  %v4886_v39 = vmul.f32 %v4881_v34, %v4881_v34  ;;  %8136 = vmatpush3.bf16.msra.mxu1 %v8832_v5 }
0x1b7e   : > { %5179 = vmatpush1.bf16.msra.mxu0 %v8810_v42 }
0x1b7f   : > { %4883 = vadd.xlane.f32.xlu0 %v4882_v24  ;;  %v4887_v40 = vadd.f32 %v4886_v39, %v4885_v38  ;;  %5180 = vmatprep.subr.bf16.mxu0 %v8815_v43 }
0x1b81   : > { %4888 = vadd.xlane.f32.xlu1 %v4887_v40 }
0x1b82   : > { %5181 = vmatpush1.bf16.msra.mxu0 %v8813_v45 }
0x1b83   : > { %5182 = vmatprep.subr.bf16.mxu0 %v8818_v44 }
0x1b86   : > { %5183 = vmatpush1.bf16.msra.mxu0 %v8816_v46 }
0x1b87   : > { %5184 = vmatprep.subr.bf16.mxu0 %v8821_v47  ;;  %v8833_v47 = vld [vmem:[%s9439_s12 + $0x148] sm:$0xff]  }
0x1b88   : > { %8137 = vmatprep.subr.bf16.mxu1 %v8833_v47  ;;  %v8858_v47 = vld [vmem:[%s9447_s5 + $0x134] ss:$8 sps:$4 sm:$0xff]  }
0x1b8a   : > { %5185 = vmatpush1.bf16.msra.mxu0 %v8819_v48  ;;  %v8834_v48 = vld [vmem:[%s9439_s12 + $0x108] sm:$0xff]  }
0x1b8b   : > { %5186 = vmatprep.subr.bf16.mxu0 %v8824_v53  ;;  %8138 = vmatpush3.bf16.msra.mxu1 %v8834_v48  ;;  %v8835_v53 = vld [vmem:[%s9439_s12 + $0x150] sm:$0xff]  }
0x1b8c   : > { %8139 = vmatprep.subr.bf16.mxu1 %v8835_v53  ;;  %v8856_v48 = vld [vmem:[%s9447_s5 + $0x130] ss:$8 sps:$4 sm:$0xff]   ;;  %v8861_v53 = vld [vmem:[%s9447_s5 + $0x144] ss:$8 sps:$4 sm:$0xff]  }
0x1b8e   : > { %5187 = vmatpush1.bf16.msra.mxu0 %v8822_v54  ;;  %v8836_v54 = vld [vmem:[%s9439_s12 + $0x110] sm:$0xff]  }
0x1b8f   : > { %5188 = vmatprep.subr.bf16.mxu0 %v8827_v1  ;;  %8140 = vmatpush3.bf16.msra.mxu1 %v8836_v54  ;;  %v8837_v1 = vld [vmem:[%s9439_s12 + $0x158] sm:$0xff]   ;;  %v8859_v54 = vld [vmem:[%s9447_s5 + $0x140] ss:$8 sps:$4 sm:$0xff]  }
0x1b90   : > { %8141 = vmatprep.subr.bf16.mxu1 %v8837_v1  ;;  %v8864_v1 = vld [vmem:[%s9447_s5 + $0x154] ss:$8 sps:$4 sm:$0xff]  }
0x1b92   : > { %5189 = vmatpush1.bf16.msra.mxu0 %v8825_v55  ;;  %v8838_v55 = vld [vmem:[%s9439_s12 + $0x118] sm:$0xff]  }
0x1b93   : > { %5190 = vmatprep.subr.bf16.mxu0 %v8830_v56  ;;  %8142 = vmatpush3.bf16.msra.mxu1 %v8838_v55  ;;  %v8839_v56 = vld [vmem:[%s9439_s12 + $0x160] sm:$0xff]   ;;  %v8862_v55 = vld [vmem:[%s9447_s5 + $0x150] ss:$8 sps:$4 sm:$0xff]  }
0x1b94   : > { %8143 = vmatprep.subr.bf16.mxu1 %v8839_v56  ;;  %v8867_v56 = vld [vmem:[%s9447_s5 + $0x164] ss:$8 sps:$4 sm:$0xff]  }
0x1b96   : > { %5191 = vmatpush1.bf16.msra.mxu0 %v8828_v22  ;;  %v8840_v22 = vld [vmem:[%s9439_s12 + $0x120] sm:$0xff]  }
0x1b97   : > { %8144 = vmatpush3.bf16.msra.mxu1 %v8840_v22  ;;  %v8865_v22 = vld [vmem:[%s9447_s5 + $0x160] ss:$8 sps:$4 sm:$0xff]  }
0x1c0c   : > { %v4884_v0 = vpop.xlane.xlu0 %4883 }
0x1c0d   : > { %v4890_v23 = vmul.f32 0.00390625, %v4884_v0  ;;  %v8841_v0 = vld [vmem:[%s9439_s12 + $0x168] sm:$0xff]  }
0x1c0e   : > { %v4889_v57 = vpop.xlane.xlu1 %4888  ;;  %8145 = vmatprep.subr.bf16.mxu1 %v8841_v0  ;;  %v8870_v0 = vld [vmem:[%s9447_s5 + $0x174] ss:$8 sps:$4 sm:$0xff]  }
0x1c0f   : > { %v4891_v58 = vmul.f32 0.00390625, %v4889_v57  ;;  %v4892_v59 = vmul.f32 %v4890_v23, %v4890_v23  ;;  %v4894_v8 = vsub.f32 %v4880_v33, %v4890_v23  ;;  %v4895_v6 = vsub.f32 %v4881_v34, %v4890_v23  ;;  %v10305_v33 = vld [vmem:[%s9468_s21 + $0x8] sm:$0x77]  ;;  %v8842_v23 = vld [vmem:[%s9439_s12 + $0x128] sm:$0xff]   ;;  %v8843_v57 = vld [vmem:[%s9439_s12 + $0x170] sm:$0xff]  }
0x1c10   : > { %v4985_v26 = vrot.slane %v10305_v33, %v10084_v17  ;;  %v4989_v34 = vrot.slane %v10305_v33, %v10131_v15  ;;  %8146 = vmatpush3.bf16.msra.mxu1 %v8842_v23  ;;  %v8868_v23 = vld [vmem:[%s9447_s5 + $0x170] ss:$8 sps:$4 sm:$0xff]  }
0x1c11   : > { %v4893_v61 = vsub.f32 %v4891_v58, %v4892_v59  ;;  %v8844_v58 = vld [vmem:[%s9439_s12 + $0x130] sm:$0xff]   ;;  %v8845_v59 = vld [vmem:[%s9439_s12 + $0x178] sm:$0xff]   ;;  %8147 = vmatprep.subr.bf16.mxu1 %v8843_v57 }
0x1c12   : > { %v4995_v38 = vrot.slane %v4985_v26, %v10084_v17  ;;  %v4999_v24 = vrot.slane %v4989_v34, %v10084_v17  ;;  %v8849_v26 = vld [vmem:[%s9447_s5 + $0x104] ss:$8 sps:$4 sm:$0xff]   ;;  %v7699_v34 = vld [vmem:[%s9458_s15 + $0x8] sm:$0x7] }
0x1c13   : > { %v4896_v36 = vadd.f32 1e-05, %v4893_v61  ;;  %v8846_v61 = vld [vmem:[%s9439_s12 + $0x138] sm:$0xff]  }
0x1c14   : > { %8148 = vmatpush3.bf16.msra.mxu1 %v8844_v58 }
0x1c15   : > { %9015 = vrsqrt.f32 %v4896_v36  ;;  %8149 = vmatprep.subr.bf16.mxu1 %v8845_v59 }
0x1c18   : > { %8150 = vmatpush3.bf16.msra.mxu1 %v8846_v61 }
0x1c19   : > { %5562 = vmatprep.subr.bf16.mxu1 %v8849_v26  ;;  %v8892_v26 = vld [vmem:[%s9470_s25 + $0x270] ss:$8 sps:$4 sm:$0xff]  }
0x1c1f   : > { %v9016_v11 = vpop.eup %9015 }
0x1c20   : > { %v4899_v12 = vmul.f32 %v9016_v11, %v4895_v6  ;;  %v4898_v14 = vmul.f32 %v9016_v11, %v4894_v8  ;;  %v5246_v11 = vrot.slane %v10305_v33, %v10166_v4 }
0x1c22   : > { %v4919_v50 = vmul.f32 %v4917_v9, %v4899_v12  ;;  %v4918_v21 = vmul.f32 %v4913_v10, %v4898_v14  ;;  %v5226_v9 = vrot.slane %v10305_v33, %v10163_v2  ;;  %v5222_v10 = vrot.slane %v10305_v33, %v10104_v49 }
0x1c23   : > { %v5242_v12 = vrot.slane %v10305_v33, %v10107_v52  ;;  %v8847_v33 = vld [vmem:[%s9447_s5 + $0x100] ss:$8 sps:$4 sm:$0xff]  }
0x1c24   : > { %v4939_v51 = vadd.f32 %v4937_v13, %v4919_v50  ;;  %v4938_v37 = vadd.f32 %v4933_v18, %v4918_v21  ;;  %v5236_v18 = vrot.slane %v5226_v9, %v10104_v49  ;;  %v5232_v50 = vrot.slane %v5222_v10, %v10104_v49 }
0x1c26   : > { %v4941_v25 = vmax.f32 %v4939_v51, 0.0  ;;  %v4940_v60 = vmax.f32 %v4938_v37, 0.0 }
0x1c28   : > { %v4943_v28 = vadd.f32 %v9031_v27, %v4941_v25  ;;  %v4942_v30 = vadd.f32 %v9032_v29, %v4940_v60  ;;  %v5256_v25 = vrot.slane %v5246_v11, %v10107_v52  ;;  %v5252_v60 = vrot.slane %v5242_v12, %v10107_v52 }
0x1c2a   : > { %v4980_v31 = vpack.c.bf16 %v4943_v28, %v4943_v28  ;;  %v4979_v32 = vpack.c.bf16 %v4942_v30, %v4942_v30 }
0x1c2c   : > { %5192 = vmatprep.mubr.bf16.mxu0 %v4980_v31 }
0x1c2d   : > { %5193 = vmatmul.mubr.bf16.vlgmr.msra.gmra.mrb[4].mxu0 %v4979_v32 }
0x1d00   : > { %v5194_v39 = vpop.f32.mrb[4].mxu0 }
0x1d01   : > { %v5195_v40 = vadd.f32 %v5194_v39, %v4995_v38  ;;  %v5196_v20 = vpop.f32.mrb[5].mxu0 }
0x1d02   : > { %v5197_v41 = vadd.f32 %v5196_v20, %v4999_v24  ;;  %v5198_v19 = vpop.f32.mrb[6].mxu0  ;;  %v5303_v24 = vrot.slane %v7699_v34, %v10084_v17 }
0x1d03   : > { %v5199_v42 = vpop.f32.mrb[7].mxu0  ;;  %v5204_v43 = vmul.f32 %v5195_v40, %v5195_v40 }
0x1d04   : > { %v5201_v45 = vadd.f32 %v5197_v41, %v5195_v40  ;;  %v5205_v44 = vmul.f32 %v5197_v41, %v5197_v41 }
0x1d06   : > { %5202 = vadd.xlane.f32.xlu0 %v5201_v45  ;;  %v5206_v46 = vadd.f32 %v5205_v44, %v5204_v43  ;;  %v8852_v43 = vld [vmem:[%s9447_s5 + $0x114] ss:$8 sps:$4 sm:$0xff]   ;;  %v8850_v45 = vld [vmem:[%s9447_s5 + $0x110] ss:$8 sps:$4 sm:$0xff]   ;;  %v8855_v44 = vld [vmem:[%s9447_s5 + $0x124] ss:$8 sps:$4 sm:$0xff]  }
0x1d08   : > { %5207 = vadd.xlane.f32.xlu1 %v5206_v46  ;;  %v8853_v46 = vld [vmem:[%s9447_s5 + $0x120] ss:$8 sps:$4 sm:$0xff]  }
0x1d93   : > { %v5203_v36 = vpop.xlane.xlu0 %5202 }
0x1d94   : > { %v5209_v62 = vmul.f32 0.00390625, %v5203_v36 }
0x1d95   : > { %v5208_v16 = vpop.xlane.xlu1 %5207 }
0x1d96   : > { %v5210_v63 = vmul.f32 0.00390625, %v5208_v16  ;;  %v5211_v7 = vmul.f32 %v5209_v62, %v5209_v62  ;;  %v5213_v13 = vsub.f32 %v5195_v40, %v5209_v62  ;;  %v5214_v14 = vsub.f32 %v5197_v41, %v5209_v62 }
0x1d98   : > { %v5212_v8 = vsub.f32 %v5210_v63, %v5211_v7  ;;  %v5456_v63 = vrot.slane %v7699_v34, %v10104_v49 }
0x1d9a   : > { %v5215_v6 = vadd.f32 1e-05, %v5212_v8 }
0x1d9c   : > { %9017 = vrsqrt.f32 %v5215_v6  ;;  %v5461_v6 = vrot.slane %v7699_v34, %v10107_v52  ;;  %v8897_v34 = vld [vmem:[%s9470_s25 + $0x284] ss:$8 sps:$4 sm:$0xff]  }
0x1da6   : > { %v9018_v21 = vpop.eup %9017 }
0x1da7   : > { %v5217_v51 = vmul.f32 %v9018_v21, %v5213_v13  ;;  %v5218_v37 = vmul.f32 %v9018_v21, %v5214_v14  ;;  %v8871_v14 = vld [vmem:[%s9470_s25 + $0x200] ss:$8 sps:$4 sm:$0xff]   ;;  %v8874_v21 = vld [vmem:[%s9470_s25 + $0x210] ss:$8 sps:$4 sm:$0xff]  }
0x1da9   : > { %v5238_v27 = vmul.f32 %v5236_v18, %v5218_v37  ;;  %v5237_v28 = vmul.f32 %v5232_v50, %v5217_v51  ;;  %v8873_v18 = vld [vmem:[%s9470_s25 + $0x204] ss:$8 sps:$4 sm:$0xff]   ;;  %v8876_v50 = vld [vmem:[%s9470_s25 + $0x214] ss:$8 sps:$4 sm:$0xff]   ;;  %v8877_v37 = vld [vmem:[%s9470_s25 + $0x220] ss:$8 sps:$4 sm:$0xff]  }
0x1daa   : > { %5902 = vmatprep.subr.bf16.mxu0 %v8873_v18  ;;  %v8879_v51 = vld [vmem:[%s9470_s25 + $0x224] ss:$8 sps:$4 sm:$0xff]  }
0x1dab   : > { %v5258_v29 = vadd.f32 %v5256_v25, %v5238_v27  ;;  %v5257_v30 = vadd.f32 %v5252_v60, %v5237_v28  ;;  %5903 = vmatpush1.bf16.msra.mxu0 %v8871_v14  ;;  %v8882_v25 = vld [vmem:[%s9470_s25 + $0x234] ss:$8 sps:$4 sm:$0xff]   ;;  %v8880_v60 = vld [vmem:[%s9470_s25 + $0x230] ss:$8 sps:$4 sm:$0xff]   ;;  %v8885_v27 = vld [vmem:[%s9470_s25 + $0x244] ss:$8 sps:$4 sm:$0xff]  }
0x1dac   : > { %5904 = vmatprep.subr.bf16.mxu0 %v8876_v50  ;;  %v8883_v28 = vld [vmem:[%s9470_s25 + $0x240] ss:$8 sps:$4 sm:$0xff]  }
0x1dad   : > { %v10339_v31 = vmax.f32 %v5258_v29, 0.0  ;;  %v10341_v32 = vmax.f32 %v5257_v30, 0.0  ;;  %v8888_v29 = vld [vmem:[%s9470_s25 + $0x254] ss:$8 sps:$4 sm:$0xff]   ;;  %v8886_v30 = vld [vmem:[%s9470_s25 + $0x250] ss:$8 sps:$4 sm:$0xff]  }
0x1daf   : > { %v5299_v3 = vpack.c.bf16 %v10339_v31, %v10339_v31  ;;  %v5298_v5 = vpack.c.bf16 %v10341_v32, %v10341_v32  ;;  %5905 = vmatpush1.bf16.msra.mxu0 %v8874_v21 }
0x1db0   : > { %5906 = vmatprep.subr.bf16.mxu0 %v8879_v51 }
0x1db1   : > { %5432 = vmatprep.mubr.bf16.mxu1 %v5299_v3  ;;  %v8891_v3 = vld [vmem:[%s9470_s25 + $0x264] ss:$8 sps:$4 sm:$0xff]  }
0x1db2   : > { %5433 = vmatmul.mubr.bf16.vlgmr.msra.gmra.mrb[16].mxu1 %v5298_v5  ;;  %v8889_v5 = vld [vmem:[%s9470_s25 + $0x260] ss:$8 sps:$4 sm:$0xff]  }
0x1db3   : > { %5594 = vmatprep.mubr.bf16.mxu1 %v9190_v35  ;;  %5563 = vmatpush1.bf16.msra.mxu1 %v8847_v33  ;;  %v8894_v33 = vld [vmem:[%s9470_s25 + $0x274] ss:$8 sps:$4 sm:$0xff]  }
0x1db4   : > { %5564 = vmatprep.subr.bf16.mxu1 %v8852_v43  ;;  %5907 = vmatpush1.bf16.msra.mxu0 %v8877_v37 }
0x1db5   : > { %5908 = vmatprep.subr.bf16.mxu0 %v8882_v25 }
0x1db7   : > { %5565 = vmatpush1.bf16.msra.mxu1 %v8850_v45 }
0x1db8   : > { %5566 = vmatprep.subr.bf16.mxu1 %v8855_v44  ;;  %5909 = vmatpush1.bf16.msra.mxu0 %v8880_v60 }
0x1db9   : > { %5910 = vmatprep.subr.bf16.mxu0 %v8885_v27 }
0x1dbb   : > { %5567 = vmatpush1.bf16.msra.mxu1 %v8853_v46 }
0x1dbc   : > { %5568 = vmatprep.subr.bf16.mxu1 %v8858_v47  ;;  %5911 = vmatpush1.bf16.msra.mxu0 %v8883_v28 }
0x1dbd   : > { %5912 = vmatprep.subr.bf16.mxu0 %v8888_v29 }
0x1dbf   : > { %5569 = vmatpush1.bf16.msra.mxu1 %v8856_v48 }
0x1dc0   : > { %5570 = vmatprep.subr.bf16.mxu1 %v8861_v53  ;;  %5913 = vmatpush1.bf16.msra.mxu0 %v8886_v30 }
0x1dc1   : > { %5914 = vmatprep.subr.bf16.mxu0 %v8891_v3 }
0x1dc3   : > { %5571 = vmatpush1.bf16.msra.mxu1 %v8859_v54 }
0x1dc4   : > { %5572 = vmatprep.subr.bf16.mxu1 %v8864_v1  ;;  %5915 = vmatpush1.bf16.msra.mxu0 %v8889_v5 }
0x1dc5   : > { %5916 = vmatprep.subr.bf16.mxu0 %v8894_v33 }
0x1dc7   : > { %5573 = vmatpush1.bf16.msra.mxu1 %v8862_v55 }
0x1dc8   : > { %5574 = vmatprep.subr.bf16.mxu1 %v8867_v56  ;;  %5917 = vmatpush1.bf16.msra.mxu0 %v8892_v26  ;;  %v8900_v56 = vld [vmem:[%s9470_s25 + $0x294] ss:$8 sps:$4 sm:$0xff]  }
0x1dc9   : > { %5918 = vmatprep.subr.bf16.mxu0 %v8897_v34 }
0x1dcb   : > { %5575 = vmatpush1.bf16.msra.mxu1 %v8865_v22  ;;  %v8898_v22 = vld [vmem:[%s9470_s25 + $0x290] ss:$8 sps:$4 sm:$0xff]  }
0x1dcc   : > { %5576 = vmatprep.subr.bf16.mxu1 %v8870_v0  ;;  %v8903_v0 = vld [vmem:[%s9470_s25 + $0x2a4] ss:$8 sps:$4 sm:$0xff]  }
0x1dcf   : > { %5577 = vmatpush1.bf16.msra.mxu1 %v8868_v23  ;;  %v8901_v23 = vld [vmem:[%s9470_s25 + $0x2a0] ss:$8 sps:$4 sm:$0xff]  }
0x1e85   : > { %v8151_v38 = vpop.f32.mrb[16].mxu1 }
0x1e86   : > { %v8152_v39 = vpop.f32.mrb[17].mxu1 }
0x1e87   : > { %v8153_v40 = vadd.f32 %v8152_v39, %v8151_v38  ;;  %v8154_v20 = vpop.f32.mrb[18].mxu1  ;;  %v8895_v38 = vld [vmem:[%s9470_s25 + $0x280] ss:$8 sps:$4 sm:$0xff]  }
0x1e88   : > { %v8155_v41 = vpop.f32.mrb[19].mxu1  ;;  %5919 = vmatpush1.bf16.msra.mxu0 %v8895_v38 }
0x1e89   : > { %v5435_v19 = vadd.f32 %v8153_v40, %v5303_v24  ;;  %v10387_v24 = vld [vmem:[%s9463_s29 + $0x10] sm:$0x77]  ;;  %5920 = vmatprep.subr.bf16.mxu0 %v8900_v56 }
0x1e8a   : > { %v5609_v39 = vrot.slane %v10387_v24, %v10084_v17  ;;  %v5613_v40 = vrot.slane %v10387_v24, %v10131_v15  ;;  %v5651_v18 = vrot.slane %v10387_v24, %v10163_v2  ;;  %v5647_v50 = vrot.slane %v10387_v24, %v10104_v49 }
0x1e8b   : > { %5440 = vadd.xlane.f32.xlu0 %v5435_v19  ;;  %v5442_v42 = vmul.f32 %v5435_v19, %v5435_v19  ;;  %v5671_v21 = vrot.slane %v10387_v24, %v10166_v4  ;;  %v5667_v51 = vrot.slane %v10387_v24, %v10107_v52 }
0x1e8c   : > { %v5619_v20 = vrot.slane %v5609_v39, %v10084_v17  ;;  %5921 = vmatpush1.bf16.msra.mxu0 %v8898_v22  ;;  %v5661_v60 = vrot.slane %v5651_v18, %v10104_v49  ;;  %v5657_v27 = vrot.slane %v5647_v50, %v10104_v49 }
0x1e8d   : > { %5443 = vadd.xlane.f32.xlu1 %v5442_v42  ;;  %5922 = vmatprep.subr.bf16.mxu0 %v8903_v0  ;;  %v5681_v30 = vrot.slane %v5671_v21, %v10107_v52  ;;  %v5677_v5 = vrot.slane %v5667_v51, %v10107_v52 }
0x1e90   : > { %5923 = vmatpush1.bf16.msra.mxu0 %v8901_v23 }
0x1f18   : > { %v5441_v57 = vpop.xlane.xlu0 %5440 }
0x1f19   : > { %v5445_v58 = vmul.f32 0.0078125, %v5441_v57  ;;  %v8904_v57 = vld [vmem:[%s9470_s25 + $0x2b0] ss:$8 sps:$4 sm:$0xff]  }
0x1f1a   : > { %v5444_v59 = vpop.xlane.xlu1 %5443 }
0x1f1b   : > { %v5447_v61 = vmul.f32 %v5445_v58, %v5445_v58  ;;  %v5446_v36 = vmul.f32 0.0078125, %v5444_v59  ;;  %v5449_v7 = vsub.f32 %v5435_v19, %v5445_v58  ;;  %v5623_v19 = vrot.slane %v5613_v40, %v10084_v17  ;;  %v8906_v58 = vld [vmem:[%s9470_s25 + $0x2b4] ss:$8 sps:$4 sm:$0xff]   ;;  %v8909_v59 = vld [vmem:[%s9470_s25 + $0x2c4] ss:$8 sps:$4 sm:$0xff]  }
0x1f1c   : > { %5924 = vmatprep.subr.bf16.mxu0 %v8906_v58  ;;  %v8922_v58 = vld [vmem:[%s9439_s12 + $0x188] sm:$0xff]  }
0x1f1d   : > { %v5448_v62 = vsub.f32 %v5446_v36, %v5447_v61  ;;  %5925 = vmatpush1.bf16.msra.mxu0 %v8904_v57  ;;  %v8907_v61 = vld [vmem:[%s9470_s25 + $0x2c0] ss:$8 sps:$4 sm:$0xff]   ;;  %v8912_v36 = vld [vmem:[%s9470_s25 + $0x2d4] ss:$8 sps:$4 sm:$0xff]  }
0x1f1e   : > { %5926 = vmatprep.subr.bf16.mxu0 %v8909_v59  ;;  %v8921_v57 = vld [vmem:[%s9439_s12 + $0x1c8] sm:$0xff]   ;;  %v8923_v59 = vld [vmem:[%s9439_s12 + $0x1d0] sm:$0xff]  }
0x1f1f   : > { %v5450_v16 = vadd.f32 1e-05, %v5448_v62  ;;  %v8910_v62 = vld [vmem:[%s9470_s25 + $0x2d0] ss:$8 sps:$4 sm:$0xff]  }
0x1f21   : > { %9019 = vrsqrt.f32 %v5450_v16  ;;  %5927 = vmatpush1.bf16.msra.mxu0 %v8907_v61  ;;  %v8915_v16 = vld [vmem:[%s9470_s25 + $0x2e4] ss:$8 sps:$4 sm:$0xff]   ;;  %v8924_v61 = vld [vmem:[%s9439_s12 + $0x190] sm:$0xff]  }
0x1f22   : > { %5928 = vmatprep.subr.bf16.mxu0 %v8912_v36  ;;  %v8925_v36 = vld [vmem:[%s9439_s12 + $0x1d8] sm:$0xff]  }
0x1f25   : > { %5929 = vmatpush1.bf16.msra.mxu0 %v8910_v62  ;;  %v8926_v62 = vld [vmem:[%s9439_s12 + $0x198] sm:$0xff]  }
0x1f26   : > { %5930 = vmatprep.subr.bf16.mxu0 %v8915_v16  ;;  %v8927_v16 = vld [vmem:[%s9439_s12 + $0x1e0] sm:$0xff]  }
0x1f2b   : > { %v9020_v8 = vpop.eup %9019 }
0x1f2c   : > { %v5452_v9 = vmul.f32 %v9020_v8, %v5449_v7  ;;  %v8918_v7 = vld [vmem:[%s9470_s25 + $0x2f4] ss:$8 sps:$4 sm:$0xff]   ;;  %v8916_v8 = vld [vmem:[%s9470_s25 + $0x2f0] ss:$8 sps:$4 sm:$0xff]  }
0x1f2e   : > { %v5457_v10 = vmul.f32 %v5456_v63, %v5452_v9  ;;  %v8913_v63 = vld [vmem:[%s9470_s25 + $0x2e0] ss:$8 sps:$4 sm:$0xff]  }
0x1f2f   : > { %5931 = vmatpush1.bf16.msra.mxu0 %v8913_v63  ;;  %v8928_v63 = vld [vmem:[%s9439_s12 + $0x1a0] sm:$0xff]  }
0x1f30   : > { %v5462_v11 = vadd.f32 %v5461_v6, %v5457_v10  ;;  %5932 = vmatprep.subr.bf16.mxu0 %v8918_v7  ;;  %v8929_v7 = vld [vmem:[%s9439_s12 + $0x1e8] sm:$0xff]  }
0x1f32   : > { %v5463_v12 = vmax.f32 %v5462_v11, 0.0 }
0x1f33   : > { %5933 = vmatpush1.bf16.msra.mxu0 %v8916_v8  ;;  %v8930_v8 = vld [vmem:[%s9439_s12 + $0x1a8] sm:$0xff]  }
0x1f34   : > { %v5481_v13 = vpack.c.bf16 %v5463_v12, %v5463_v12 }
0x1f36   : > { %5595 = vmatmul.mubr.bf16.vlgmr.msra.gmra.mrb[20].mxu1 %v5481_v13 }
0x2009   : > { %v5596_v41 = vpop.f32.mrb[20].mxu1 }
0x200a   : > { %v5603_v42 = vadd.f32 %v5596_v41, %v10341_v32  ;;  %v5598_v43 = vpop.f32.mrb[21].mxu1  ;;  %v8919_v41 = vld [vmem:[%s9439_s12 + $0x1c0] sm:$0xff]  }
0x200b   : > { %v5604_v45 = vadd.f32 %v5598_v43, %v10339_v31  ;;  %v5600_v44 = vpop.f32.mrb[22].mxu1  ;;  %8157 = vmatprep.subr.bf16.mxu1 %v8919_v41 }
0x200c   : > { %v5624_v46 = vadd.f32 %v5619_v20, %v5603_v42  ;;  %v5601_v47 = vpop.f32.mrb[23].mxu1  ;;  %v10426_v42 = vld [vmem:[%s9468_s21 + $0x10] sm:$0x77] }
0x200d   : > { %v5625_v48 = vadd.f32 %v5623_v19, %v5604_v45  ;;  %v8920_v19 = vld [vmem:[%s9439_s12 + $0x180] sm:$0xff]   ;;  %v5727_v43 = vrot.slane %v10426_v42, %v10084_v17  ;;  %v5731_v45 = vrot.slane %v10426_v42, %v10131_v15 }
0x200e   : > { %v5629_v53 = vmul.f32 %v5624_v46, %v5624_v46  ;;  %8158 = vmatpush3.bf16.msra.mxu1 %v8920_v19 }
0x200f   : > { %v5626_v54 = vadd.f32 %v5625_v48, %v5624_v46  ;;  %v5630_v1 = vmul.f32 %v5625_v48, %v5625_v48  ;;  %v5737_v44 = vrot.slane %v5727_v43, %v10084_v17  ;;  %8159 = vmatprep.subr.bf16.mxu1 %v8921_v57  ;;  %v8941_v57 = vld [vmem:[%s9447_s5 + $0x1a0] ss:$8 sps:$4 sm:$0xff]  }
0x2011   : > { %5627 = vadd.xlane.f32.xlu0 %v5626_v54  ;;  %v5631_v55 = vadd.f32 %v5630_v1, %v5629_v53 }
0x2012   : > { %8160 = vmatpush3.bf16.msra.mxu1 %v8922_v58  ;;  %v8946_v58 = vld [vmem:[%s9447_s5 + $0x1b4] ss:$8 sps:$4 sm:$0xff]  }
0x2013   : > { %5632 = vadd.xlane.f32.xlu1 %v5631_v55  ;;  %8161 = vmatprep.subr.bf16.mxu1 %v8923_v59  ;;  %v8944_v59 = vld [vmem:[%s9447_s5 + $0x1b0] ss:$8 sps:$4 sm:$0xff]  }
0x2016   : > { %8162 = vmatpush3.bf16.msra.mxu1 %v8924_v61  ;;  %v8949_v61 = vld [vmem:[%s9447_s5 + $0x1c4] ss:$8 sps:$4 sm:$0xff]  }
0x2017   : > { %8163 = vmatprep.subr.bf16.mxu1 %v8925_v36  ;;  %v8947_v36 = vld [vmem:[%s9447_s5 + $0x1c0] ss:$8 sps:$4 sm:$0xff]  }
0x201a   : > { %8164 = vmatpush3.bf16.msra.mxu1 %v8926_v62  ;;  %v8952_v62 = vld [vmem:[%s9447_s5 + $0x1d4] ss:$8 sps:$4 sm:$0xff]  }
0x201b   : > { %8165 = vmatprep.subr.bf16.mxu1 %v8927_v16  ;;  %v8950_v16 = vld [vmem:[%s9447_s5 + $0x1d0] ss:$8 sps:$4 sm:$0xff]  }
0x201e   : > { %8166 = vmatpush3.bf16.msra.mxu1 %v8928_v63  ;;  %v8955_v63 = vld [vmem:[%s9447_s5 + $0x1e4] ss:$8 sps:$4 sm:$0xff]  }
0x201f   : > { %8167 = vmatprep.subr.bf16.mxu1 %v8929_v7  ;;  %v8953_v7 = vld [vmem:[%s9447_s5 + $0x1e0] ss:$8 sps:$4 sm:$0xff]  }
0x2022   : > { %8168 = vmatpush3.bf16.msra.mxu1 %v8930_v8  ;;  %v8958_v8 = vld [vmem:[%s9447_s5 + $0x1f4] ss:$8 sps:$4 sm:$0xff]  }
0x209e   : > { %v5628_v6 = vpop.xlane.xlu0 %5627 }
0x209f   : > { %v5634_v9 = vmul.f32 0.00390625, %v5628_v6  ;;  %v8931_v6 = vld [vmem:[%s9439_s12 + $0x1f0] sm:$0xff]  }
0x20a0   : > { %v5633_v10 = vpop.xlane.xlu1 %5632  ;;  %8169 = vmatprep.subr.bf16.mxu1 %v8931_v6  ;;  %v8956_v6 = vld [vmem:[%s9447_s5 + $0x1f0] ss:$8 sps:$4 sm:$0xff]  }
0x20a1   : > { %v5635_v11 = vmul.f32 0.00390625, %v5633_v10  ;;  %v5636_v12 = vmul.f32 %v5634_v9, %v5634_v9  ;;  %v5638_v37 = vsub.f32 %v5624_v46, %v5634_v9  ;;  %v5639_v25 = vsub.f32 %v5625_v48, %v5634_v9  ;;  %v8932_v9 = vld [vmem:[%s9439_s12 + $0x1b0] sm:$0xff]   ;;  %v8933_v10 = vld [vmem:[%s9439_s12 + $0x1f8] sm:$0xff]  }
0x20a2   : > { %v5741_v46 = vrot.slane %v5731_v45, %v10084_v17  ;;  %8170 = vmatpush3.bf16.msra.mxu1 %v8932_v9  ;;  %v8935_v45 = vld [vmem:[%s9447_s5 + $0x180] ss:$8 sps:$4 sm:$0xff]  }
0x20a3   : > { %v5637_v13 = vsub.f32 %v5635_v11, %v5636_v12  ;;  %v8934_v11 = vld [vmem:[%s9439_s12 + $0x1b8] sm:$0xff]   ;;  %8171 = vmatprep.subr.bf16.mxu1 %v8933_v10 }
0x20a5   : > { %v5640_v14 = vadd.f32 1e-05, %v5637_v13 }
0x20a6   : > { %8172 = vmatpush3.bf16.msra.mxu1 %v8934_v11 }
0x20a7   : > { %9021 = vrsqrt.f32 %v5640_v14 }
0x20b1   : > { %v9022_v28 = vpop.eup %9021 }
0x20b2   : > { %v5643_v29 = vmul.f32 %v9022_v28, %v5639_v25  ;;  %v5642_v3 = vmul.f32 %v9022_v28, %v5638_v37  ;;  %v5968_v37 = vrot.slane %v10426_v42, %v10163_v2  ;;  %v5964_v25 = vrot.slane %v10426_v42, %v10104_v49 }
0x20b4   : > { %v5663_v33 = vmul.f32 %v5661_v60, %v5643_v29  ;;  %v5662_v26 = vmul.f32 %v5657_v27, %v5642_v3  ;;  %v5988_v60 = vrot.slane %v10426_v42, %v10166_v4  ;;  %v5984_v27 = vrot.slane %v10426_v42, %v10107_v52 }
0x20b5   : > { %v5974_v3 = vrot.slane %v5964_v25, %v10104_v49 }
0x20b6   : > { %v5683_v34 = vadd.f32 %v5681_v30, %v5663_v33  ;;  %v5682_v38 = vadd.f32 %v5677_v5, %v5662_v26  ;;  %v5978_v30 = vrot.slane %v5968_v37, %v10104_v49  ;;  %v5998_v26 = vrot.slane %v5988_v60, %v10107_v52 }
0x20b8   : > { %v5685_v24 = vmax.f32 %v5683_v34, 0.0  ;;  %v5684_v39 = vmax.f32 %v5682_v38, 0.0  ;;  %v5994_v38 = vrot.slane %v5984_v27, %v10107_v52 }
0x20ba   : > { %v5722_v40 = vpack.c.bf16 %v5685_v24, %v5685_v24  ;;  %v5721_v20 = vpack.c.bf16 %v5684_v39, %v5684_v39 }
0x20bc   : > { %5934 = vmatprep.mubr.bf16.mxu0 %v5722_v40 }
0x20bd   : > { %5935 = vmatmul.mubr.bf16.vlgmr.msra.gmra.mrb[8].mxu0 %v5721_v20 }
0x2190   : > { %v5936_v47 = vpop.f32.mrb[8].mxu0 }
0x2191   : > { %v5937_v48 = vadd.f32 %v5936_v47, %v5737_v44  ;;  %v5938_v53 = vpop.f32.mrb[9].mxu0  ;;  %v8937_v44 = vld [vmem:[%s9447_s5 + $0x184] ss:$8 sps:$4 sm:$0xff]  }
0x2192   : > { %v5939_v54 = vadd.f32 %v5938_v53, %v5741_v46  ;;  %v5940_v1 = vpop.f32.mrb[10].mxu0  ;;  %6304 = vmatprep.subr.bf16.mxu1 %v8937_v44  ;;  %v7846_v46 = vld [vmem:[%s9458_s15 + $0xc] sm:$0x7]  ;;  %v10504_v44 = vld [vmem:[%s9463_s29 + $0x18] sm:$0x77]  ;;  %s10631_s29 = sld [smem:[#allocation18_spill]] }
0x2193   : > { %v5941_v55 = vpop.f32.mrb[11].mxu0  ;;  %v5946_v56 = vmul.f32 %v5937_v48, %v5937_v48  ;;  %v6203_v37 = vrot.slane %v7846_v46, %v10107_v52 }
0x2194   : > { %v5943_v22 = vadd.f32 %v5939_v54, %v5937_v48  ;;  %v5947_v0 = vmul.f32 %v5939_v54, %v5939_v54 }
0x2196   : > { %5944 = vadd.xlane.f32.xlu0 %v5943_v22  ;;  %v5948_v23 = vadd.f32 %v5947_v0, %v5946_v56  ;;  %v8940_v22 = vld [vmem:[%s9447_s5 + $0x194] ss:$8 sps:$4 sm:$0xff]   ;;  %v8938_v0 = vld [vmem:[%s9447_s5 + $0x190] ss:$8 sps:$4 sm:$0xff]  }
0x2198   : > { %5949 = vadd.xlane.f32.xlu1 %v5948_v23  ;;  %v8943_v23 = vld [vmem:[%s9447_s5 + $0x1a4] ss:$8 sps:$4 sm:$0xff]  }
0x2223   : > { %v5945_v12 = vpop.xlane.xlu0 %5944 }
0x2224   : > { %v5951_v13 = vmul.f32 0.00390625, %v5945_v12 }
0x2225   : > { %v5950_v14 = vpop.xlane.xlu1 %5949 }
0x2226   : > { %v5952_v18 = vmul.f32 0.00390625, %v5950_v14  ;;  %v5953_v50 = vmul.f32 %v5951_v13, %v5951_v13  ;;  %v5955_v28 = vsub.f32 %v5937_v48, %v5951_v13  ;;  %v5956_v29 = vsub.f32 %v5939_v54, %v5951_v13 }
0x2227   : > { %v6045_v48 = vrot.slane %v7846_v46, %v10084_v17 }
0x2228   : > { %v5954_v21 = vsub.f32 %v5952_v18, %v5953_v50  ;;  %v6198_v50 = vrot.slane %v7846_v46, %v10104_v49  ;;  %v6351_v46 = vrot.slane %v10504_v44, %v10084_v17 }
0x222a   : > { %v5957_v51 = vadd.f32 1e-05, %v5954_v21 }
0x222c   : > { %9023 = vrsqrt.f32 %v5957_v51 }
0x2236   : > { %v9024_v5 = vpop.eup %9023 }
0x2237   : > { %v5960_v33 = vmul.f32 %v9024_v5, %v5956_v29  ;;  %v5959_v34 = vmul.f32 %v9024_v5, %v5955_v28  ;;  %v8964_v5 = vld [vmem:[%s9470_s25 + $0x314] ss:$8 sps:$4 sm:$0xff]  }
0x2239   : > { %v5980_v24 = vmul.f32 %v5978_v30, %v5960_v33  ;;  %v5979_v39 = vmul.f32 %v5974_v3, %v5959_v34  ;;  %v8959_v30 = vld [vmem:[%s9470_s25 + $0x300] ss:$8 sps:$4 sm:$0xff]   ;;  %v8961_v3 = vld [vmem:[%s9470_s25 + $0x304] ss:$8 sps:$4 sm:$0xff]   ;;  %v8962_v33 = vld [vmem:[%s9470_s25 + $0x310] ss:$8 sps:$4 sm:$0xff]  }
0x223a   : > { %6650 = vmatprep.subr.bf16.mxu0 %v8961_v3  ;;  %v8965_v34 = vld [vmem:[%s9470_s25 + $0x320] ss:$8 sps:$4 sm:$0xff]   ;;  %v6389_v3 = vrot.slane %v10504_v44, %v10104_v49 }
0x223b   : > { %v6000_v40 = vadd.f32 %v5998_v26, %v5980_v24  ;;  %v5999_v20 = vadd.f32 %v5994_v38, %v5979_v39  ;;  %6651 = vmatpush1.bf16.msra.mxu0 %v8959_v30  ;;  %v8967_v26 = vld [vmem:[%s9470_s25 + $0x324] ss:$8 sps:$4 sm:$0xff]   ;;  %v8970_v38 = vld [vmem:[%s9470_s25 + $0x334] ss:$8 sps:$4 sm:$0xff]   ;;  %v8968_v24 = vld [vmem:[%s9470_s25 + $0x330] ss:$8 sps:$4 sm:$0xff]   ;;  %v6393_v30 = vrot.slane %v10504_v44, %v10163_v2 }
0x223c   : > { %6652 = vmatprep.subr.bf16.mxu0 %v8964_v5  ;;  %v8973_v39 = vld [vmem:[%s9470_s25 + $0x344] ss:$8 sps:$4 sm:$0xff]   ;;  %v6413_v5 = vrot.slane %v10504_v44, %v10166_v4 }
0x223d   : > { %v10460_v41 = vmax.f32 %v6000_v40, 0.0  ;;  %v10462_v19 = vmax.f32 %v5999_v20, 0.0  ;;  %v8971_v40 = vld [vmem:[%s9470_s25 + $0x340] ss:$8 sps:$4 sm:$0xff]   ;;  %v8976_v20 = vld [vmem:[%s9470_s25 + $0x354] ss:$8 sps:$4 sm:$0xff]  }
0x223f   : > { %v6041_v42 = vpack.c.bf16 %v10460_v41, %v10460_v41  ;;  %v6040_v43 = vpack.c.bf16 %v10462_v19, %v10462_v19  ;;  %6653 = vmatpush1.bf16.msra.mxu0 %v8962_v33  ;;  %v6409_v33 = vrot.slane %v10504_v44, %v10107_v52 }
0x2240   : > { %6654 = vmatprep.subr.bf16.mxu0 %v8967_v26 }
0x2241   : > { %6174 = vmatprep.mubr.bf16.mxu1 %v6041_v42  ;;  %v8974_v42 = vld [vmem:[%s9470_s25 + $0x350] ss:$8 sps:$4 sm:$0xff]  }
0x2242   : > { %6175 = vmatmul.mubr.bf16.vlgmr.msra.gmra.mrb[24].mxu1 %v6040_v43  ;;  %v8979_v43 = vld [vmem:[%s9470_s25 + $0x364] ss:$8 sps:$4 sm:$0xff]  }
0x2243   : > { %6336 = vmatprep.mubr.bf16.mxu1 %v9190_v35  ;;  %6305 = vmatpush1.bf16.msra.mxu1 %v8935_v45  ;;  %v8977_v45 = vld [vmem:[%s9470_s25 + $0x360] ss:$8 sps:$4 sm:$0xff]  }
0x2244   : > { %6306 = vmatprep.subr.bf16.mxu1 %v8940_v22  ;;  %6655 = vmatpush1.bf16.msra.mxu0 %v8965_v34 }
0x2245   : > { %6656 = vmatprep.subr.bf16.mxu0 %v8970_v38  ;;  %v6403_v38 = vrot.slane %v6393_v30, %v10104_v49 }
0x2247   : > { %6307 = vmatpush1.bf16.msra.mxu1 %v8938_v0 }
0x2248   : > { %6308 = vmatprep.subr.bf16.mxu1 %v8943_v23  ;;  %6657 = vmatpush1.bf16.msra.mxu0 %v8968_v24  ;;  %v6399_v24 = vrot.slane %v6389_v3, %v10104_v49 }
0x2249   : > { %6658 = vmatprep.subr.bf16.mxu0 %v8973_v39 }
0x224b   : > { %6309 = vmatpush1.bf16.msra.mxu1 %v8941_v57 }
0x224c   : > { %6310 = vmatprep.subr.bf16.mxu1 %v8946_v58  ;;  %6659 = vmatpush1.bf16.msra.mxu0 %v8971_v40 }
0x224d   : > { %6660 = vmatprep.subr.bf16.mxu0 %v8976_v20 }
0x224f   : > { %6311 = vmatpush1.bf16.msra.mxu1 %v8944_v59 }
0x2250   : > { %6312 = vmatprep.subr.bf16.mxu1 %v8949_v61  ;;  %6661 = vmatpush1.bf16.msra.mxu0 %v8974_v42  ;;  %v8980_v61 = vld [vmem:[%s9470_s25 + $0x370] ss:$8 sps:$4 sm:$0xff]   ;;  %v6423_v42 = vrot.slane %v6413_v5, %v10107_v52 }
0x2251   : > { %6662 = vmatprep.subr.bf16.mxu0 %v8979_v43  ;;  %v6419_v43 = vrot.slane %v6409_v33, %v10107_v52 }
0x2253   : > { %6313 = vmatpush1.bf16.msra.mxu1 %v8947_v36  ;;  %v8985_v36 = vld [vmem:[%s9470_s25 + $0x384] ss:$8 sps:$4 sm:$0xff]  }
0x2254   : > { %6314 = vmatprep.subr.bf16.mxu1 %v8952_v62  ;;  %6663 = vmatpush1.bf16.msra.mxu0 %v8977_v45  ;;  %v8983_v62 = vld [vmem:[%s9470_s25 + $0x380] ss:$8 sps:$4 sm:$0xff]  }
0x2257   : > { %6315 = vmatpush1.bf16.msra.mxu1 %v8950_v16  ;;  %v8988_v16 = vld [vmem:[%s9470_s25 + $0x394] ss:$8 sps:$4 sm:$0xff]  }
0x2258   : > { %6316 = vmatprep.subr.bf16.mxu1 %v8955_v63  ;;  %v8986_v63 = vld [vmem:[%s9470_s25 + $0x390] ss:$8 sps:$4 sm:$0xff]  }
0x225b   : > { %6317 = vmatpush1.bf16.msra.mxu1 %v8953_v7  ;;  %v8991_v7 = vld [vmem:[%s9470_s25 + $0x3a4] ss:$8 sps:$4 sm:$0xff]  }
0x225c   : > { %6318 = vmatprep.subr.bf16.mxu1 %v8958_v8  ;;  %v8989_v8 = vld [vmem:[%s9470_s25 + $0x3a0] ss:$8 sps:$4 sm:$0xff]  }
0x225f   : > { %6319 = vmatpush1.bf16.msra.mxu1 %v8956_v6  ;;  %v8994_v6 = vld [vmem:[%s9470_s25 + $0x3b4] ss:$8 sps:$4 sm:$0xff]  }
0x2315   : > { %v8173_v47 = vpop.f32.mrb[24].mxu1 }
0x2316   : > { %v8174_v53 = vpop.f32.mrb[25].mxu1 }
0x2317   : > { %v8175_v54 = vadd.f32 %v8174_v53, %v8173_v47  ;;  %v8176_v1 = vpop.f32.mrb[26].mxu1  ;;  %v6355_v47 = vrot.slane %v10504_v44, %v10131_v15 }
0x2318   : > { %v8177_v55 = vpop.f32.mrb[27].mxu1 }
0x2319   : > { %v6177_v35 = vadd.f32 %v8175_v54, %v6045_v48  ;;  %v6361_v48 = vrot.slane %v6351_v46, %v10084_v17  ;;  %v6365_v54 = vrot.slane %v6355_v47, %v10084_v17 }
0x231b   : > { %6182 = vadd.xlane.f32.xlu0 %v6177_v35  ;;  %v6184_v56 = vmul.f32 %v6177_v35, %v6177_v35 }
0x231d   : > { %6185 = vadd.xlane.f32.xlu1 %v6184_v56 }
0x23a8   : > { %v6183_v9 = vpop.xlane.xlu0 %6182 }
0x23a9   : > { %v6187_v10 = vmul.f32 0.0078125, %v6183_v9  ;;  %v8992_v9 = vld [vmem:[%s9470_s25 + $0x3b0] ss:$8 sps:$4 sm:$0xff]  }
0x23aa   : > { %v6186_v11 = vpop.xlane.xlu1 %6185 }
0x23ab   : > { %v6189_v12 = vmul.f32 %v6187_v10, %v6187_v10  ;;  %v6188_v13 = vmul.f32 0.0078125, %v6186_v11  ;;  %v6191_v21 = vsub.f32 %v6177_v35, %v6187_v10  ;;  %v8997_v10 = vld [vmem:[%s9470_s25 + $0x3c4] ss:$8 sps:$4 sm:$0xff]   ;;  %v8995_v11 = vld [vmem:[%s9470_s25 + $0x3c0] ss:$8 sps:$4 sm:$0xff]  }
0x23ad   : > { %v6190_v14 = vsub.f32 %v6188_v13, %v6189_v12  ;;  %v9000_v12 = vld [vmem:[%s9470_s25 + $0x3d4] ss:$8 sps:$4 sm:$0xff]   ;;  %v8998_v13 = vld [vmem:[%s9470_s25 + $0x3d0] ss:$8 sps:$4 sm:$0xff]  }
0x23af   : > { %v6192_v18 = vadd.f32 1e-05, %v6190_v14  ;;  %v9003_v14 = vld [vmem:[%s9470_s25 + $0x3e4] ss:$8 sps:$4 sm:$0xff]  }
0x23b1   : > { %9025 = vrsqrt.f32 %v6192_v18  ;;  %v9001_v18 = vld [vmem:[%s9470_s25 + $0x3e0] ss:$8 sps:$4 sm:$0xff]  }
0x23bb   : > { %v9026_v51 = vpop.eup %9025 }
0x23bc   : > { %v6194_v25 = vmul.f32 %v9026_v51, %v6191_v21  ;;  %v9004_v21 = vld [vmem:[%s9470_s25 + $0x3f0] ss:$8 sps:$4 sm:$0xff]  }
0x23be   : > { %v6199_v60 = vmul.f32 %v6198_v50, %v6194_v25  ;;  %v9006_v50 = vld [vmem:[%s9470_s25 + $0x3f4] ss:$8 sps:$4 sm:$0xff]  }
0x23c0   : > { %v6204_v27 = vadd.f32 %v6203_v37, %v6199_v60 }
0x23c2   : > { %v6205_v28 = vmax.f32 %v6204_v27, 0.0 }
0x23c4   : > { %v6223_v29 = vpack.c.bf16 %v6205_v28, %v6205_v28 }
0x23c6   : > { %6337 = vmatmul.mubr.bf16.vlgmr.msra.gmra.mrb[28].mxu1 %v6223_v29 }
0x2499   : > { %v6338_v53 = vpop.f32.mrb[28].mxu1 }
0x249a   : > { %v6345_v1 = vadd.f32 %v6338_v53, %v10462_v19  ;;  %v6340_v55 = vpop.f32.mrb[29].mxu1 }
0x249b   : > { %v6346_v35 = vadd.f32 %v6340_v55, %v10460_v41  ;;  %v6342_v56 = vpop.f32.mrb[30].mxu1  ;;  %v8982_v41 = vld [vmem:[%s9470_s25 + $0x374] ss:$8 sps:$4 sm:$0xff]  }
0x249c   : > { %v10514_v22 = vadd.f32 %v6361_v48, %v6345_v1  ;;  %v6343_v0 = vpop.f32.mrb[31].mxu1  ;;  %6664 = vmatprep.subr.bf16.mxu0 %v8982_v41  ;;  %v3780_v55 = vld [vmem:[#allocation4 + $0x8] sm:$0xff]  ;;  %v9033_v56 = vld [vmem:[#allocation3 + $0x8] sm:$0xff]  ;;  %v7960_v41 = vld [vmem:[%s9468_s21 + $0x18] sm:$0x77] }
0x249d   : > { %v6367_v23 = vadd.f32 %v6365_v54, %v6346_v35  ;;  %6665 = vmatpush1.bf16.msra.mxu0 %v8980_v61  ;;  %v3779_v35 = vld [vmem:[#allocation4] sm:$0xff]  ;;  %v9034_v0 = vld [vmem:[#allocation3] sm:$0xff]  ;;  %v6475_v61 = vrot.slane %v7960_v41, %v10084_v17 }
0x249e   : > { %v6371_v57 = vmul.f32 %v10514_v22, %v10514_v22  ;;  %6666 = vmatprep.subr.bf16.mxu0 %v8985_v36  ;;  %v6479_v36 = vrot.slane %v7960_v41, %v10131_v15 }
0x249f   : > { %v6368_v58 = vadd.f32 %v6367_v23, %v10514_v22  ;;  %v6372_v59 = vmul.f32 %v6367_v23, %v6367_v23 }
0x24a1   : > { %6369 = vadd.xlane.f32.xlu0 %v6368_v58  ;;  %v6373_v19 = vadd.f32 %v6372_v59, %v6371_v57  ;;  %6667 = vmatpush1.bf16.msra.mxu0 %v8983_v62 }
0x24a2   : > { %6668 = vmatprep.subr.bf16.mxu0 %v8988_v16 }
0x24a3   : > { %6374 = vadd.xlane.f32.xlu1 %v6373_v19 }
0x24a5   : > { %6669 = vmatpush1.bf16.msra.mxu0 %v8986_v63 }
0x24a6   : > { %6670 = vmatprep.subr.bf16.mxu0 %v8991_v7 }
0x24a9   : > { %6671 = vmatpush1.bf16.msra.mxu0 %v8989_v8 }
0x24aa   : > { %6672 = vmatprep.subr.bf16.mxu0 %v8994_v6 }
0x24ad   : > { %6673 = vmatpush1.bf16.msra.mxu0 %v8992_v9 }
0x24ae   : > { %6674 = vmatprep.subr.bf16.mxu0 %v8997_v10 }
0x24b1   : > { %6675 = vmatpush1.bf16.msra.mxu0 %v8995_v11 }
0x24b2   : > { %6676 = vmatprep.subr.bf16.mxu0 %v9000_v12 }
0x24b5   : > { %6677 = vmatpush1.bf16.msra.mxu0 %v8998_v13 }
0x24b6   : > { %6678 = vmatprep.subr.bf16.mxu0 %v9003_v14 }
0x24b9   : > { %6679 = vmatpush1.bf16.msra.mxu0 %v9001_v18 }
0x24ba   : > { %6680 = vmatprep.subr.bf16.mxu0 %v9006_v50 }
0x24bd   : > { %6681 = vmatpush1.bf16.msra.mxu0 %v9004_v21 }
0x252e   : > { %v6370_v51 = vpop.xlane.xlu0 %6369 }
0x252f   : > { %v6376_v37 = vmul.f32 0.00390625, %v6370_v51 }
0x2530   : > { %v6375_v25 = vpop.xlane.xlu1 %6374 }
0x2531   : > { %v6377_v60 = vmul.f32 0.00390625, %v6375_v25  ;;  %v6378_v27 = vmul.f32 %v6376_v37, %v6376_v37  ;;  %v6380_v26 = vsub.f32 %v10514_v22, %v6376_v37  ;;  %v6381_v34 = vsub.f32 %v6367_v23, %v6376_v37 }
0x2532   : > { %v6712_v37 = vrot.slane %v7960_v41, %v10104_v49  ;;  %v6716_v25 = vrot.slane %v7960_v41, %v10163_v2  ;;  %v6751_v2 = vld [vmem:[%s10600_s9] sm:$0x3] }
0x2533   : > { %v6379_v28 = vsub.f32 %v6377_v60, %v6378_v27  ;;  %v6732_v60 = vrot.slane %v7960_v41, %v10107_v52  ;;  %v6736_v27 = vrot.slane %v7960_v41, %v10166_v4 }
0x2534   : > { %v6722_v30 = vrot.slane %v6712_v37, %v10104_v49  ;;  %v6726_v3 = vrot.slane %v6716_v25, %v10104_v49 }
0x2535   : > { %v6382_v29 = vadd.f32 1e-05, %v6379_v28 }
0x2537   : > { %9027 = vrsqrt.f32 %v6382_v29 }
0x2541   : > { %v9028_v39 = vpop.eup %9027 }
0x2542   : > { %v6384_v40 = vmul.f32 %v9028_v39, %v6380_v26  ;;  %v6385_v20 = vmul.f32 %v9028_v39, %v6381_v34  ;;  %v6742_v34 = vrot.slane %v6732_v60, %v10107_v52 }
0x2544   : > { %v6405_v45 = vmul.f32 %v6403_v38, %v6385_v20  ;;  %v6404_v46 = vmul.f32 %v6399_v24, %v6384_v40  ;;  %v6746_v38 = vrot.slane %v6736_v27, %v10107_v52  ;;  %v6756_v20 = vrot.slane %v6751_v2, %v10084_v17 }
0x2546   : > { %v6425_v47 = vadd.f32 %v6423_v42, %v6405_v45  ;;  %v6424_v48 = vadd.f32 %v6419_v43, %v6404_v46  ;;  %v6760_v42 = vrot.slane %v6751_v2, %v10104_v49 }
0x2548   : > { %v6427_v53 = vmax.f32 %v6425_v47, 0.0  ;;  %v6426_v44 = vmax.f32 %v6424_v48, 0.0 }
0x254a   : > { %v6429_v54 = vadd.f32 %v6427_v53, %v10339_v31  ;;  %v6428_v1 = vadd.f32 %v6426_v44, %v10341_v32  ;;  %v6485_v31 = vrot.slane %v6475_v61, %v10084_v17  ;;  %v6489_v32 = vrot.slane %v6479_v36, %v10084_v17  ;;  %v7993_v53 = vld [vmem:[#allocation5] ss:$0 sm:$0xff] }
0x254c   : > { %v6431_v22 = vadd.f32 %v9033_v56, %v6429_v54  ;;  %v6430_v23 = vadd.f32 %v9034_v0, %v6428_v1 }
0x254e   : > { %v6433_v57 = vadd.f32 %v6431_v22, %v3780_v55  ;;  %v6432_v58 = vadd.f32 %v6430_v23, %v3779_v35 }
0x2550   : > { %v6470_v59 = vpack.c.bf16 %v6433_v57, %v6433_v57  ;;  %v6469_v19 = vpack.c.bf16 %v6432_v58, %v6432_v58 }
0x2552   : > { %6682 = vmatprep.mubr.bf16.mxu0 %v6470_v59 }
0x2553   : > { %6683 = vmatmul.mubr.bf16.vlgmr.msra.gmra.mrb[12].mxu0 %v6469_v19 }
0x2626   : > { %v6684_v62 = vpop.f32.mrb[12].mxu0 }
0x2627   : > { %v6685_v16 = vadd.f32 %v6684_v62, %v6485_v31  ;;  %v6686_v63 = vpop.f32.mrb[13].mxu0 }
0x2628   : > { %v6687_v7 = vadd.f32 %v6686_v63, %v6489_v32  ;;  %v6688_v8 = vpop.f32.mrb[14].mxu0 }
0x2629   : > { %v6689_v6 = vpop.f32.mrb[15].mxu0  ;;  %v6694_v9 = vmul.f32 %v6685_v16, %v6685_v16 }
0x262a   : > { %v6691_v10 = vadd.f32 %v6687_v7, %v6685_v16  ;;  %v6695_v11 = vmul.f32 %v6687_v7, %v6687_v7 }
0x262c   : > { %6692 = vadd.xlane.f32.xlu0 %v6691_v10  ;;  %v6696_v12 = vadd.f32 %v6695_v11, %v6694_v9 }
0x262e   : > { %6697 = vadd.xlane.f32.xlu1 %v6696_v12 }
0x26b9   : > { %v6693_v13 = vpop.xlane.xlu0 %6692 }
0x26ba   : > { %v6699_v14 = vmul.f32 0.00390625, %v6693_v13 }
0x26bb   : > { %v6698_v18 = vpop.xlane.xlu1 %6697 }
0x26bc   : > { %v6700_v15 = vmul.f32 0.00390625, %v6698_v18  ;;  %v6701_v50 = vmul.f32 %v6699_v14, %v6699_v14  ;;  %v6703_v28 = vsub.f32 %v6685_v16, %v6699_v14  ;;  %v6704_v29 = vsub.f32 %v6687_v7, %v6699_v14 }
0x26be   : > { %v6702_v21 = vsub.f32 %v6700_v15, %v6701_v50 }
0x26c0   : > { %v6705_v51 = vadd.f32 1e-05, %v6702_v21 }
0x26c2   : > { %9029 = vrsqrt.f32 %v6705_v51 }
0x26cc   : > { %v9030_v5 = vpop.eup %9029 }
0x26cd   : > { %v6707_v33 = vmul.f32 %v9030_v5, %v6703_v28  ;;  %v6708_v26 = vmul.f32 %v9030_v5, %v6704_v29 }
0x26cf   : > { %v6727_v24 = vmul.f32 %v6722_v30, %v6707_v33  ;;  %v6728_v39 = vmul.f32 %v6726_v3, %v6708_v26 }
0x26d1   : > { %v6747_v4 = vadd.f32 %v6742_v34, %v6727_v24  ;;  %v6748_v40 = vadd.f32 %v6746_v38, %v6728_v39 }
0x26d3   : > { %v6749_v43 = vmax.f32 %v6747_v4, 0.0  ;;  %v6750_v45 = vmax.f32 %v6748_v40, 0.0 }
0x26d5   : > { %v6763_v46 = vmul.f32 %v6756_v20, %v6749_v43  ;;  %v6764_v47 = vmul.f32 %v6760_v42, %v6750_v45 }
0x26d7   : > { %v6765_v48 = vadd.f32 %v6764_v47, %v6763_v46 }
0x26d9   : > { %6766 = vadd.xlane.f32.xlu0 %v6765_v48 }
0x2766   : > { %v6767_v52 = vpop.xlane.xlu0 %6766 }
0x2767   : > { %v6775_v44 = vadd.f32 %v7993_v53, %v6767_v52 }
0x2769   : > { %6777 = vst.msk [vmem:[%s10631_s29] sm:$0xff] %vm6776_vm1, %v6775_v44 }
0x276a PF: > { %s29_s24 = sadd.s32 1, %s9179_s24   ;;  %s10632_s21 = sld [smem:[#allocation13_spill]] }
0x276b   : > { %p26_p10 = scmp.ge.s32.totalorder %s29_s24, 4   ;;  %s10633_s25 = sld [smem:[#allocation15_spill]] }
0x276c   : > { %s10634_s3 = sld [smem:[#allocation14_spill]]  ;;  %s10635_s19 = smov %s9163_s20 }
0x276d   : > { %s10638_s22 = smov %s9175_s23  ;;  %28 = sbr.rel (!%p26_p10) target bundleno = 10 (0xa), region = 184 }
0x2770   : > { %s10636_s20 = smov %s10632_s21 }
0x2771   : > { %s10637_s21 = smov %s10633_s25 }
0x2772   : > { %s10639_s23 = smov %s10634_s3 }
0x2774   :  { %6797 = vsyncpa [#allocation7], 1 }
0x2775   :  { %6799 = vsyncpa [#allocation7 + $0x1], 1 }
0x2776   :  { %6800 = vsyncpa [#allocation9], 1 }
0x2777   :  { %6802 = vsyncpa [#allocation9 + $0x1], 1 }

</bundles_post_ra>
